<compile_context>
chip_gen: v5e
topology: v5e:2x2
jax: 0.10.0
libtpu: 0.0.40
codegen_flags: <defaults>
</compile_context>

<pallas_src>
import jax
import jax.numpy as jnp
import numpy as np
from jax.experimental import pallas as pl
from jax.experimental.pallas import tpu as pltpu

# Make the XLA-side reference / precompute matmuls full-f32 so they match the
# kernel's f32 MXU accumulation within the 1e-4 tolerance.
jax.config.update("jax_default_matmul_precision", "highest")

# ---- model / problem sizes (small, consistent with the module) --------------
V = 64        # vocab_size
V_PAD = 128   # vocab padded to a full lane tile
E = 32        # embed_size
H = 32        # hidden_size
C = 16        # context_size
S = 8         # num_slots
B = 8         # batch
T = 8         # max_step
NSTEP = T - 1
IGNORE_INDEX = 2
WCOMB_N = 2 * V_PAD   # 256 = [W_h(96) | M_k^T(8) | pad(24) | W_out(64) | pad(64)]


# ----------------------------- Pallas kernel ---------------------------------
def gru_decoder_kernel(tok_ref, mask_ref, lbl_ref, h0_ref,
                       wcomb_ref, mvic_ref, embproj_ref, b_ref, bo_ref,
                       acc_ref):
    # Loop-invariant loads / constants hoisted out of the unrolled loop.
    w_comb = wcomb_ref[...]                 # (H, 256)
    mvic = mvic_ref[...]                    # (S, 3H)   = M_v @ W_i[E:]
    bo = bo_ref[...]                        # (1, V_PAD) (pad lanes = -1e30)
    mask_all = mask_ref[...]                # (B, T-1)
    lbl_all = lbl_ref[...]                  # (B, T-1) int32
    col_ids = jax.lax.broadcasted_iota(jnp.int32, (B, V_PAD), 1)   # built once

    # Prologue (off the recurrence chain): embedding lookup as a one-hot matmul
    # against the pre-folded (embedding @ W_i[:E]) table, for all 7 steps at
    # once, with the fused bias (b_i + b_h) folded in.
    onehot_tok = (jax.lax.broadcasted_iota(jnp.int32, (NSTEP * B, V), 1)
                  == tok_ref[...]).astype(jnp.float32)              # (56, V)
    xe_all = (jnp.dot(onehot_tok, embproj_ref[...],
                      preferred_element_type=jnp.float32)
              + b_ref[...])                                         # (56, 3H)

    h = h0_ref[...]                                                 # (B, H)
    # Combined h-side matmul: lanes [:3H] = W_h projection, [3H:3H+S] =
    # attention scores, [V_PAD:] = logits of the *updated* h (unused for h0).
    hp = jnp.dot(h, w_comb, preferred_element_type=jnp.float32)     # (B, 256)

    acc = jnp.zeros((B, V_PAD), jnp.float32)                        # CE terms, lane-dense

    for i in range(NSTEP):                                          # fully unrolled
        hh = hp[:, :3 * H]
        scores = hp[:, 3 * H:3 * H + S]

        # Memory-slot attention: matmul on the un-normalized exponentials,
        # normalize afterwards (sum + reciprocal overlap the MXU op).
        exp_s = jnp.exp(scores)
        ctx_un = jnp.dot(exp_s, mvic, preferred_element_type=jnp.float32)   # (B, 3H)
        inv = 1.0 / jnp.sum(exp_s, axis=-1, keepdims=True)                  # (B, 1)

        xi = xe_all[i * B:(i + 1) * B, :] + ctx_un * inv                    # (B, 3H)

        # GRU gates; biases (b_i + b_h) already folded into xi.
        gates = jax.nn.sigmoid(xi[:, :2 * H] + hh[:, :2 * H])
        r = gates[:, :H]
        z = gates[:, H:]
        n = jnp.tanh(xi[:, 2 * H:] + r * hh[:, 2 * H:])
        h_new = (1.0 - z) * n + z * h

        m = mask_all[:, i:i + 1]                                    # (B, 1)
        h = m * h_new + (1.0 - m) * h

        # One combined matmul feeds this step's logits AND the next step's
        # gate/attention projections.
        hp = jnp.dot(h, w_comb, preferred_element_type=jnp.float32)         # (B, 256)

        logit = hp[:, V_PAD:] + bo                                           # (B, V_PAD)
        lmax = jnp.max(logit, axis=-1, keepdims=True)
        lse = jnp.log(jnp.sum(jnp.exp(logit - lmax), axis=-1,
                              keepdims=True)) + lmax                         # (B, 1)
        lbl = lbl_all[:, i:i + 1]                                            # (B, 1)
        onehot = (col_ids == lbl).astype(jnp.float32)   # padded cols never match
        valid = (lbl != IGNORE_INDEX).astype(jnp.float32)
        acc = acc + valid * onehot * (lse - logit)

    # Lane-dense (8,128) output slab; the scalar reduce happens in the wrapper.
    acc_ref[...] = acc


# --------------------------- parameter packing --------------------------------
def pack_params(params):
    """One-time, parameter-only packing (kept out of the per-call hot path)."""
    hp = jax.lax.Precision.HIGHEST
    Wi = params["W_i"]
    Wie, Wic = Wi[:E], Wi[E:]
    emb_proj = jnp.dot(params["embedding"], Wie, precision=hp)        # (V, 3H)
    mvic = jnp.dot(params["M_v"], Wic, precision=hp)                  # (S, 3H)
    b_full = params["b_i"] + params["b_h"]                            # (1, 3H)
    w_comb = jnp.concatenate(
        [params["W_h"],                                               # (H, 3H)
         params["M_k"].T,                                             # (H, S)
         jnp.zeros((H, V_PAD - 3 * H - S), jnp.float32),              # pad -> 128
         params["W_out"],                                             # (H, V)
         jnp.zeros((H, V_PAD - V), jnp.float32)], axis=1)             # (H, 256)
    bo_pad = jnp.concatenate(
        [params["b_out"], jnp.full((1, V_PAD - V), -1e30, jnp.float32)], axis=1)
    return {"emb_proj": emb_proj, "mvic": mvic, "b_full": b_full,
            "w_comb": w_comb, "bo_pad": bo_pad}


# ------------------------------- wrapper ---------------------------------------
_VMEM_SPEC = pl.BlockSpec(memory_space=pltpu.MemorySpace.VMEM)


@jax.jit
def gru_decoder_loss(packed, hidden, output_seqs, output_mask):
    # Per-call glue is tiny and integer-only: time-major step tokens, labels, mask.
    tok_steps = jnp.transpose(output_seqs[:, :NSTEP].astype(jnp.int32)
                              ).reshape(NSTEP * B, 1)                 # (56, 1)
    mask_bt = output_mask[:, :NSTEP].astype(jnp.float32)              # (B, T-1)
    lbl_bt = output_seqs[:, 1:T].astype(jnp.int32)                    # (B, T-1)

    acc = pl.pallas_call(
        gru_decoder_kernel,
        out_shape=jax.ShapeDtypeStruct((B, V_PAD), jnp.float32),
        in_specs=[_VMEM_SPEC] * 9,
        out_specs=_VMEM_SPEC,
    )(tok_steps, mask_bt, lbl_bt, hidden,
      packed["w_comb"], packed["mvic"], packed["emb_proj"],
      packed["b_full"], packed["bo_pad"])

    return jnp.sum(acc) / jnp.sum(output_mask)


# --------------------------- pure-JAX reference --------------------------------
def reference_loss(params, hidden, output_seqs, output_mask):
    emb_table = params["embedding"]
    Wi, Wh = params["W_i"], params["W_h"]
    bi, bh = params["b_i"], params["b_h"]
    Mk, Mv = params["M_k"], params["M_v"]
    Wo, bo = params["W_out"], params["b_out"]
    embedded = emb_table[output_seqs]
    h = hidden
    loss = 0.0
    split = 2 * H
    for i in range(T - 1):
        emb_i = embedded[:, i, :]
        mask_i = output_mask[:, i]
        alpha_t = jnp.exp(h @ Mk.T)
        alpha = alpha_t / jnp.sum(alpha_t, axis=1, keepdims=True)
        context = alpha @ Mv
        x = jnp.concatenate([emb_i, context], axis=1)
        gates = jax.nn.sigmoid(x @ Wi[:, :split] + h @ Wh[:, :split]
                               + bi[:, :split] + bh[:, :split])
        r = gates[:, :H]
        z = gates[:, H:]
        n = jnp.tanh(x @ Wi[:, split:] + bi[:, split:]
                     + r * (h @ Wh[:, split:]) + bh[:, split:])
        h_new = (1.0 - z) * n + z * h
        m = mask_i[:, None]
        h = m * h_new + (1.0 - m) * h
        logit = h @ Wo + bo
        tgt = output_seqs[:, i + 1]
        logp = jax.nn.log_softmax(logit, axis=-1)
        picked = jnp.take_along_axis(logp, tgt[:, None], axis=1)[:, 0]
        valid = (tgt != IGNORE_INDEX).astype(jnp.float32)
        loss = loss + jnp.sum(-picked * valid)
    return loss / jnp.sum(output_mask)


# ------------------------------ param init ------------------------------------
def init_params(key):
    ks = jax.random.split(key, 9)
    sc = 0.08
    return {
        "embedding": jax.random.normal(ks[0], (V, E), jnp.float32),
        "W_i": sc * jax.random.normal(ks[1], (E + C, 3 * H), jnp.float32),
        "W_h": sc * jax.random.normal(ks[2], (H, 3 * H), jnp.float32),
        "b_i": sc * jax.random.normal(ks[3], (1, 3 * H), jnp.float32),
        "b_h": sc * jax.random.normal(ks[4], (1, 3 * H), jnp.float32),
        "M_k": sc * jax.random.normal(ks[5], (S, H), jnp.float32),
        "M_v": sc * jax.random.normal(ks[6], (S, C), jnp.float32),
        # nn.Linear(H, V): store weight transposed as (H, V) plus bias (1, V).
        "W_out": sc * jax.random.normal(ks[7], (H, V), jnp.float32),
        "b_out": sc * jax.random.normal(ks[8], (1, V), jnp.float32),
    }


if __name__ == "__main__":
    key = jax.random.PRNGKey(0)
    kp, kh, kseq, kmask = jax.random.split(key, 4)

    params = init_params(kp)
    packed = pack_params(params)          # one-time packing, off the hot path
    hidden = jax.random.normal(kh, (B, H), jnp.float32)
    output_seqs = jax.random.randint(kseq, (B, T), 0, V, dtype=jnp.int32)
    output_mask = (jax.random.uniform(kmask, (B, T)) < 0.85).astype(jnp.float32)
    # make sure the mask sum is non-zero / well conditioned
    output_mask = output_mask.at[:, 0].set(1.0)

    loss = gru_decoder_loss(packed, hidden, output_seqs, output_mask)
    loss = jax.block_until_ready(loss)

    ref = reference_loss(params, hidden, output_seqs, output_mask)
    np.testing.assert_allclose(np.asarray(loss), np.asarray(ref),
                               rtol=1e-4, atol=1e-4)
    print("KERNEL_OK")
</pallas_src>

<mosaic_0001>
module attributes {stable_mosaic.version = 11 : i64} {
  func.func @gru_decoder_kernel(%arg0: memref<56x1xi32, #tpu.memory_space<vmem>>, %arg1: memref<8x7xf32, #tpu.memory_space<vmem>>, %arg2: memref<8x7xi32, #tpu.memory_space<vmem>>, %arg3: memref<8x32xf32, #tpu.memory_space<vmem>>, %arg4: memref<32x256xf32, #tpu.memory_space<vmem>>, %arg5: memref<8x96xf32, #tpu.memory_space<vmem>>, %arg6: memref<64x96xf32, #tpu.memory_space<vmem>>, %arg7: memref<1x96xf32, #tpu.memory_space<vmem>>, %arg8: memref<1x128xf32, #tpu.memory_space<vmem>>, %arg9: memref<8x128xf32, #tpu.memory_space<vmem>>) attributes {dimension_semantics = [], scalar_prefetch = 0 : i64, scratch_operands = 0 : i64, tpu.core_type = #tpu.core_type<tc>} {
    %c0 = arith.constant 0 : index
    %c0_0 = arith.constant 0 : index
    %0 = vector.load %arg4[%c0, %c0_0] : memref<32x256xf32, #tpu.memory_space<vmem>>, vector<32x256xf32>
    %c0_1 = arith.constant 0 : index
    %c0_2 = arith.constant 0 : index
    %1 = vector.load %arg5[%c0_1, %c0_2] : memref<8x96xf32, #tpu.memory_space<vmem>>, vector<8x96xf32>
    %c0_3 = arith.constant 0 : index
    %c0_4 = arith.constant 0 : index
    %2 = vector.load %arg8[%c0_3, %c0_4] : memref<1x128xf32, #tpu.memory_space<vmem>>, vector<1x128xf32>
    %c0_5 = arith.constant 0 : index
    %c0_6 = arith.constant 0 : index
    %3 = vector.load %arg1[%c0_5, %c0_6] : memref<8x7xf32, #tpu.memory_space<vmem>>, vector<8x7xf32>
    %c0_7 = arith.constant 0 : index
    %c0_8 = arith.constant 0 : index
    %4 = vector.load %arg2[%c0_7, %c0_8] : memref<8x7xi32, #tpu.memory_space<vmem>>, vector<8x7xi32>
    %5 = tpu.iota {dimensions = array<i32: 1>} : vector<8x128xi32>
    %6 = tpu.iota {dimensions = array<i32: 1>} : vector<56x64xi32>
    %c0_9 = arith.constant 0 : index
    %c0_10 = arith.constant 0 : index
    %7 = vector.load %arg0[%c0_9, %c0_10] : memref<56x1xi32, #tpu.memory_space<vmem>>, vector<56x1xi32>
    %8 = vector.broadcast %7 : vector<56x1xi32> to vector<56x64xi32>
    %9 = arith.cmpi eq, %6, %8 : vector<56x64xi32>
    %10 = arith.extui %9 : vector<56x64xi1> to vector<56x64xi32>
    %11 = arith.sitofp %10 : vector<56x64xi32> to vector<56x64xf32>
    %c0_11 = arith.constant 0 : index
    %c0_12 = arith.constant 0 : index
    %12 = vector.load %arg6[%c0_11, %c0_12] : memref<64x96xf32, #tpu.memory_space<vmem>>, vector<64x96xf32>
    %cst = arith.constant dense<0.000000e+00> : vector<56x96xf32>
    %13 = tpu.matmul %11, %12, %cst {dimension_numbers = #tpu.dot_dimension_numbers<[1], [0], [0], [1], [0, 0, 1, 1], [], []>, precision = #tpu.contract_precision<fp32>} : vector<56x64xf32>, vector<64x96xf32>, vector<56x96xf32> -> vector<56x96xf32>
    %c0_13 = arith.constant 0 : index
    %c0_14 = arith.constant 0 : index
    %14 = vector.load %arg7[%c0_13, %c0_14] : memref<1x96xf32, #tpu.memory_space<vmem>>, vector<1x96xf32>
    %15 = vector.broadcast %14 : vector<1x96xf32> to vector<56x96xf32>
    %16 = arith.addf %13, %15 : vector<56x96xf32>
    %c0_15 = arith.constant 0 : index
    %c0_16 = arith.constant 0 : index
    %17 = vector.load %arg3[%c0_15, %c0_16] : memref<8x32xf32, #tpu.memory_space<vmem>>, vector<8x32xf32>
    %cst_17 = arith.constant dense<0.000000e+00> : vector<8x256xf32>
    %18 = tpu.matmul %17, %0, %cst_17 {dimension_numbers = #tpu.dot_dimension_numbers<[1], [0], [0], [1], [0, 0, 1, 1], [], []>, precision = #tpu.contract_precision<fp32>} : vector<8x32xf32>, vector<32x256xf32>, vector<8x256xf32> -> vector<8x256xf32>
    %cst_18 = arith.constant 0.000000e+00 : f32
    %19 = vector.broadcast %cst_18 : f32 to vector<8x128xf32>
    %20 = vector.extract_strided_slice %18 {offsets = [0, 0], sizes = [8, 96], strides = [1, 1]} : vector<8x256xf32> to vector<8x96xf32>
    %21 = vector.extract_strided_slice %18 {offsets = [0, 96], sizes = [8, 8], strides = [1, 1]} : vector<8x256xf32> to vector<8x8xf32>
    %22 = math.exp %21 : vector<8x8xf32>
    %cst_19 = arith.constant dense<0.000000e+00> : vector<8x96xf32>
    %23 = tpu.matmul %22, %1, %cst_19 {dimension_numbers = #tpu.dot_dimension_numbers<[1], [0], [0], [1], [0, 0, 1, 1], [], []>, precision = #tpu.contract_precision<fp32>} : vector<8x8xf32>, vector<8x96xf32>, vector<8x96xf32> -> vector<8x96xf32>
    %cst_20 = arith.constant dense<0.000000e+00> : vector<8xf32>
    %24 = vector.multi_reduction <add>, %22, %cst_20 [1] : vector<8x8xf32> to vector<8xf32>
    %25 = vector.shape_cast %24 : vector<8xf32> to vector<8x1xf32>
    %cst_21 = arith.constant 1.000000e+00 : f32
    %26 = vector.broadcast %cst_21 : f32 to vector<8x1xf32>
    %27 = arith.divf %26, %25 : vector<8x1xf32>
    %28 = vector.extract_strided_slice %16 {offsets = [0, 0], sizes = [8, 96], strides = [1, 1]} : vector<56x96xf32> to vector<8x96xf32>
    %29 = vector.broadcast %27 : vector<8x1xf32> to vector<8x96xf32>
    %30 = arith.mulf %23, %29 : vector<8x96xf32>
    %31 = arith.addf %28, %30 : vector<8x96xf32>
    %32 = vector.extract_strided_slice %31 {offsets = [0, 0], sizes = [8, 64], strides = [1, 1]} : vector<8x96xf32> to vector<8x64xf32>
    %33 = vector.extract_strided_slice %20 {offsets = [0, 0], sizes = [8, 64], strides = [1, 1]} : vector<8x96xf32> to vector<8x64xf32>
    %34 = arith.addf %32, %33 : vector<8x64xf32>
    %35 = arith.negf %34 : vector<8x64xf32>
    %36 = math.exp %35 : vector<8x64xf32>
    %cst_22 = arith.constant 1.000000e+00 : f32
    %37 = vector.broadcast %cst_22 : f32 to vector<8x64xf32>
    %38 = arith.addf %37, %36 : vector<8x64xf32>
    %39 = arith.divf %37, %38 : vector<8x64xf32>
    %40 = vector.extract_strided_slice %39 {offsets = [0, 0], sizes = [8, 32], strides = [1, 1]} : vector<8x64xf32> to vector<8x32xf32>
    %41 = vector.extract_strided_slice %39 {offsets = [0, 32], sizes = [8, 32], strides = [1, 1]} : vector<8x64xf32> to vector<8x32xf32>
    %42 = vector.extract_strided_slice %31 {offsets = [0, 64], sizes = [8, 32], strides = [1, 1]} : vector<8x96xf32> to vector<8x32xf32>
    %43 = vector.extract_strided_slice %20 {offsets = [0, 64], sizes = [8, 32], strides = [1, 1]} : vector<8x96xf32> to vector<8x32xf32>
    %44 = arith.mulf %40, %43 : vector<8x32xf32>
    %45 = arith.addf %42, %44 : vector<8x32xf32>
    %46 = math.tanh %45 : vector<8x32xf32>
    %cst_23 = arith.constant 1.000000e+00 : f32
    %47 = vector.broadcast %cst_23 : f32 to vector<8x32xf32>
    %48 = arith.subf %47, %41 : vector<8x32xf32>
    %49 = arith.mulf %48, %46 : vector<8x32xf32>
    %50 = arith.mulf %41, %17 : vector<8x32xf32>
    %51 = arith.addf %49, %50 : vector<8x32xf32>
    %52 = vector.extract_strided_slice %3 {offsets = [0, 0], sizes = [8, 1], strides = [1, 1]} : vector<8x7xf32> to vector<8x1xf32>
    %53 = vector.broadcast %52 : vector<8x1xf32> to vector<8x32xf32>
    %54 = arith.mulf %53, %51 : vector<8x32xf32>
    %cst_24 = arith.constant 1.000000e+00 : f32
    %55 = vector.broadcast %cst_24 : f32 to vector<8x1xf32>
    %56 = arith.subf %55, %52 : vector<8x1xf32>
    %57 = vector.broadcast %56 : vector<8x1xf32> to vector<8x32xf32>
    %58 = arith.mulf %57, %17 : vector<8x32xf32>
    %59 = arith.addf %54, %58 : vector<8x32xf32>
    %cst_25 = arith.constant dense<0.000000e+00> : vector<8x256xf32>
    %60 = tpu.matmul %59, %0, %cst_25 {dimension_numbers = #tpu.dot_dimension_numbers<[1], [0], [0], [1], [0, 0, 1, 1], [], []>, precision = #tpu.contract_precision<fp32>} : vector<8x32xf32>, vector<32x256xf32>, vector<8x256xf32> -> vector<8x256xf32>
    %61 = vector.extract_strided_slice %60 {offsets = [0, 128], sizes = [8, 128], strides = [1, 1]} : vector<8x256xf32> to vector<8x128xf32>
    %62 = vector.broadcast %2 : vector<1x128xf32> to vector<8x128xf32>
    %63 = arith.addf %61, %62 : vector<8x128xf32>
    %cst_26 = arith.constant dense<0xFF800000> : vector<8xf32>
    %64 = vector.multi_reduction <maximumf>, %63, %cst_26 [1] : vector<8x128xf32> to vector<8xf32>
    %65 = vector.shape_cast %64 : vector<8xf32> to vector<8x1xf32>
    %66 = vector.broadcast %65 : vector<8x1xf32> to vector<8x128xf32>
    %67 = arith.subf %63, %66 : vector<8x128xf32>
    %68 = math.exp %67 : vector<8x128xf32>
    %cst_27 = arith.constant dense<0.000000e+00> : vector<8xf32>
    %69 = vector.multi_reduction <add>, %68, %cst_27 [1] : vector<8x128xf32> to vector<8xf32>
    %70 = vector.shape_cast %69 : vector<8xf32> to vector<8x1xf32>
    %71 = math.log %70 : vector<8x1xf32>
    %72 = arith.addf %71, %65 : vector<8x1xf32>
    %73 = vector.extract_strided_slice %4 {offsets = [0, 0], sizes = [8, 1], strides = [1, 1]} : vector<8x7xi32> to vector<8x1xi32>
    %74 = vector.broadcast %73 : vector<8x1xi32> to vector<8x128xi32>
    %75 = arith.cmpi eq, %5, %74 : vector<8x128xi32>
    %76 = arith.extui %75 : vector<8x128xi1> to vector<8x128xi32>
    %77 = arith.sitofp %76 : vector<8x128xi32> to vector<8x128xf32>
    %c2_i32 = arith.constant 2 : i32
    %78 = vector.broadcast %c2_i32 : i32 to vector<8x1xi32>
    %79 = arith.cmpi ne, %73, %78 : vector<8x1xi32>
    %80 = arith.extui %79 : vector<8x1xi1> to vector<8x1xi32>
    %81 = arith.sitofp %80 : vector<8x1xi32> to vector<8x1xf32>
    %82 = vector.broadcast %81 : vector<8x1xf32> to vector<8x128xf32>
    %83 = arith.mulf %82, %77 : vector<8x128xf32>
    %84 = vector.broadcast %72 : vector<8x1xf32> to vector<8x128xf32>
    %85 = arith.subf %84, %63 : vector<8x128xf32>
    %86 = arith.mulf %83, %85 : vector<8x128xf32>
    %87 = arith.addf %19, %86 : vector<8x128xf32>
    %88 = vector.extract_strided_slice %60 {offsets = [0, 0], sizes = [8, 96], strides = [1, 1]} : vector<8x256xf32> to vector<8x96xf32>
    %89 = vector.extract_strided_slice %60 {offsets = [0, 96], sizes = [8, 8], strides = [1, 1]} : vector<8x256xf32> to vector<8x8xf32>
    %90 = math.exp %89 : vector<8x8xf32>
    %cst_28 = arith.constant dense<0.000000e+00> : vector<8x96xf32>
    %91 = tpu.matmul %90, %1, %cst_28 {dimension_numbers = #tpu.dot_dimension_numbers<[1], [0], [0], [1], [0, 0, 1, 1], [], []>, precision = #tpu.contract_precision<fp32>} : vector<8x8xf32>, vector<8x96xf32>, vector<8x96xf32> -> vector<8x96xf32>
    %cst_29 = arith.constant dense<0.000000e+00> : vector<8xf32>
    %92 = vector.multi_reduction <add>, %90, %cst_29 [1] : vector<8x8xf32> to vector<8xf32>
    %93 = vector.shape_cast %92 : vector<8xf32> to vector<8x1xf32>
    %cst_30 = arith.constant 1.000000e+00 : f32
    %94 = vector.broadcast %cst_30 : f32 to vector<8x1xf32>
    %95 = arith.divf %94, %93 : vector<8x1xf32>
    %96 = vector.extract_strided_slice %16 {offsets = [8, 0], sizes = [8, 96], strides = [1, 1]} : vector<56x96xf32> to vector<8x96xf32>
    %97 = vector.broadcast %95 : vector<8x1xf32> to vector<8x96xf32>
    %98 = arith.mulf %91, %97 : vector<8x96xf32>
    %99 = arith.addf %96, %98 : vector<8x96xf32>
    %100 = vector.extract_strided_slice %99 {offsets = [0, 0], sizes = [8, 64], strides = [1, 1]} : vector<8x96xf32> to vector<8x64xf32>
    %101 = vector.extract_strided_slice %88 {offsets = [0, 0], sizes = [8, 64], strides = [1, 1]} : vector<8x96xf32> to vector<8x64xf32>
    %102 = arith.addf %100, %101 : vector<8x64xf32>
    %103 = arith.negf %102 : vector<8x64xf32>
    %104 = math.exp %103 : vector<8x64xf32>
    %cst_31 = arith.constant 1.000000e+00 : f32
    %105 = vector.broadcast %cst_31 : f32 to vector<8x64xf32>
    %106 = arith.addf %105, %104 : vector<8x64xf32>
    %107 = arith.divf %105, %106 : vector<8x64xf32>
    %108 = vector.extract_strided_slice %107 {offsets = [0, 0], sizes = [8, 32], strides = [1, 1]} : vector<8x64xf32> to vector<8x32xf32>
    %109 = vector.extract_strided_slice %107 {offsets = [0, 32], sizes = [8, 32], strides = [1, 1]} : vector<8x64xf32> to vector<8x32xf32>
    %110 = vector.extract_strided_slice %99 {offsets = [0, 64], sizes = [8, 32], strides = [1, 1]} : vector<8x96xf32> to vector<8x32xf32>
    %111 = vector.extract_strided_slice %88 {offsets = [0, 64], sizes = [8, 32], strides = [1, 1]} : vector<8x96xf32> to vector<8x32xf32>
    %112 = arith.mulf %108, %111 : vector<8x32xf32>
    %113 = arith.addf %110, %112 : vector<8x32xf32>
    %114 = math.tanh %113 : vector<8x32xf32>
    %cst_32 = arith.constant 1.000000e+00 : f32
    %115 = vector.broadcast %cst_32 : f32 to vector<8x32xf32>
    %116 = arith.subf %115, %109 : vector<8x32xf32>
    %117 = arith.mulf %116, %114 : vector<8x32xf32>
    %118 = arith.mulf %109, %59 : vector<8x32xf32>
    %119 = arith.addf %117, %118 : vector<8x32xf32>
    %120 = vector.extract_strided_slice %3 {offsets = [0, 1], sizes = [8, 1], strides = [1, 1]} : vector<8x7xf32> to vector<8x1xf32>
    %121 = vector.broadcast %120 : vector<8x1xf32> to vector<8x32xf32>
    %122 = arith.mulf %121, %119 : vector<8x32xf32>
    %cst_33 = arith.constant 1.000000e+00 : f32
    %123 = vector.broadcast %cst_33 : f32 to vector<8x1xf32>
    %124 = arith.subf %123, %120 : vector<8x1xf32>
    %125 = vector.broadcast %124 : vector<8x1xf32> to vector<8x32xf32>
    %126 = arith.mulf %125, %59 : vector<8x32xf32>
    %127 = arith.addf %122, %126 : vector<8x32xf32>
    %cst_34 = arith.constant dense<0.000000e+00> : vector<8x256xf32>
    %128 = tpu.matmul %127, %0, %cst_34 {dimension_numbers = #tpu.dot_dimension_numbers<[1], [0], [0], [1], [0, 0, 1, 1], [], []>, precision = #tpu.contract_precision<fp32>} : vector<8x32xf32>, vector<32x256xf32>, vector<8x256xf32> -> vector<8x256xf32>
    %129 = vector.extract_strided_slice %128 {offsets = [0, 128], sizes = [8, 128], strides = [1, 1]} : vector<8x256xf32> to vector<8x128xf32>
    %130 = vector.broadcast %2 : vector<1x128xf32> to vector<8x128xf32>
    %131 = arith.addf %129, %130 : vector<8x128xf32>
    %cst_35 = arith.constant dense<0xFF800000> : vector<8xf32>
    %132 = vector.multi_reduction <maximumf>, %131, %cst_35 [1] : vector<8x128xf32> to vector<8xf32>
    %133 = vector.shape_cast %132 : vector<8xf32> to vector<8x1xf32>
    %134 = vector.broadcast %133 : vector<8x1xf32> to vector<8x128xf32>
    %135 = arith.subf %131, %134 : vector<8x128xf32>
    %136 = math.exp %135 : vector<8x128xf32>
    %cst_36 = arith.constant dense<0.000000e+00> : vector<8xf32>
    %137 = vector.multi_reduction <add>, %136, %cst_36 [1] : vector<8x128xf32> to vector<8xf32>
    %138 = vector.shape_cast %137 : vector<8xf32> to vector<8x1xf32>
    %139 = math.log %138 : vector<8x1xf32>
    %140 = arith.addf %139, %133 : vector<8x1xf32>
    %141 = vector.extract_strided_slice %4 {offsets = [0, 1], sizes = [8, 1], strides = [1, 1]} : vector<8x7xi32> to vector<8x1xi32>
    %142 = vector.broadcast %141 : vector<8x1xi32> to vector<8x128xi32>
    %143 = arith.cmpi eq, %5, %142 : vector<8x128xi32>
    %144 = arith.extui %143 : vector<8x128xi1> to vector<8x128xi32>
    %145 = arith.sitofp %144 : vector<8x128xi32> to vector<8x128xf32>
    %c2_i32_37 = arith.constant 2 : i32
    %146 = vector.broadcast %c2_i32_37 : i32 to vector<8x1xi32>
    %147 = arith.cmpi ne, %141, %146 : vector<8x1xi32>
    %148 = arith.extui %147 : vector<8x1xi1> to vector<8x1xi32>
    %149 = arith.sitofp %148 : vector<8x1xi32> to vector<8x1xf32>
    %150 = vector.broadcast %149 : vector<8x1xf32> to vector<8x128xf32>
    %151 = arith.mulf %150, %145 : vector<8x128xf32>
    %152 = vector.broadcast %140 : vector<8x1xf32> to vector<8x128xf32>
    %153 = arith.subf %152, %131 : vector<8x128xf32>
    %154 = arith.mulf %151, %153 : vector<8x128xf32>
    %155 = arith.addf %87, %154 : vector<8x128xf32>
    %156 = vector.extract_strided_slice %128 {offsets = [0, 0], sizes = [8, 96], strides = [1, 1]} : vector<8x256xf32> to vector<8x96xf32>
    %157 = vector.extract_strided_slice %128 {offsets = [0, 96], sizes = [8, 8], strides = [1, 1]} : vector<8x256xf32> to vector<8x8xf32>
    %158 = math.exp %157 : vector<8x8xf32>
    %cst_38 = arith.constant dense<0.000000e+00> : vector<8x96xf32>
    %159 = tpu.matmul %158, %1, %cst_38 {dimension_numbers = #tpu.dot_dimension_numbers<[1], [0], [0], [1], [0, 0, 1, 1], [], []>, precision = #tpu.contract_precision<fp32>} : vector<8x8xf32>, vector<8x96xf32>, vector<8x96xf32> -> vector<8x96xf32>
    %cst_39 = arith.constant dense<0.000000e+00> : vector<8xf32>
    %160 = vector.multi_reduction <add>, %158, %cst_39 [1] : vector<8x8xf32> to vector<8xf32>
    %161 = vector.shape_cast %160 : vector<8xf32> to vector<8x1xf32>
    %cst_40 = arith.constant 1.000000e+00 : f32
    %162 = vector.broadcast %cst_40 : f32 to vector<8x1xf32>
    %163 = arith.divf %162, %161 : vector<8x1xf32>
    %164 = vector.extract_strided_slice %16 {offsets = [16, 0], sizes = [8, 96], strides = [1, 1]} : vector<56x96xf32> to vector<8x96xf32>
    %165 = vector.broadcast %163 : vector<8x1xf32> to vector<8x96xf32>
    %166 = arith.mulf %159, %165 : vector<8x96xf32>
    %167 = arith.addf %164, %166 : vector<8x96xf32>
    %168 = vector.extract_strided_slice %167 {offsets = [0, 0], sizes = [8, 64], strides = [1, 1]} : vector<8x96xf32> to vector<8x64xf32>
    %169 = vector.extract_strided_slice %156 {offsets = [0, 0], sizes = [8, 64], strides = [1, 1]} : vector<8x96xf32> to vector<8x64xf32>
    %170 = arith.addf %168, %169 : vector<8x64xf32>
    %171 = arith.negf %170 : vector<8x64xf32>
    %172 = math.exp %171 : vector<8x64xf32>
    %cst_41 = arith.constant 1.000000e+00 : f32
    %173 = vector.broadcast %cst_41 : f32 to vector<8x64xf32>
    %174 = arith.addf %173, %172 : vector<8x64xf32>
    %175 = arith.divf %173, %174 : vector<8x64xf32>
    %176 = vector.extract_strided_slice %175 {offsets = [0, 0], sizes = [8, 32], strides = [1, 1]} : vector<8x64xf32> to vector<8x32xf32>
    %177 = vector.extract_strided_slice %175 {offsets = [0, 32], sizes = [8, 32], strides = [1, 1]} : vector<8x64xf32> to vector<8x32xf32>
    %178 = vector.extract_strided_slice %167 {offsets = [0, 64], sizes = [8, 32], strides = [1, 1]} : vector<8x96xf32> to vector<8x32xf32>
    %179 = vector.extract_strided_slice %156 {offsets = [0, 64], sizes = [8, 32], strides = [1, 1]} : vector<8x96xf32> to vector<8x32xf32>
    %180 = arith.mulf %176, %179 : vector<8x32xf32>
    %181 = arith.addf %178, %180 : vector<8x32xf32>
    %182 = math.tanh %181 : vector<8x32xf32>
    %cst_42 = arith.constant 1.000000e+00 : f32
    %183 = vector.broadcast %cst_42 : f32 to vector<8x32xf32>
    %184 = arith.subf %183, %177 : vector<8x32xf32>
    %185 = arith.mulf %184, %182 : vector<8x32xf32>
    %186 = arith.mulf %177, %127 : vector<8x32xf32>
    %187 = arith.addf %185, %186 : vector<8x32xf32>
    %188 = vector.extract_strided_slice %3 {offsets = [0, 2], sizes = [8, 1], strides = [1, 1]} : vector<8x7xf32> to vector<8x1xf32>
    %189 = vector.broadcast %188 : vector<8x1xf32> to vector<8x32xf32>
    %190 = arith.mulf %189, %187 : vector<8x32xf32>
    %cst_43 = arith.constant 1.000000e+00 : f32
    %191 = vector.broadcast %cst_43 : f32 to vector<8x1xf32>
    %192 = arith.subf %191, %188 : vector<8x1xf32>
    %193 = vector.broadcast %192 : vector<8x1xf32> to vector<8x32xf32>
    %194 = arith.mulf %193, %127 : vector<8x32xf32>
    %195 = arith.addf %190, %194 : vector<8x32xf32>
    %cst_44 = arith.constant dense<0.000000e+00> : vector<8x256xf32>
    %196 = tpu.matmul %195, %0, %cst_44 {dimension_numbers = #tpu.dot_dimension_numbers<[1], [0], [0], [1], [0, 0, 1, 1], [], []>, precision = #tpu.contract_precision<fp32>} : vector<8x32xf32>, vector<32x256xf32>, vector<8x256xf32> -> vector<8x256xf32>
    %197 = vector.extract_strided_slice %196 {offsets = [0, 128], sizes = [8, 128], strides = [1, 1]} : vector<8x256xf32> to vector<8x128xf32>
    %198 = vector.broadcast %2 : vector<1x128xf32> to vector<8x128xf32>
    %199 = arith.addf %197, %198 : vector<8x128xf32>
    %cst_45 = arith.constant dense<0xFF800000> : vector<8xf32>
    %200 = vector.multi_reduction <maximumf>, %199, %cst_45 [1] : vector<8x128xf32> to vector<8xf32>
    %201 = vector.shape_cast %200 : vector<8xf32> to vector<8x1xf32>
    %202 = vector.broadcast %201 : vector<8x1xf32> to vector<8x128xf32>
    %203 = arith.subf %199, %202 : vector<8x128xf32>
    %204 = math.exp %203 : vector<8x128xf32>
    %cst_46 = arith.constant dense<0.000000e+00> : vector<8xf32>
    %205 = vector.multi_reduction <add>, %204, %cst_46 [1] : vector<8x128xf32> to vector<8xf32>
    %206 = vector.shape_cast %205 : vector<8xf32> to vector<8x1xf32>
    %207 = math.log %206 : vector<8x1xf32>
    %208 = arith.addf %207, %201 : vector<8x1xf32>
    %209 = vector.extract_strided_slice %4 {offsets = [0, 2], sizes = [8, 1], strides = [1, 1]} : vector<8x7xi32> to vector<8x1xi32>
    %210 = vector.broadcast %209 : vector<8x1xi32> to vector<8x128xi32>
    %211 = arith.cmpi eq, %5, %210 : vector<8x128xi32>
    %212 = arith.extui %211 : vector<8x128xi1> to vector<8x128xi32>
    %213 = arith.sitofp %212 : vector<8x128xi32> to vector<8x128xf32>
    %c2_i32_47 = arith.constant 2 : i32
    %214 = vector.broadcast %c2_i32_47 : i32 to vector<8x1xi32>
    %215 = arith.cmpi ne, %209, %214 : vector<8x1xi32>
    %216 = arith.extui %215 : vector<8x1xi1> to vector<8x1xi32>
    %217 = arith.sitofp %216 : vector<8x1xi32> to vector<8x1xf32>
    %218 = vector.broadcast %217 : vector<8x1xf32> to vector<8x128xf32>
    %219 = arith.mulf %218, %213 : vector<8x128xf32>
    %220 = vector.broadcast %208 : vector<8x1xf32> to vector<8x128xf32>
    %221 = arith.subf %220, %199 : vector<8x128xf32>
    %222 = arith.mulf %219, %221 : vector<8x128xf32>
    %223 = arith.addf %155, %222 : vector<8x128xf32>
    %224 = vector.extract_strided_slice %196 {offsets = [0, 0], sizes = [8, 96], strides = [1, 1]} : vector<8x256xf32> to vector<8x96xf32>
    %225 = vector.extract_strided_slice %196 {offsets = [0, 96], sizes = [8, 8], strides = [1, 1]} : vector<8x256xf32> to vector<8x8xf32>
    %226 = math.exp %225 : vector<8x8xf32>
    %cst_48 = arith.constant dense<0.000000e+00> : vector<8x96xf32>
    %227 = tpu.matmul %226, %1, %cst_48 {dimension_numbers = #tpu.dot_dimension_numbers<[1], [0], [0], [1], [0, 0, 1, 1], [], []>, precision = #tpu.contract_precision<fp32>} : vector<8x8xf32>, vector<8x96xf32>, vector<8x96xf32> -> vector<8x96xf32>
    %cst_49 = arith.constant dense<0.000000e+00> : vector<8xf32>
    %228 = vector.multi_reduction <add>, %226, %cst_49 [1] : vector<8x8xf32> to vector<8xf32>
    %229 = vector.shape_cast %228 : vector<8xf32> to vector<8x1xf32>
    %cst_50 = arith.constant 1.000000e+00 : f32
    %230 = vector.broadcast %cst_50 : f32 to vector<8x1xf32>
    %231 = arith.divf %230, %229 : vector<8x1xf32>
    %232 = vector.extract_strided_slice %16 {offsets = [24, 0], sizes = [8, 96], strides = [1, 1]} : vector<56x96xf32> to vector<8x96xf32>
    %233 = vector.broadcast %231 : vector<8x1xf32> to vector<8x96xf32>
    %234 = arith.mulf %227, %233 : vector<8x96xf32>
    %235 = arith.addf %232, %234 : vector<8x96xf32>
    %236 = vector.extract_strided_slice %235 {offsets = [0, 0], sizes = [8, 64], strides = [1, 1]} : vector<8x96xf32> to vector<8x64xf32>
    %237 = vector.extract_strided_slice %224 {offsets = [0, 0], sizes = [8, 64], strides = [1, 1]} : vector<8x96xf32> to vector<8x64xf32>
    %238 = arith.addf %236, %237 : vector<8x64xf32>
    %239 = arith.negf %238 : vector<8x64xf32>
    %240 = math.exp %239 : vector<8x64xf32>
    %cst_51 = arith.constant 1.000000e+00 : f32
    %241 = vector.broadcast %cst_51 : f32 to vector<8x64xf32>
    %242 = arith.addf %241, %240 : vector<8x64xf32>
    %243 = arith.divf %241, %242 : vector<8x64xf32>
    %244 = vector.extract_strided_slice %243 {offsets = [0, 0], sizes = [8, 32], strides = [1, 1]} : vector<8x64xf32> to vector<8x32xf32>
    %245 = vector.extract_strided_slice %243 {offsets = [0, 32], sizes = [8, 32], strides = [1, 1]} : vector<8x64xf32> to vector<8x32xf32>
    %246 = vector.extract_strided_slice %235 {offsets = [0, 64], sizes = [8, 32], strides = [1, 1]} : vector<8x96xf32> to vector<8x32xf32>
    %247 = vector.extract_strided_slice %224 {offsets = [0, 64], sizes = [8, 32], strides = [1, 1]} : vector<8x96xf32> to vector<8x32xf32>
    %248 = arith.mulf %244, %247 : vector<8x32xf32>
    %249 = arith.addf %246, %248 : vector<8x32xf32>
    %250 = math.tanh %249 : vector<8x32xf32>
    %cst_52 = arith.constant 1.000000e+00 : f32
    %251 = vector.broadcast %cst_52 : f32 to vector<8x32xf32>
    %252 = arith.subf %251, %245 : vector<8x32xf32>
    %253 = arith.mulf %252, %250 : vector<8x32xf32>
    %254 = arith.mulf %245, %195 : vector<8x32xf32>
    %255 = arith.addf %253, %254 : vector<8x32xf32>
    %256 = vector.extract_strided_slice %3 {offsets = [0, 3], sizes = [8, 1], strides = [1, 1]} : vector<8x7xf32> to vector<8x1xf32>
    %257 = vector.broadcast %256 : vector<8x1xf32> to vector<8x32xf32>
    %258 = arith.mulf %257, %255 : vector<8x32xf32>
    %cst_53 = arith.constant 1.000000e+00 : f32
    %259 = vector.broadcast %cst_53 : f32 to vector<8x1xf32>
    %260 = arith.subf %259, %256 : vector<8x1xf32>
    %261 = vector.broadcast %260 : vector<8x1xf32> to vector<8x32xf32>
    %262 = arith.mulf %261, %195 : vector<8x32xf32>
    %263 = arith.addf %258, %262 : vector<8x32xf32>
    %cst_54 = arith.constant dense<0.000000e+00> : vector<8x256xf32>
    %264 = tpu.matmul %263, %0, %cst_54 {dimension_numbers = #tpu.dot_dimension_numbers<[1], [0], [0], [1], [0, 0, 1, 1], [], []>, precision = #tpu.contract_precision<fp32>} : vector<8x32xf32>, vector<32x256xf32>, vector<8x256xf32> -> vector<8x256xf32>
    %265 = vector.extract_strided_slice %264 {offsets = [0, 128], sizes = [8, 128], strides = [1, 1]} : vector<8x256xf32> to vector<8x128xf32>
    %266 = vector.broadcast %2 : vector<1x128xf32> to vector<8x128xf32>
    %267 = arith.addf %265, %266 : vector<8x128xf32>
    %cst_55 = arith.constant dense<0xFF800000> : vector<8xf32>
    %268 = vector.multi_reduction <maximumf>, %267, %cst_55 [1] : vector<8x128xf32> to vector<8xf32>
    %269 = vector.shape_cast %268 : vector<8xf32> to vector<8x1xf32>
    %270 = vector.broadcast %269 : vector<8x1xf32> to vector<8x128xf32>
    %271 = arith.subf %267, %270 : vector<8x128xf32>
    %272 = math.exp %271 : vector<8x128xf32>
    %cst_56 = arith.constant dense<0.000000e+00> : vector<8xf32>
    %273 = vector.multi_reduction <add>, %272, %cst_56 [1] : vector<8x128xf32> to vector<8xf32>
    %274 = vector.shape_cast %273 : vector<8xf32> to vector<8x1xf32>
    %275 = math.log %274 : vector<8x1xf32>
    %276 = arith.addf %275, %269 : vector<8x1xf32>
    %277 = vector.extract_strided_slice %4 {offsets = [0, 3], sizes = [8, 1], strides = [1, 1]} : vector<8x7xi32> to vector<8x1xi32>
    %278 = vector.broadcast %277 : vector<8x1xi32> to vector<8x128xi32>
    %279 = arith.cmpi eq, %5, %278 : vector<8x128xi32>
    %280 = arith.extui %279 : vector<8x128xi1> to vector<8x128xi32>
    %281 = arith.sitofp %280 : vector<8x128xi32> to vector<8x128xf32>
    %c2_i32_57 = arith.constant 2 : i32
    %282 = vector.broadcast %c2_i32_57 : i32 to vector<8x1xi32>
    %283 = arith.cmpi ne, %277, %282 : vector<8x1xi32>
    %284 = arith.extui %283 : vector<8x1xi1> to vector<8x1xi32>
    %285 = arith.sitofp %284 : vector<8x1xi32> to vector<8x1xf32>
    %286 = vector.broadcast %285 : vector<8x1xf32> to vector<8x128xf32>
    %287 = arith.mulf %286, %281 : vector<8x128xf32>
    %288 = vector.broadcast %276 : vector<8x1xf32> to vector<8x128xf32>
    %289 = arith.subf %288, %267 : vector<8x128xf32>
    %290 = arith.mulf %287, %289 : vector<8x128xf32>
    %291 = arith.addf %223, %290 : vector<8x128xf32>
    %292 = vector.extract_strided_slice %264 {offsets = [0, 0], sizes = [8, 96], strides = [1, 1]} : vector<8x256xf32> to vector<8x96xf32>
    %293 = vector.extract_strided_slice %264 {offsets = [0, 96], sizes = [8, 8], strides = [1, 1]} : vector<8x256xf32> to vector<8x8xf32>
    %294 = math.exp %293 : vector<8x8xf32>
    %cst_58 = arith.constant dense<0.000000e+00> : vector<8x96xf32>
    %295 = tpu.matmul %294, %1, %cst_58 {dimension_numbers = #tpu.dot_dimension_numbers<[1], [0], [0], [1], [0, 0, 1, 1], [], []>, precision = #tpu.contract_precision<fp32>} : vector<8x8xf32>, vector<8x96xf32>, vector<8x96xf32> -> vector<8x96xf32>
    %cst_59 = arith.constant dense<0.000000e+00> : vector<8xf32>
    %296 = vector.multi_reduction <add>, %294, %cst_59 [1] : vector<8x8xf32> to vector<8xf32>
    %297 = vector.shape_cast %296 : vector<8xf32> to vector<8x1xf32>
    %cst_60 = arith.constant 1.000000e+00 : f32
    %298 = vector.broadcast %cst_60 : f32 to vector<8x1xf32>
    %299 = arith.divf %298, %297 : vector<8x1xf32>
    %300 = vector.extract_strided_slice %16 {offsets = [32, 0], sizes = [8, 96], strides = [1, 1]} : vector<56x96xf32> to vector<8x96xf32>
    %301 = vector.broadcast %299 : vector<8x1xf32> to vector<8x96xf32>
    %302 = arith.mulf %295, %301 : vector<8x96xf32>
    %303 = arith.addf %300, %302 : vector<8x96xf32>
    %304 = vector.extract_strided_slice %303 {offsets = [0, 0], sizes = [8, 64], strides = [1, 1]} : vector<8x96xf32> to vector<8x64xf32>
    %305 = vector.extract_strided_slice %292 {offsets = [0, 0], sizes = [8, 64], strides = [1, 1]} : vector<8x96xf32> to vector<8x64xf32>
    %306 = arith.addf %304, %305 : vector<8x64xf32>
    %307 = arith.negf %306 : vector<8x64xf32>
    %308 = math.exp %307 : vector<8x64xf32>
    %cst_61 = arith.constant 1.000000e+00 : f32
    %309 = vector.broadcast %cst_61 : f32 to vector<8x64xf32>
    %310 = arith.addf %309, %308 : vector<8x64xf32>
    %311 = arith.divf %309, %310 : vector<8x64xf32>
    %312 = vector.extract_strided_slice %311 {offsets = [0, 0], sizes = [8, 32], strides = [1, 1]} : vector<8x64xf32> to vector<8x32xf32>
    %313 = vector.extract_strided_slice %311 {offsets = [0, 32], sizes = [8, 32], strides = [1, 1]} : vector<8x64xf32> to vector<8x32xf32>
    %314 = vector.extract_strided_slice %303 {offsets = [0, 64], sizes = [8, 32], strides = [1, 1]} : vector<8x96xf32> to vector<8x32xf32>
    %315 = vector.extract_strided_slice %292 {offsets = [0, 64], sizes = [8, 32], strides = [1, 1]} : vector<8x96xf32> to vector<8x32xf32>
    %316 = arith.mulf %312, %315 : vector<8x32xf32>
    %317 = arith.addf %314, %316 : vector<8x32xf32>
    %318 = math.tanh %317 : vector<8x32xf32>
    %cst_62 = arith.constant 1.000000e+00 : f32
    %319 = vector.broadcast %cst_62 : f32 to vector<8x32xf32>
    %320 = arith.subf %319, %313 : vector<8x32xf32>
    %321 = arith.mulf %320, %318 : vector<8x32xf32>
    %322 = arith.mulf %313, %263 : vector<8x32xf32>
    %323 = arith.addf %321, %322 : vector<8x32xf32>
    %324 = vector.extract_strided_slice %3 {offsets = [0, 4], sizes = [8, 1], strides = [1, 1]} : vector<8x7xf32> to vector<8x1xf32>
    %325 = vector.broadcast %324 : vector<8x1xf32> to vector<8x32xf32>
    %326 = arith.mulf %325, %323 : vector<8x32xf32>
    %cst_63 = arith.constant 1.000000e+00 : f32
    %327 = vector.broadcast %cst_63 : f32 to vector<8x1xf32>
    %328 = arith.subf %327, %324 : vector<8x1xf32>
    %329 = vector.broadcast %328 : vector<8x1xf32> to vector<8x32xf32>
    %330 = arith.mulf %329, %263 : vector<8x32xf32>
    %331 = arith.addf %326, %330 : vector<8x32xf32>
    %cst_64 = arith.constant dense<0.000000e+00> : vector<8x256xf32>
    %332 = tpu.matmul %331, %0, %cst_64 {dimension_numbers = #tpu.dot_dimension_numbers<[1], [0], [0], [1], [0, 0, 1, 1], [], []>, precision = #tpu.contract_precision<fp32>} : vector<8x32xf32>, vector<32x256xf32>, vector<8x256xf32> -> vector<8x256xf32>
    %333 = vector.extract_strided_slice %332 {offsets = [0, 128], sizes = [8, 128], strides = [1, 1]} : vector<8x256xf32> to vector<8x128xf32>
    %334 = vector.broadcast %2 : vector<1x128xf32> to vector<8x128xf32>
    %335 = arith.addf %333, %334 : vector<8x128xf32>
    %cst_65 = arith.constant dense<0xFF800000> : vector<8xf32>
    %336 = vector.multi_reduction <maximumf>, %335, %cst_65 [1] : vector<8x128xf32> to vector<8xf32>
    %337 = vector.shape_cast %336 : vector<8xf32> to vector<8x1xf32>
    %338 = vector.broadcast %337 : vector<8x1xf32> to vector<8x128xf32>
    %339 = arith.subf %335, %338 : vector<8x128xf32>
    %340 = math.exp %339 : vector<8x128xf32>
    %cst_66 = arith.constant dense<0.000000e+00> : vector<8xf32>
    %341 = vector.multi_reduction <add>, %340, %cst_66 [1] : vector<8x128xf32> to vector<8xf32>
    %342 = vector.shape_cast %341 : vector<8xf32> to vector<8x1xf32>
    %343 = math.log %342 : vector<8x1xf32>
    %344 = arith.addf %343, %337 : vector<8x1xf32>
    %345 = vector.extract_strided_slice %4 {offsets = [0, 4], sizes = [8, 1], strides = [1, 1]} : vector<8x7xi32> to vector<8x1xi32>
    %346 = vector.broadcast %345 : vector<8x1xi32> to vector<8x128xi32>
    %347 = arith.cmpi eq, %5, %346 : vector<8x128xi32>
    %348 = arith.extui %347 : vector<8x128xi1> to vector<8x128xi32>
    %349 = arith.sitofp %348 : vector<8x128xi32> to vector<8x128xf32>
    %c2_i32_67 = arith.constant 2 : i32
    %350 = vector.broadcast %c2_i32_67 : i32 to vector<8x1xi32>
    %351 = arith.cmpi ne, %345, %350 : vector<8x1xi32>
    %352 = arith.extui %351 : vector<8x1xi1> to vector<8x1xi32>
    %353 = arith.sitofp %352 : vector<8x1xi32> to vector<8x1xf32>
    %354 = vector.broadcast %353 : vector<8x1xf32> to vector<8x128xf32>
    %355 = arith.mulf %354, %349 : vector<8x128xf32>
    %356 = vector.broadcast %344 : vector<8x1xf32> to vector<8x128xf32>
    %357 = arith.subf %356, %335 : vector<8x128xf32>
    %358 = arith.mulf %355, %357 : vector<8x128xf32>
    %359 = arith.addf %291, %358 : vector<8x128xf32>
    %360 = vector.extract_strided_slice %332 {offsets = [0, 0], sizes = [8, 96], strides = [1, 1]} : vector<8x256xf32> to vector<8x96xf32>
    %361 = vector.extract_strided_slice %332 {offsets = [0, 96], sizes = [8, 8], strides = [1, 1]} : vector<8x256xf32> to vector<8x8xf32>
    %362 = math.exp %361 : vector<8x8xf32>
    %cst_68 = arith.constant dense<0.000000e+00> : vector<8x96xf32>
    %363 = tpu.matmul %362, %1, %cst_68 {dimension_numbers = #tpu.dot_dimension_numbers<[1], [0], [0], [1], [0, 0, 1, 1], [], []>, precision = #tpu.contract_precision<fp32>} : vector<8x8xf32>, vector<8x96xf32>, vector<8x96xf32> -> vector<8x96xf32>
    %cst_69 = arith.constant dense<0.000000e+00> : vector<8xf32>
    %364 = vector.multi_reduction <add>, %362, %cst_69 [1] : vector<8x8xf32> to vector<8xf32>
    %365 = vector.shape_cast %364 : vector<8xf32> to vector<8x1xf32>
    %cst_70 = arith.constant 1.000000e+00 : f32
    %366 = vector.broadcast %cst_70 : f32 to vector<8x1xf32>
    %367 = arith.divf %366, %365 : vector<8x1xf32>
    %368 = vector.extract_strided_slice %16 {offsets = [40, 0], sizes = [8, 96], strides = [1, 1]} : vector<56x96xf32> to vector<8x96xf32>
    %369 = vector.broadcast %367 : vector<8x1xf32> to vector<8x96xf32>
    %370 = arith.mulf %363, %369 : vector<8x96xf32>
    %371 = arith.addf %368, %370 : vector<8x96xf32>
    %372 = vector.extract_strided_slice %371 {offsets = [0, 0], sizes = [8, 64], strides = [1, 1]} : vector<8x96xf32> to vector<8x64xf32>
    %373 = vector.extract_strided_slice %360 {offsets = [0, 0], sizes = [8, 64], strides = [1, 1]} : vector<8x96xf32> to vector<8x64xf32>
    %374 = arith.addf %372, %373 : vector<8x64xf32>
    %375 = arith.negf %374 : vector<8x64xf32>
    %376 = math.exp %375 : vector<8x64xf32>
    %cst_71 = arith.constant 1.000000e+00 : f32
    %377 = vector.broadcast %cst_71 : f32 to vector<8x64xf32>
    %378 = arith.addf %377, %376 : vector<8x64xf32>
    %379 = arith.divf %377, %378 : vector<8x64xf32>
    %380 = vector.extract_strided_slice %379 {offsets = [0, 0], sizes = [8, 32], strides = [1, 1]} : vector<8x64xf32> to vector<8x32xf32>
    %381 = vector.extract_strided_slice %379 {offsets = [0, 32], sizes = [8, 32], strides = [1, 1]} : vector<8x64xf32> to vector<8x32xf32>
    %382 = vector.extract_strided_slice %371 {offsets = [0, 64], sizes = [8, 32], strides = [1, 1]} : vector<8x96xf32> to vector<8x32xf32>
    %383 = vector.extract_strided_slice %360 {offsets = [0, 64], sizes = [8, 32], strides = [1, 1]} : vector<8x96xf32> to vector<8x32xf32>
    %384 = arith.mulf %380, %383 : vector<8x32xf32>
    %385 = arith.addf %382, %384 : vector<8x32xf32>
    %386 = math.tanh %385 : vector<8x32xf32>
    %cst_72 = arith.constant 1.000000e+00 : f32
    %387 = vector.broadcast %cst_72 : f32 to vector<8x32xf32>
    %388 = arith.subf %387, %381 : vector<8x32xf32>
    %389 = arith.mulf %388, %386 : vector<8x32xf32>
    %390 = arith.mulf %381, %331 : vector<8x32xf32>
    %391 = arith.addf %389, %390 : vector<8x32xf32>
    %392 = vector.extract_strided_slice %3 {offsets = [0, 5], sizes = [8, 1], strides = [1, 1]} : vector<8x7xf32> to vector<8x1xf32>
    %393 = vector.broadcast %392 : vector<8x1xf32> to vector<8x32xf32>
    %394 = arith.mulf %393, %391 : vector<8x32xf32>
    %cst_73 = arith.constant 1.000000e+00 : f32
    %395 = vector.broadcast %cst_73 : f32 to vector<8x1xf32>
    %396 = arith.subf %395, %392 : vector<8x1xf32>
    %397 = vector.broadcast %396 : vector<8x1xf32> to vector<8x32xf32>
    %398 = arith.mulf %397, %331 : vector<8x32xf32>
    %399 = arith.addf %394, %398 : vector<8x32xf32>
    %cst_74 = arith.constant dense<0.000000e+00> : vector<8x256xf32>
    %400 = tpu.matmul %399, %0, %cst_74 {dimension_numbers = #tpu.dot_dimension_numbers<[1], [0], [0], [1], [0, 0, 1, 1], [], []>, precision = #tpu.contract_precision<fp32>} : vector<8x32xf32>, vector<32x256xf32>, vector<8x256xf32> -> vector<8x256xf32>
    %401 = vector.extract_strided_slice %400 {offsets = [0, 128], sizes = [8, 128], strides = [1, 1]} : vector<8x256xf32> to vector<8x128xf32>
    %402 = vector.broadcast %2 : vector<1x128xf32> to vector<8x128xf32>
    %403 = arith.addf %401, %402 : vector<8x128xf32>
    %cst_75 = arith.constant dense<0xFF800000> : vector<8xf32>
    %404 = vector.multi_reduction <maximumf>, %403, %cst_75 [1] : vector<8x128xf32> to vector<8xf32>
    %405 = vector.shape_cast %404 : vector<8xf32> to vector<8x1xf32>
    %406 = vector.broadcast %405 : vector<8x1xf32> to vector<8x128xf32>
    %407 = arith.subf %403, %406 : vector<8x128xf32>
    %408 = math.exp %407 : vector<8x128xf32>
    %cst_76 = arith.constant dense<0.000000e+00> : vector<8xf32>
    %409 = vector.multi_reduction <add>, %408, %cst_76 [1] : vector<8x128xf32> to vector<8xf32>
    %410 = vector.shape_cast %409 : vector<8xf32> to vector<8x1xf32>
    %411 = math.log %410 : vector<8x1xf32>
    %412 = arith.addf %411, %405 : vector<8x1xf32>
    %413 = vector.extract_strided_slice %4 {offsets = [0, 5], sizes = [8, 1], strides = [1, 1]} : vector<8x7xi32> to vector<8x1xi32>
    %414 = vector.broadcast %413 : vector<8x1xi32> to vector<8x128xi32>
    %415 = arith.cmpi eq, %5, %414 : vector<8x128xi32>
    %416 = arith.extui %415 : vector<8x128xi1> to vector<8x128xi32>
    %417 = arith.sitofp %416 : vector<8x128xi32> to vector<8x128xf32>
    %c2_i32_77 = arith.constant 2 : i32
    %418 = vector.broadcast %c2_i32_77 : i32 to vector<8x1xi32>
    %419 = arith.cmpi ne, %413, %418 : vector<8x1xi32>
    %420 = arith.extui %419 : vector<8x1xi1> to vector<8x1xi32>
    %421 = arith.sitofp %420 : vector<8x1xi32> to vector<8x1xf32>
    %422 = vector.broadcast %421 : vector<8x1xf32> to vector<8x128xf32>
    %423 = arith.mulf %422, %417 : vector<8x128xf32>
    %424 = vector.broadcast %412 : vector<8x1xf32> to vector<8x128xf32>
    %425 = arith.subf %424, %403 : vector<8x128xf32>
    %426 = arith.mulf %423, %425 : vector<8x128xf32>
    %427 = arith.addf %359, %426 : vector<8x128xf32>
    %428 = vector.extract_strided_slice %400 {offsets = [0, 0], sizes = [8, 96], strides = [1, 1]} : vector<8x256xf32> to vector<8x96xf32>
    %429 = vector.extract_strided_slice %400 {offsets = [0, 96], sizes = [8, 8], strides = [1, 1]} : vector<8x256xf32> to vector<8x8xf32>
    %430 = math.exp %429 : vector<8x8xf32>
    %cst_78 = arith.constant dense<0.000000e+00> : vector<8x96xf32>
    %431 = tpu.matmul %430, %1, %cst_78 {dimension_numbers = #tpu.dot_dimension_numbers<[1], [0], [0], [1], [0, 0, 1, 1], [], []>, precision = #tpu.contract_precision<fp32>} : vector<8x8xf32>, vector<8x96xf32>, vector<8x96xf32> -> vector<8x96xf32>
    %cst_79 = arith.constant dense<0.000000e+00> : vector<8xf32>
    %432 = vector.multi_reduction <add>, %430, %cst_79 [1] : vector<8x8xf32> to vector<8xf32>
    %433 = vector.shape_cast %432 : vector<8xf32> to vector<8x1xf32>
    %cst_80 = arith.constant 1.000000e+00 : f32
    %434 = vector.broadcast %cst_80 : f32 to vector<8x1xf32>
    %435 = arith.divf %434, %433 : vector<8x1xf32>
    %436 = vector.extract_strided_slice %16 {offsets = [48, 0], sizes = [8, 96], strides = [1, 1]} : vector<56x96xf32> to vector<8x96xf32>
    %437 = vector.broadcast %435 : vector<8x1xf32> to vector<8x96xf32>
    %438 = arith.mulf %431, %437 : vector<8x96xf32>
    %439 = arith.addf %436, %438 : vector<8x96xf32>
    %440 = vector.extract_strided_slice %439 {offsets = [0, 0], sizes = [8, 64], strides = [1, 1]} : vector<8x96xf32> to vector<8x64xf32>
    %441 = vector.extract_strided_slice %428 {offsets = [0, 0], sizes = [8, 64], strides = [1, 1]} : vector<8x96xf32> to vector<8x64xf32>
    %442 = arith.addf %440, %441 : vector<8x64xf32>
    %443 = arith.negf %442 : vector<8x64xf32>
    %444 = math.exp %443 : vector<8x64xf32>
    %cst_81 = arith.constant 1.000000e+00 : f32
    %445 = vector.broadcast %cst_81 : f32 to vector<8x64xf32>
    %446 = arith.addf %445, %444 : vector<8x64xf32>
    %447 = arith.divf %445, %446 : vector<8x64xf32>
    %448 = vector.extract_strided_slice %447 {offsets = [0, 0], sizes = [8, 32], strides = [1, 1]} : vector<8x64xf32> to vector<8x32xf32>
    %449 = vector.extract_strided_slice %447 {offsets = [0, 32], sizes = [8, 32], strides = [1, 1]} : vector<8x64xf32> to vector<8x32xf32>
    %450 = vector.extract_strided_slice %439 {offsets = [0, 64], sizes = [8, 32], strides = [1, 1]} : vector<8x96xf32> to vector<8x32xf32>
    %451 = vector.extract_strided_slice %428 {offsets = [0, 64], sizes = [8, 32], strides = [1, 1]} : vector<8x96xf32> to vector<8x32xf32>
    %452 = arith.mulf %448, %451 : vector<8x32xf32>
    %453 = arith.addf %450, %452 : vector<8x32xf32>
    %454 = math.tanh %453 : vector<8x32xf32>
    %cst_82 = arith.constant 1.000000e+00 : f32
    %455 = vector.broadcast %cst_82 : f32 to vector<8x32xf32>
    %456 = arith.subf %455, %449 : vector<8x32xf32>
    %457 = arith.mulf %456, %454 : vector<8x32xf32>
    %458 = arith.mulf %449, %399 : vector<8x32xf32>
    %459 = arith.addf %457, %458 : vector<8x32xf32>
    %460 = vector.extract_strided_slice %3 {offsets = [0, 6], sizes = [8, 1], strides = [1, 1]} : vector<8x7xf32> to vector<8x1xf32>
    %461 = vector.broadcast %460 : vector<8x1xf32> to vector<8x32xf32>
    %462 = arith.mulf %461, %459 : vector<8x32xf32>
    %cst_83 = arith.constant 1.000000e+00 : f32
    %463 = vector.broadcast %cst_83 : f32 to vector<8x1xf32>
    %464 = arith.subf %463, %460 : vector<8x1xf32>
    %465 = vector.broadcast %464 : vector<8x1xf32> to vector<8x32xf32>
    %466 = arith.mulf %465, %399 : vector<8x32xf32>
    %467 = arith.addf %462, %466 : vector<8x32xf32>
    %cst_84 = arith.constant dense<0.000000e+00> : vector<8x256xf32>
    %468 = tpu.matmul %467, %0, %cst_84 {dimension_numbers = #tpu.dot_dimension_numbers<[1], [0], [0], [1], [0, 0, 1, 1], [], []>, precision = #tpu.contract_precision<fp32>} : vector<8x32xf32>, vector<32x256xf32>, vector<8x256xf32> -> vector<8x256xf32>
    %469 = vector.extract_strided_slice %468 {offsets = [0, 128], sizes = [8, 128], strides = [1, 1]} : vector<8x256xf32> to vector<8x128xf32>
    %470 = vector.broadcast %2 : vector<1x128xf32> to vector<8x128xf32>
    %471 = arith.addf %469, %470 : vector<8x128xf32>
    %cst_85 = arith.constant dense<0xFF800000> : vector<8xf32>
    %472 = vector.multi_reduction <maximumf>, %471, %cst_85 [1] : vector<8x128xf32> to vector<8xf32>
    %473 = vector.shape_cast %472 : vector<8xf32> to vector<8x1xf32>
    %474 = vector.broadcast %473 : vector<8x1xf32> to vector<8x128xf32>
    %475 = arith.subf %471, %474 : vector<8x128xf32>
    %476 = math.exp %475 : vector<8x128xf32>
    %cst_86 = arith.constant dense<0.000000e+00> : vector<8xf32>
    %477 = vector.multi_reduction <add>, %476, %cst_86 [1] : vector<8x128xf32> to vector<8xf32>
    %478 = vector.shape_cast %477 : vector<8xf32> to vector<8x1xf32>
    %479 = math.log %478 : vector<8x1xf32>
    %480 = arith.addf %479, %473 : vector<8x1xf32>
    %481 = vector.extract_strided_slice %4 {offsets = [0, 6], sizes = [8, 1], strides = [1, 1]} : vector<8x7xi32> to vector<8x1xi32>
    %482 = vector.broadcast %481 : vector<8x1xi32> to vector<8x128xi32>
    %483 = arith.cmpi eq, %5, %482 : vector<8x128xi32>
    %484 = arith.extui %483 : vector<8x128xi1> to vector<8x128xi32>
    %485 = arith.sitofp %484 : vector<8x128xi32> to vector<8x128xf32>
    %c2_i32_87 = arith.constant 2 : i32
    %486 = vector.broadcast %c2_i32_87 : i32 to vector<8x1xi32>
    %487 = arith.cmpi ne, %481, %486 : vector<8x1xi32>
    %488 = arith.extui %487 : vector<8x1xi1> to vector<8x1xi32>
    %489 = arith.sitofp %488 : vector<8x1xi32> to vector<8x1xf32>
    %490 = vector.broadcast %489 : vector<8x1xf32> to vector<8x128xf32>
    %491 = arith.mulf %490, %485 : vector<8x128xf32>
    %492 = vector.broadcast %480 : vector<8x1xf32> to vector<8x128xf32>
    %493 = arith.subf %492, %471 : vector<8x128xf32>
    %494 = arith.mulf %491, %493 : vector<8x128xf32>
    %495 = arith.addf %427, %494 : vector<8x128xf32>
    %c0_88 = arith.constant 0 : index
    %c0_89 = arith.constant 0 : index
    %496 = vector.load %arg9[%c0_88, %c0_89] : memref<8x128xf32, #tpu.memory_space<vmem>>, vector<8x128xf32>
    tpu.vector_store %arg9[%c0_88, %c0_89], %495 {strides = array<i32>} : memref<8x128xf32, #tpu.memory_space<vmem>>, vector<8x128xf32>,
    return
  }
}

</mosaic_0001>

<bundles_post_ra>
// kernel: gru_decoder_loss.1
= control target key start
LH: loop header
LB: loop body
LE: loop exit
PB: predicated region body
PF: predicated region fallthrough
CT: control target
= control target key end

     0   :  { %14 = vsyncpa [#allocation3], 0  ;;  %s5178_s12 = smov [#allocation2]   ;;  %s5179_s14 = smov 128   ;;  %s6456_s0 = inlined_call_operand.vmem [shape: s32[56,1], index: 0, kind: input, shape index: {}]   ;;  %s6457_s1 = inlined_call_operand.vmem [shape: f32[8,7], index: 1, kind: input, shape index: {}]   ;;  %s6458_s2 = inlined_call_operand.vmem [shape: s32[8,7], index: 2, kind: input, shape index: {}]   ;;  %s6459_s3 = inlined_call_operand.vmem [shape: f32[8,32], index: 3, kind: input, shape index: {}]   ;;  %s6460_s4 = inlined_call_operand.vmem [shape: f32[32,256], index: 4, kind: input, shape index: {}]   ;;  %s6461_s5 = inlined_call_operand.vmem [shape: f32[8,96], index: 5, kind: input, shape index: {}]   ;;  %s6462_s6 = inlined_call_operand.hbm [shape: f32[64,96], index: 6, kind: input, shape index: {}]   ;;  %s6463_s7 = inlined_call_operand.vmem [shape: f32[1,96], index: 7, kind: input, shape index: {}]   ;;  %s6464_s8 = inlined_call_operand.vmem [shape: f32[1,128], index: 8, kind: input, shape index: {}]   ;;  %s6465_s9 = inlined_call_operand.vmem [shape: f32[8,128], index: 9, kind: output, shape index: {}]  }
   0x1   :  { %s31_s11 = sshll.u32 %s6462_s6, 4  ;;  %s33_s13 = sshll.u32 %s5178_s12, 4  ;;  %s32_s11 = int_to_ptr.hbm [resolvable:$true] %s31_s11  ;;  %s34_s13 = int_to_ptr.vmem [resolvable:$true] %s33_s13 }
   0x2   :  { %s5180_s15 = smov 8  }
   0x3   :  { %39 = dma.hbm_to_vmem [thread:$0]  %s32_s11, 1024, %s34_s13, [#allocation3], %s5179_s14, %s5179_s14, %s5180_s15  }
   0x4   :  { %5176 = dma.done.wait [#allocation3], 1024  }
   0x5   :  { %5177 = vsyncadd [#allocation3], 4294966272  ;;  %v6468_v0 = vmov 0   ;;  %v62_v1 = vld [vmem:[%s6456_s0] sm:$0xff]  ;;  %v64_v2 = vld [vmem:[%s6456_s0 + $0x10] sm:$0xff]  ;;  %vm123_vm0 = vcmask 523264  }
   0x6   :  { %5022 = vset.pattern.permute.xlu0 %v6468_v0  ;;  %5023 = vset.pattern.permute.xlu1 %v6468_v0  ;;  %v66_v3 = vld [vmem:[%s6456_s0 + $0x20] sm:$0xff]  ;;  %v118_v4 = vld [vmem:[#allocation2 + $0x38] sm:$0xff]  ;;  %v117_v5 = vld [vmem:[#allocation2 + $0x30] sm:$0xff]  ;;  %vm569_vm7 = vcmask 261120   ;;  %s5184_s18 = smov 32   ;;  %vm763_vm9 = vcmask 64512  }
   0x7   :  { %5024 = vset.pattern.permute.xlu2 %v6468_v0  ;;  %70 = vperm.xlu0 %5022, %v62_v1   ;;  %v5257_v6 = vand.u32 4294901760, %v118_v4  ;;  %v5259_v7 = vand.u32 4294901760, %v117_v5  ;;  %v116_v8 = vld [vmem:[#allocation2 + $0x28] sm:$0xff]  ;;  %v115_v9 = vld [vmem:[#allocation2 + $0x20] sm:$0xff]  ;;  %v114_v10 = vld [vmem:[#allocation2 + $0x18] sm:$0xff]  ;;  %s5185_s22 = smov 96  }
   0x8   :  { %76 = vperm.xlu1 %5023, %v64_v2   ;;  %82 = vperm.xlu2 %5024, %v66_v3   ;;  %v5261_v11 = vand.u32 4294901760, %v116_v8  ;;  %v5263_v12 = vand.u32 4294901760, %v115_v9  ;;  %v5265_v13 = vand.u32 4294901760, %v114_v10  ;;  %v113_v14 = vld [vmem:[#allocation2 + $0x10] sm:$0xff]  ;;  %v112_v15 = vld [vmem:[#allocation2 + $0x8] sm:$0xff]  ;;  %v65_v21 = vld [vmem:[%s6456_s0 + $0x18] sm:$0xff]  ;;  %v60_v2 = vlaneseq }
   0x9   :  { %v5268_v16 = vsub.f32 %v118_v4, %v5257_v6  ;;  %v5271_v17 = vsub.f32 %v117_v5, %v5259_v7  ;;  %388 = vmatpush.msra.mxu3 %v5257_v6  ;;  %154 = vmatpush.msra.mxu0 %v5257_v6  ;;  %v5275_v18 = vand.u32 4294901760, %v113_v14  ;;  %v5277_v19 = vand.u32 4294901760, %v112_v15  ;;  %v63_v20 = vld [vmem:[%s6456_s0 + $0x8] sm:$0xff]  ;;  %v68_v43 = vld [vmem:[%s6456_s0 + $0x30] sm:$0xff]  ;;  %v111_v50 = vld [vmem:[#allocation2] sm:$0xff] }
   0xa   :  { %v5286_v22 = vsub.f32 %v116_v8, %v5261_v11  ;;  %v5289_v23 = vsub.f32 %v115_v9, %v5263_v12  ;;  %v5292_v24 = vsub.f32 %v114_v10, %v5265_v13  ;;  %v67_v25 = vld [vmem:[%s6456_s0 + $0x28] sm:$0xff]  ;;  %v167_v51 = vand.u32 4294901760, %v111_v50  ;;  %v54_v56 = vld [vmem:[%s6460_s4 + $0x30] sm:$0xff]  ;;  %v52_v62 = vld [vmem:[%s6460_s4 + $0x20] sm:$0xff] }
   0xb   :  { %v236_v26 = vand.u32 4294901760, %v5268_v16  ;;  %v242_v27 = vand.u32 4294901760, %v5271_v17  ;;  %321 = vmatpush.msra.mxu2 %v5268_v16  ;;  %390 = vmatpush.msra.mxu3 %v5259_v7  ;;  %v5302_v28 = vsub.f32 %v113_v14, %v5275_v18  ;;  %v271_v34 = vsub.f32 %v112_v15, %v5277_v19  ;;  %v50_v9 = vld [vmem:[%s6460_s4 + $0x10] sm:$0xff] }
   0xc   :  { %v248_v29 = vand.u32 4294901760, %v5286_v22  ;;  %v254_v30 = vand.u32 4294901760, %v5289_v23  ;;  %156 = vmatpush.msra.mxu0 %v5259_v7  ;;  %v260_v33 = vand.u32 4294901760, %v5292_v24  ;;  %v277_v52 = vsub.f32 %v111_v50, %v167_v51 }
   0xd   :  { %v237_v31 = vsub.f32 %v5268_v16, %v236_v26  ;;  %v243_v32 = vsub.f32 %v5271_v17, %v242_v27  ;;  %324 = vmatpush.msra.mxu2 %v5271_v17  ;;  %392 = vmatpush.msra.mxu3 %v5261_v11  ;;  %v266_v39 = vand.u32 4294901760, %v5302_v28  ;;  %v272_v42 = vand.u32 4294901760, %v271_v34 }
   0xe   :  { %v249_v35 = vsub.f32 %v5286_v22, %v248_v29  ;;  %v255_v38 = vsub.f32 %v5289_v23, %v254_v30  ;;  %158 = vmatpush.msra.mxu0 %v5261_v11  ;;  %v261_v41 = vsub.f32 %v5292_v24, %v260_v33  ;;  %v278_v53 = vand.u32 4294901760, %v277_v52 }
   0xf   :  { %73 = vperm.xlu0 %5022, %v63_v20   ;;  %v238_v36 = vand.u32 4294901760, %v237_v31  ;;  %v244_v37 = vand.u32 4294901760, %v243_v32  ;;  %327 = vmatpush.msra.mxu2 %v5286_v22  ;;  %v267_v45 = vsub.f32 %v5302_v28, %v266_v39  ;;  %v273_v47 = vsub.f32 %v271_v34, %v272_v42 }
  0x10   :  { %79 = vperm.xlu1 %5023, %v65_v21   ;;  %85 = vperm.xlu2 %5024, %v67_v25   ;;  %v250_v40 = vand.u32 4294901760, %v249_v35  ;;  %v256_v44 = vand.u32 4294901760, %v255_v38  ;;  %v262_v46 = vand.u32 4294901760, %v261_v41  ;;  %v279_v54 = vsub.f32 %v277_v52, %v278_v53 }
  0x11   :  { %239 = vmatpush.msra.mxu1 %v238_v36  ;;  %394 = vmatpush.msra.mxu3 %v5263_v12  ;;  %v268_v48 = vand.u32 4294901760, %v267_v45  ;;  %v274_v49 = vand.u32 4294901760, %v273_v47  ;;  %v5339_v57 = vand.u32 4294901760, %v54_v56  ;;  %v5361_v63 = vand.u32 4294901760, %v52_v62 }
  0x12   :  { %330 = vmatpush.msra.mxu2 %v5289_v23  ;;  %160 = vmatpush.msra.mxu0 %v5263_v12  ;;  %v280_v55 = vand.u32 4294901760, %v279_v54  ;;  %v5372_v5 = vand.u32 127, %v60_v2  ;;  %v5381_v10 = vand.u32 4294901760, %v50_v9 }
  0x13   :  { %245 = vmatpush.msra.mxu1 %v244_v37  ;;  %396 = vmatpush.msra.mxu3 %v5265_v13  ;;  %v5345_v58 = vsub.f32 %v54_v56, %v5339_v57  ;;  %v5365_v1 = vsub.f32 %v52_v62, %v5361_v63 }
  0x14   :  { %333 = vmatpush.msra.mxu2 %v5292_v24  ;;  %162 = vmatpush.msra.mxu0 %v5265_v13  ;;  %6481 = vst [vmem:[#allocation5_spill] sm:$0xff] %v5372_v5  ;;  %v5392_v15 = vsub.f32 %v50_v9, %v5381_v10 }
  0x15   :  { %251 = vmatpush.msra.mxu1 %v250_v40  ;;  %398 = vmatpush.msra.mxu3 %v5275_v18  ;;  %v5349_v59 = vand.u32 4294901760, %v5345_v58  ;;  %v5368_v3 = vand.u32 4294901760, %v5365_v1 }
  0x16   :  { %336 = vmatpush.msra.mxu2 %v5302_v28  ;;  %164 = vmatpush.msra.mxu0 %v5275_v18  ;;  %v5397_v17 = vand.u32 4294901760, %v5392_v15 }
  0x17   :  { %88 = vperm.xlu0 %5022, %v68_v43   ;;  %257 = vmatpush.msra.mxu1 %v256_v44  ;;  %v617_v60 = vsub.f32 %v5345_v58, %v5349_v59  ;;  %v623_v4 = vsub.f32 %v5365_v1, %v5368_v3 }
  0x18   :  { %339 = vmatpush.msra.mxu2 %v271_v34  ;;  %400 = vmatpush.msra.mxu3 %v5277_v19  ;;  %v629_v21 = vsub.f32 %v5392_v15, %v5397_v17  ;;  %v48_v34 = vld [vmem:[%s6460_s4] sm:$0xff] }
  0x19   :  { %263 = vmatpush.msra.mxu1 %v262_v46  ;;  %166 = vmatpush.msra.mxu0 %v5277_v19  ;;  %v5355_v61 = vand.u32 4294901760, %v617_v60  ;;  %v5428_v35 = vand.u32 4294901760, %v48_v34  ;;  %v5476_v60 = vld [vmem:[%s6459_s3] sm:$0xff]  ;;  %s5183_s3 = smov 64  }
  0x1a   :  { %402 = vmatpush.msra.mxu3 %v167_v51  ;;  %342 = vmatpush.msra.mxu2 %v277_v52 }
  0x1b   :  { %269 = vmatpush.msra.mxu1 %v268_v48  ;;  %168 = vmatpush.msra.mxu0 %v167_v51 }
  0x1c   :  { %586 = vmatpush.msrb.mxu2 %v5339_v57  ;;  %619 = vmatpush.msrb.mxu3 %v5355_v61 }
  0x1d   :  { %275 = vmatpush.msra.mxu1 %v274_v49  ;;  %457 = vmatpush.msrb.mxu0 %v236_v26 }
  0x1e   :  { %588 = vmatpush.msrb.mxu2 %v5361_v63 }
  0x1f   :  { %461 = vmatpush.msrb.mxu0 %v242_v27  ;;  %281 = vmatpush.msra.mxu1 %v280_v55  ;;  %v5416_v27 = vand.u32 4294901760, %v629_v21 }
  0x20   :  { %590 = vmatpush.msrb.mxu2 %v5381_v10 }
  0x21   :  { %465 = vmatpush.msrb.mxu0 %v248_v29  ;;  %524 = vmatpush.msrb.mxu1 %v5257_v6  ;;  %v5374_v6 = vand.u32 4294901760, %v623_v4  ;;  %v571_v4 = vsel %vm569_vm7, %v5476_v60, 0 }
  0x22   :  { %592 = vmatpush.msrb.mxu2 %v5428_v35 }
  0x23   :  { %469 = vmatpush.msrb.mxu0 %v254_v30  ;;  %526 = vmatpush.msrb.mxu1 %v5259_v7 }
  0x24   :  { %625 = vmatpush.msrb.mxu3 %v5374_v6 }
  0x25   :  { %473 = vmatpush.msrb.mxu0 %v260_v33  ;;  %528 = vmatpush.msrb.mxu1 %v5261_v11  ;;  %v6466_v11 = vmov 0.0  }
  0x26   :  { %631 = vmatpush.msrb.mxu3 %v5416_v27 }
  0x27   :  { %477 = vmatpush.msrb.mxu0 %v266_v39  ;;  %530 = vmatpush.msrb.mxu1 %v5263_v12  ;;  %v5437_v39 = vsub.f32 %v48_v34, %v5428_v35 }
  0x29   :  { %481 = vmatpush.msrb.mxu0 %v272_v42  ;;  %532 = vmatpush.msrb.mxu1 %v5265_v13  ;;  %v5442_v40 = vand.u32 4294901760, %v5437_v39 }
  0x2b   :  { %485 = vmatpush.msrb.mxu0 %v278_v53  ;;  %534 = vmatpush.msrb.mxu1 %v5275_v18  ;;  %v635_v43 = vsub.f32 %v5437_v39, %v5442_v40 }
  0x2d   :  { %536 = vmatpush.msrb.mxu1 %v5277_v19  ;;  %v5452_v45 = vand.u32 4294901760, %v635_v43 }
  0x2f   :  { %538 = vmatpush.msrb.mxu1 %v167_v51  ;;  %637 = vmatpush.msrb.mxu3 %v5452_v45 }
  0x62   :  { %v83_v33 = vpop.permute.xlu2 %82 }
  0x63   :  { %vm94_vm5 = vcmp.eq.s32.totalorder %v5372_v5, %v83_v33 }
  0x64   :  { %v5450_v44 = vsel %vm94_vm5, 1.0, %v6466_v11 }
  0x65   :  { %v137_v49 = vsel %vm123_vm0, %v5450_v44, 0 }
  0x66   :  { %v202_v51 = vsub.f32 %v137_v49, %v137_v49 }
  0x68   :  { %v203_v55 = vand.u32 4294901760, %v202_v51 }
  0x6a   :  { %v86_v47 = vpop.permute.xlu2 %85  ;;  %v204_v62 = vsub.f32 %v202_v51, %v203_v55 }
  0x6b   :  { %vm95_vm6 = vcmp.eq.s32.totalorder %v5372_v5, %v86_v47 }
  0x6c   :  { %v5465_v52 = vsel %vm95_vm6, 1.0, %v6466_v11 }
  0x6d   :  { %v140_v56 = vsel %vm123_vm0, %v5465_v52, 0 }
  0x6e   :  { %v210_v2 = vsub.f32 %v140_v56, %v140_v56 }
  0x70   :  { %v211_v9 = vand.u32 4294901760, %v210_v2 }
  0x79   :  { %v71_v7 = vpop.permute.xlu0 %70 }
  0x7a   :  { %v77_v8 = vpop.permute.xlu1 %76  ;;  %vm90_vm1 = vcmp.eq.s32.totalorder %v5372_v5, %v71_v7 }
  0x7b   :  { %v5384_v12 = vsel %vm90_vm1, 1.0, %v6466_v11  ;;  %vm92_vm2 = vcmp.eq.s32.totalorder %v5372_v5, %v77_v8  ;;  %v205_v8 = vand.u32 4294901760, %v204_v62  ;;  %v5556_v62 = vld [vmem:[%s6457_s1] sm:$0xff] }
  0x7c   :  { %4972 = vmatmul.msk.f32.vlgmr.msra.gmra.mxu1 %vm123_vm0, %v5384_v12  ;;  %v125_v13 = vsel %vm123_vm0, %v5384_v12, 0  ;;  %v5401_v18 = vsel %vm92_vm2, 1.0, %v6466_v11 }
  0x7d   :  { %v170_v14 = vsub.f32 %v125_v13, %v125_v13  ;;  %1111 = vmatpush.msra.mxu1 %v5339_v57  ;;  %v131_v26 = vsel %vm123_vm0, %v5401_v18, 0  ;;  %v593_v13 = vand.u32 4294901760, %v571_v4 }
  0x7e   :  { %v186_v30 = vsub.f32 %v131_v26, %v131_v26 }
  0x7f   :  { %345 = vmatmul.f32.vlgmr.msra.gmra.mxu2 %v170_v14  ;;  %v171_v16 = vand.u32 4294901760, %v170_v14  ;;  %1113 = vmatpush.msra.mxu1 %v5361_v63 }
  0x80   :  { %v187_v37 = vand.u32 4294901760, %v186_v30  ;;  %657 = vmatpush.msra.mxu2 %v5345_v58 }
  0x81   :  { %406 = vmatmul.f32.vlgmr.msra.gmra.mxu3 %v171_v16  ;;  %v74_v19 = vpop.permute.xlu0 %73  ;;  %v172_v20 = vsub.f32 %v170_v14, %v171_v16  ;;  %1115 = vmatpush.msra.mxu1 %v5381_v10  ;;  %v212_v16 = vsub.f32 %v210_v2, %v211_v9 }
  0x82   :  { %vm91_vm3 = vcmp.eq.s32.totalorder %v5372_v5, %v74_v19  ;;  %v80_v24 = vpop.permute.xlu1 %79  ;;  %v188_v41 = vsub.f32 %v186_v30, %v187_v37  ;;  %660 = vmatpush.msra.mxu2 %v5365_v1  ;;  %686 = vmatpush.msra.mxu3 %v5339_v57 }
  0x83   :  { %v5408_v22 = vsel %vm91_vm3, 1.0, %v6466_v11  ;;  %v173_v23 = vand.u32 4294901760, %v172_v20  ;;  %vm93_vm4 = vcmp.eq.s32.totalorder %v5372_v5, %v80_v24  ;;  %1117 = vmatpush.msra.mxu1 %v5428_v35  ;;  %v594_v20 = vsub.f32 %v571_v4, %v593_v13 }
  0x84   :  { %4973 = vmatmul.msk.f32.gmra.mxu1 %vm123_vm0, %v5408_v22  ;;  %v128_v25 = vsel %vm123_vm0, %v5408_v22, 0  ;;  %v5423_v31 = vsel %vm93_vm4, 1.0, %v6466_v11  ;;  %663 = vmatpush.msra.mxu2 %v5392_v15  ;;  %v189_v46 = vand.u32 4294901760, %v188_v41  ;;  %v213_v21 = vand.u32 4294901760, %v212_v16 }
  0x85   :  { %174 = vmatmul.f32.vlgmr.msra.gmra.mxu0 %v173_v23  ;;  %v178_v28 = vsub.f32 %v128_v25, %v128_v25  ;;  %v134_v38 = vsel %vm123_vm0, %v5423_v31, 0  ;;  %688 = vmatpush.msra.mxu3 %v5361_v63  ;;  %v595_v24 = vand.u32 4294901760, %v594_v20 }
  0x86   :  { %1082 = vmatpush.msra.mxu0 %v5345_v58  ;;  %v194_v42 = vsub.f32 %v134_v38, %v134_v38  ;;  %666 = vmatpush.msra.mxu2 %v5437_v39 }
  0x87   :  { %350 = vmatmul.f32.gmra.mxu2 %v178_v28  ;;  %v179_v29 = vand.u32 4294901760, %v178_v28  ;;  %690 = vmatpush.msra.mxu3 %v5381_v10  ;;  %v596_v26 = vsub.f32 %v594_v20, %v595_v24 }
  0x88   :  { %1085 = vmatpush.msra.mxu0 %v5365_v1  ;;  %v195_v48 = vand.u32 4294901760, %v194_v42 }
  0x89   :  { %412 = vmatmul.f32.gmra.mxu3 %v179_v29  ;;  %v180_v32 = vsub.f32 %v178_v28, %v179_v29  ;;  %v89_v53 = vpop.permute.xlu0 %88  ;;  %v597_v29 = vand.u32 4294901760, %v596_v26 }
  0x8a   :  { %1088 = vmatpush.msra.mxu0 %v5392_v15  ;;  %v196_v50 = vsub.f32 %v194_v42, %v195_v48  ;;  %692 = vmatpush.msra.mxu3 %v5428_v35  ;;  %vm96_vm8 = vcmp.eq.s32.totalorder %v5372_v5, %v89_v53 }
  0x8b   :  { %v181_v36 = vand.u32 4294901760, %v180_v32  ;;  %v4971_v7 = vsel %vm96_vm8, 1.0, %v6466_v11 }
  0x8c   :  { %4974 = vmatmul.msk.f32.gmra.mxu1 %vm123_vm0, %v5401_v18  ;;  %1091 = vmatpush.msra.mxu0 %v5437_v39  ;;  %v197_v54 = vand.u32 4294901760, %v196_v50  ;;  %v143_v14 = vsel %vm123_vm0, %v4971_v7, 0 }
  0x8d   :  { %182 = vmatmul.f32.gmra.mxu0 %v181_v36  ;;  %v218_v19 = vsub.f32 %v143_v14, %v143_v14 }
  0x8f   :  { %355 = vmatmul.f32.gmra.mxu2 %v186_v30  ;;  %v219_v23 = vand.u32 4294901760, %v218_v19 }
  0x91   :  { %418 = vmatmul.f32.gmra.mxu3 %v187_v37  ;;  %v220_v25 = vsub.f32 %v218_v19, %v219_v23 }
  0x93   :  { %v221_v28 = vand.u32 4294901760, %v220_v25 }
  0x94   :  { %4975 = vmatmul.msk.f32.gmra.mxu1 %vm123_vm0, %v5423_v31 }
  0x95   :  { %190 = vmatmul.f32.gmra.mxu0 %v189_v46 }
  0x97   :  { %360 = vmatmul.f32.gmra.mxu2 %v194_v42 }
  0x99   :  { %424 = vmatmul.f32.gmra.mxu3 %v195_v48 }
  0x9c   :  { %4976 = vmatmul.msk.f32.gmra.mxu1 %vm123_vm0, %v5450_v44 }
  0x9d   :  { %198 = vmatmul.f32.gmra.mxu0 %v197_v54 }
  0x9f   :  { %365 = vmatmul.f32.gmra.mxu2 %v202_v51 }
  0xa1   :  { %430 = vmatmul.f32.gmra.mxu3 %v203_v55 }
  0xa4   :  { %4977 = vmatmul.msk.f32.gmra.mxu1 %vm123_vm0, %v5465_v52 }
  0xa5   :  { %206 = vmatmul.f32.gmra.mxu0 %v205_v8 }
  0xa7   :  { %370 = vmatmul.f32.gmra.mxu2 %v210_v2  ;;  %v5559_v2 = vsub.f32 1.0, %v5556_v62 }
  0xa9   :  { %436 = vmatmul.f32.gmra.mxu3 %v211_v9 }
  0xac   :  { %4978 = vmatmul.msk.f32.gmra.mxu1 %vm123_vm0, %v4971_v7 }
  0xad   :  { %214 = vmatmul.f32.gmra.mxu0 %v213_v21 }
  0xaf   :  { %375 = vmatmul.f32.gmra.mxu2 %v218_v19 }
  0xb1   :  { %442 = vmatmul.f32.gmra.mxu3 %v219_v23 }
  0xb4   :  { %4986 = vmatmul.msk.f32.vlgmr.msrb.gmra.mxu1 %vm123_vm0, %v5384_v12 }
  0xb5   :  { %222 = vmatmul.f32.gmra.mxu0 %v221_v28 }
  0xb7   :  { %598 = vmatmul.f32.vlgmr.msrb.gmra.mxu2 %v597_v29 }
  0xb8   :  { %715 = vmatpush.msrb.mxu2 %v5349_v59 }
  0xb9   :  { %639 = vmatmul.f32.vlgmr.msrb.gmra.mxu3 %v593_v13 }
  0xba   :  { %719 = vmatpush.msrb.mxu2 %v5368_v3  ;;  %746 = vmatpush.msrb.mxu3 %v5339_v57 }
  0xbc   :  { %4987 = vmatmul.msk.f32.gmra.mxu1 %vm123_vm0, %v5408_v22  ;;  %723 = vmatpush.msrb.mxu2 %v5397_v17 }
  0xbd   :  { %4979 = vmatmul.msk.f32.vlgmr.msrb.gmra.mxu0 %vm123_vm0, %v5384_v12  ;;  %748 = vmatpush.msrb.mxu3 %v5361_v63 }
  0xbe   :  { %727 = vmatpush.msrb.mxu2 %v5442_v40 }
  0xbf   :  { %669 = vmatmul.f32.vlgmr.msra.gmra.mxu2 %v594_v20  ;;  %750 = vmatpush.msrb.mxu3 %v5381_v10 }
  0xc1   :  { %696 = vmatmul.f32.vlgmr.msra.gmra.mxu3 %v595_v24 }
  0xc2   :  { %752 = vmatpush.msrb.mxu3 %v5428_v35 }
  0xc4   :  { %4988 = vmatmul.msk.f32.gmra.mxu1 %vm123_vm0, %v5401_v18 }
  0xc5   :  { %4980 = vmatmul.msk.f32.gmra.mxu0 %vm123_vm0, %v5408_v22 }
  0xc7   :  { %729 = vmatmul.f32.vlgmr.msrb.gmra.mxu2 %v593_v13 }
  0xc9   :  { %754 = vmatmul.f32.vlgmr.msrb.gmra.mxu3 %v593_v13 }
  0xcc   :  { %4989 = vmatmul.msk.f32.gmra.mxu1 %vm123_vm0, %v5423_v31 }
  0xcd   :  { %4981 = vmatmul.msk.f32.gmra.mxu0 %vm123_vm0, %v5401_v18 }
  0xd4   :  { %4990 = vmatmul.msk.f32.gmra.mxu1 %vm123_vm0, %v5450_v44 }
  0xd5   :  { %4982 = vmatmul.msk.f32.gmra.mxu0 %vm123_vm0, %v5423_v31 }
  0xdc   :  { %4991 = vmatmul.msk.f32.gmra.mxu1 %vm123_vm0, %v5465_v52 }
  0xdd   :  { %4983 = vmatmul.msk.f32.gmra.mxu0 %vm123_vm0, %v5450_v44 }
  0xe4   :  { %4992 = vmatmul.msk.f32.gmra.mxu1 %vm123_vm0, %v4971_v7 }
  0xe5   :  { %4984 = vmatmul.msk.f32.gmra.mxu0 %vm123_vm0, %v5465_v52 }
  0xed   :  { %4985 = vmatmul.msk.f32.gmra.mxu0 %vm123_vm0, %v4971_v7  ;;  %v56_v7 = vld [vmem:[%s6461_s5] sm:$0xff] }
  0xee   :  { %v5568_v8 = vand.u32 4294901760, %v56_v7 }
  0xf0   :  { %v5571_v9 = vsub.f32 %v56_v7, %v5568_v8  ;;  %782 = vmatpush.msra.mxu2 %v5568_v8 }
  0xf2   :  { %v5575_v13 = vand.u32 4294901760, %v5571_v9  ;;  %835 = vmatpush.msrb.mxu2 %v5571_v9 }
  0xf4   :  { %v810_v14 = vsub.f32 %v5571_v9, %v5575_v13 }
  0xf6   :  { %v5580_v16 = vand.u32 4294901760, %v810_v14 }
  0xf8   :  { %812 = vmatpush.msra.mxu3 %v5580_v16 }
  0xfa   :  { %858 = vmatpush.msrb.mxu3 %v5568_v8 }
 0x102   :  { %v5520_v12 = vpop.f32.mrf.mxu2 }
 0x104   :  { %v5522_v18 = vpop.f32.mrf.mxu3 }
 0x10a   :  { %v5524_v22 = vpop.f32.mrf.mxu2 }
 0x10c   :  { %v5526_v30 = vpop.f32.mrf.mxu3 }
 0x112   :  { %v5528_v31 = vpop.f32.mrf.mxu2 }
 0x113   :  { %6482 = vst [vmem:[#allocation6_spill] sm:$0xff] %v5528_v31 }
 0x114   :  { %v5530_v32 = vpop.f32.mrf.mxu3 }
 0x115   :  { %6483 = vst [vmem:[#allocation7_spill] sm:$0xff] %v5530_v32 }
 0x11a   :  { %v5532_v33 = vpop.f32.mrf.mxu2 }
 0x11b   :  { %6484 = vst [vmem:[#allocation8_spill] sm:$0xff] %v5532_v33 }
 0x11c   :  { %v5534_v34 = vpop.f32.mrf.mxu3 }
 0x11d   :  { %6485 = vst [vmem:[#allocation9_spill] sm:$0xff] %v5534_v34 }
 0x122   :  { %v5536_v36 = vpop.f32.mrf.mxu2 }
 0x123   :  { %6486 = vst [vmem:[#allocation10_spill] sm:$0xff] %v5536_v36 }
 0x124   :  { %v5538_v37 = vpop.f32.mrf.mxu3 }
 0x125   :  { %6487 = vst [vmem:[#allocation11_spill] sm:$0xff] %v5538_v37 }
 0x12a   :  { %v5540_v38 = vpop.f32.mrf.mxu2 }
 0x12b   :  { %6488 = vst [vmem:[#allocation12_spill] sm:$0xff] %v5540_v38 }
 0x12c   :  { %v5542_v41 = vpop.f32.mrf.mxu3 }
 0x12d   :  { %6489 = vst [vmem:[#allocation13_spill] sm:$0xff] %v5542_v41 }
 0x132   :  { %v5544_v42 = vpop.f32.mrf.mxu2 }
 0x133   :  { %6490 = vst [vmem:[#allocation14_spill] sm:$0xff] %v5544_v42 }
 0x134   :  { %v5546_v43 = vpop.f32.mrf.mxu3 }
 0x135   :  { %6491 = vst [vmem:[#allocation15_spill] sm:$0xff] %v5546_v43 }
 0x13a   :  { %v599_v44 = vpop.f32.mrf.mxu2 }
 0x13c   :  { %v640_v46 = vpop.f32.mrf.mxu3 }
 0x13d   :  { %v641_v48 = vadd.f32 %v640_v46, %v599_v44 }
 0x142   :  { %v670_v47 = vpop.f32.mrf.mxu2 }
 0x143   :  { %v671_v50 = vadd.f32 %v670_v47, %v641_v48  ;;  %v284_v47 = vpop.f32.mrf.mxu1 }
 0x144   :  { %v697_v49 = vpop.f32.mrf.mxu3 }
 0x145   :  { %v698_v51 = vadd.f32 %v697_v49, %v671_v50 }
 0x14a   :  { %v730_v52 = vpop.f32.mrf.mxu2 }
 0x14b   :  { %v731_v53 = vadd.f32 %v730_v52, %v698_v51  ;;  %v5610_v49 = vpop.f32.mrf.mxu1 }
 0x14c   :  { %v755_v54 = vpop.f32.mrf.mxu3 }
 0x14d   :  { %v5548_v55 = vadd.f32 %v755_v54, %v731_v53 }
 0x14f   :  { %v758_v56 = vmul.f32 1.442695, %v5548_v55  ;;  %954 = vrot.lane.b32.xlu0 %v5548_v55, %s5183_s3 }
 0x151   :  { %5050 = vpow2.f32 %v758_v56 }
 0x153   :  { %v5614_v51 = vpop.f32.mrf.mxu1 }
 0x154   :  { %6493 = vst [vmem:[#allocation17_spill] sm:$0xff] %v5614_v51 }
 0x157   :  { %v5051_v4 = vpop.eup %5050  ;;  %984 = vperm.xlu0 %5022, %v5559_v2  }
 0x158   :  { %761 = vrot.lane.b32.xlu1 %v5051_v4, %s5184_s18 }
 0x15b   :  { %v5618_v53 = vpop.f32.mrf.mxu1 }
 0x15c   :  { %6495 = vst [vmem:[#allocation19_spill] sm:$0xff] %v5618_v53 }
 0x15f   :  { %970 = vrot.lane.b32.xlu0 %v5476_v60, %s5184_s18 }
 0x163   :  { %v5622_v4 = vpop.f32.mrf.mxu1 }
 0x164   :  { %6497 = vst [vmem:[#allocation21_spill] sm:$0xff] %v5622_v4  ;;  %v6471_v4 = vmov 1  }
 0x165   :  { %5026 = vset.pattern.permute.xlu2 %v6471_v4  ;;  %5025 = vset.pattern.permute.xlu0 %v6471_v4 }
 0x1c1   :  { %v5584_v19 = vpop.permute.xlu0 %954 }
 0x1c9   :  { %v985_v20 = vpop.permute.xlu0 %984 }
 0x1ca   :  { %v987_v21 = vmul.f32 %v985_v20, %v5476_v60  ;;  %v762_v23 = vpop.permute.xlu1 %761  ;;  %v175_v60 = vpop.f32.mrf.mxu0 }
 0x1cb   :  { %v764_v24 = vsel %vm763_vm9, %v762_v23, 0  ;;  %v913_v25 = vsel %vm763_vm9, %v762_v23, 0.0  ;;  %v5631_v23 = vpop.f32.mrf.mxu1 }
 0x1cc   :  { %v783_v26 = vand.u32 4294901760, %v764_v24  ;;  %989 = vrot.lane.b32.xlu0 %v987_v21, %s5184_s18  ;;  %914 = vadd.xlane.f32.xlu2 %v913_v25  ;;  %v5629_v21 = vld [vmem:[%s6463_s7] ss:$0 sm:$0xff]  ;;  %6500 = vst [vmem:[#allocation24_spill] sm:$0xff] %v5631_v23 }
 0x1cd   :  { %6499 = vst [vmem:[#allocation23_spill] sm:$0xff] %v5629_v21 }
 0x1ce   :  { %v784_v28 = vsub.f32 %v764_v24, %v783_v26  ;;  %814 = vmatmul.f32.vlgmr.msra.gmra.mxu3 %v783_v26 }
 0x1cf   :  { %906 = vmatpush.msra.mxu3 %v5568_v8 }
 0x1d0   :  { %v785_v29 = vand.u32 4294901760, %v784_v28 }
 0x1d2   :  { %v786_v44 = vsub.f32 %v784_v28, %v785_v29  ;;  %v5608_v48 = vpop.f32.mrf.mxu0 }
 0x1d3   :  { %v5636_v43 = vpop.f32.mrf.mxu1 }
 0x1d4   :  { %v787_v46 = vand.u32 4294901760, %v786_v44  ;;  %6502 = vst [vmem:[#allocation26_spill] sm:$0xff] %v5636_v43 }
 0x1d6   :  { %788 = vmatmul.f32.vlgmr.msra.gmra.mxu2 %v787_v46  ;;  %862 = vmatmul.f32.vlgmr.msrb.gmra.mxu3 %v785_v29 }
 0x1d7   :  { %884 = vmatpush.msra.mxu2 %v5575_v13  ;;  %1044 = vmatpush.msrb.mxu3 %v5355_v61 }
 0x1d9   :  { %1050 = vmatpush.msrb.mxu3 %v5374_v6 }
 0x1da   :  { %v5612_v50 = vpop.f32.mrf.mxu0 }
 0x1db   :  { %1056 = vmatpush.msrb.mxu3 %v5416_v27  ;;  %6492 = vst [vmem:[#allocation16_spill] sm:$0xff] %v5612_v50 }
 0x1dd   :  { %1062 = vmatpush.msrb.mxu3 %v5452_v45 }
 0x1de   :  { %838 = vmatmul.f32.vlgmr.msrb.gmra.mxu2 %v784_v28  ;;  %908 = vmatmul.f32.vlgmr.msra.gmra.mxu3 %v783_v26 }
 0x1df   :  { %1011 = vmatpush.msrb.mxu2 %v5339_v57  ;;  %1171 = vmatpush.msra.mxu3 %v5339_v57 }
 0x1e1   :  { %1013 = vmatpush.msrb.mxu2 %v5361_v63  ;;  %1173 = vmatpush.msra.mxu3 %v5361_v63 }
 0x1e2   :  { %v5616_v52 = vpop.f32.mrf.mxu0 }
 0x1e3   :  { %1015 = vmatpush.msrb.mxu2 %v5381_v10  ;;  %1175 = vmatpush.msra.mxu3 %v5381_v10  ;;  %6494 = vst [vmem:[#allocation18_spill] sm:$0xff] %v5616_v52 }
 0x1e5   :  { %1017 = vmatpush.msrb.mxu2 %v5428_v35  ;;  %1177 = vmatpush.msra.mxu3 %v5428_v35 }
 0x1e6   :  { %886 = vmatmul.f32.vlgmr.msra.gmra.mxu2 %v783_v26  ;;  %v176_v26 = vadd.f32 %v5629_v21, %v175_v60 }
 0x1e7   :  { %1140 = vmatpush.msra.mxu2 %v5349_v59 }
 0x1e8   :  { %v285_v44 = vadd.f32 %v284_v47, %v176_v26 }
 0x1e9   :  { %1144 = vmatpush.msra.mxu2 %v5368_v3 }
 0x1ea   :  { %v5620_v54 = vpop.f32.mrf.mxu0  ;;  %v347_v42 = vadd.f32 %v5520_v12, %v285_v44  ;;  %v541_v12 = vpop.f32.mrf.mxu1 }
 0x1eb   :  { %1148 = vmatpush.msra.mxu2 %v5397_v17  ;;  %6496 = vst [vmem:[#allocation20_spill] sm:$0xff] %v5620_v54 }
 0x1ec   :  { %v408_v37 = vadd.f32 %v5522_v18, %v347_v42 }
 0x1ed   :  { %1152 = vmatpush.msra.mxu2 %v5442_v40 }
 0x1f2   :  { %v5624_v7 = vpop.f32.mrf.mxu0 }
 0x1f3   :  { %6498 = vst [vmem:[#allocation22_spill] sm:$0xff] %v5624_v7 }
 0x1fa   :  { %v5634_v28 = vpop.f32.mrf.mxu0 }
 0x1fb   :  { %6501 = vst [vmem:[#allocation25_spill] sm:$0xff] %v5634_v28 }
 0x202   :  { %v488_v23 = vpop.f32.mrf.mxu0 }
 0x23f   :  { %v915_v56 = vpop.xlane.xlu2 %914 }
 0x240   :  { %5052 = vrcp.f32 %v915_v56  ;;  %v927_v7 = vand.u32 2147483648, %v915_v56  ;;  %vm921_vm11 = vweird.f32 %v915_v56  ;;  %v925_v60 = vand.u32 2147483647, %v915_v56 }
 0x242   :  { %vm926_vm13 = vcmp.eq.f32.partialorder %v925_v60, 8.507059e+37 }
 0x246   :  { %v5053_v14 = vpop.eup %5052 }
 0x247   :  { %v917_v25 = vmul.f32 %v5053_v14, %v915_v56  ;;  %vm922_vm10 = vweird.f32 %v5053_v14 }
 0x248   :  { %vm923_vm12 = vmor %vm921_vm11, %vm922_vm10 }
 0x249   :  { %v918_v29 = vsub.f32 1.0, %v917_v25  ;;  %v489_v25 = vadd.f32 %v488_v23, %v408_v37 }
 0x24b   :  { %v919_v0 = vmul.f32 %v5053_v14, %v918_v29 }
 0x24d   :  { %v920_v38 = vadd.f32 %v5053_v14, %v919_v0  ;;  %v542_v0 = vadd.f32 %v541_v12, %v489_v25 }
 0x24f   :  { %v924_v29 = vsel %vm923_vm12, %v5053_v14, %v920_v38 }
 0x251   :  { %v815_v20 = vpop.f32.mrf.mxu3 }
 0x259   :  { %v789_v24 = vpop.f32.mrf.mxu2  ;;  %v863_v46 = vpop.f32.mrf.mxu3 }
 0x25a   :  { %v816_v5 = vadd.f32 %v815_v20, %v789_v24  ;;  %v928_v20 = vor.u32 1.1754944e-38, %v927_v7 }
 0x261   :  { %v839_v11 = vpop.f32.mrf.mxu2  ;;  %v909_v24 = vpop.f32.mrf.mxu3 }
 0x262   :  { %v840_v41 = vadd.f32 %v839_v11, %v816_v5  ;;  %v929_v5 = vsel %vm926_vm13, %v928_v20, %v924_v29 }
 0x264   :  { %v864_v28 = vadd.f32 %v863_v46, %v840_v41 }
 0x269   :  { %v887_v47 = vpop.f32.mrf.mxu2 }
 0x26a   :  { %v888_v26 = vadd.f32 %v887_v47, %v864_v28 }
 0x26c   :  { %v910_v43 = vadd.f32 %v909_v24, %v888_v26  ;;  %v971_v26 = vpop.permute.xlu0 %970 }
 0x26e   :  { %v931_v11 = vmul.f32 %v929_v5, %v910_v43 }
 0x270   :  { %v932_v44 = vadd.f32 %v931_v11, %v542_v0 }
 0x272   :  { %v933_v36 = vadd.f32 %v932_v44, %v5548_v55 }
 0x274   :  { %v4993_v18 = vmul.f32 -1.442695, %v933_v36 }
 0x276   :  { %5054 = vpow2.f32 %v4993_v18 }
 0x27c   :  { %v5055_v42 = vpop.eup %5054 }
 0x27d   :  { %v937_v41 = vadd.f32 1.0, %v5055_v42 }
 0x27f   :  { %5056 = vrcp.f32 %v937_v41  ;;  %v949_v38 = vand.u32 2147483648, %v937_v41  ;;  %v947_v14 = vand.u32 2147483647, %v937_v41  ;;  %vm943_vm15 = vweird.f32 %v937_v41 }
 0x281   :  { %v950_v46 = vor.u32 1.1754944e-38, %v949_v38  ;;  %vm948_vm1 = vcmp.eq.f32.partialorder %v947_v14, 8.507059e+37 }
 0x285   :  { %v5057_v56 = vpop.eup %5056 }
 0x286   :  { %v939_v37 = vmul.f32 %v5057_v56, %v937_v41  ;;  %vm944_vm14 = vweird.f32 %v5057_v56  ;;  %v53_v41 = vld [vmem:[%s6460_s4 + $0x28] sm:$0xff] }
 0x287   :  { %vm945_vm0 = vmor %vm943_vm15, %vm944_vm14 }
 0x288   :  { %v940_v23 = vsub.f32 1.0, %v939_v37 }
 0x28a   :  { %v941_v7 = vmul.f32 %v5057_v56, %v940_v23  ;;  %v51_v23 = vld [vmem:[%s6460_s4 + $0x18] sm:$0xff] }
 0x28c   :  { %v942_v28 = vadd.f32 %v5057_v56, %v941_v7  ;;  %v5670_v7 = vand.u32 4294901760, %v51_v23 }
 0x28e   :  { %v946_v43 = vsel %vm945_vm0, %v5057_v56, %v942_v28  ;;  %v5658_v56 = vand.u32 4294901760, %v53_v41  ;;  %v49_v28 = vld [vmem:[%s6460_s4 + $0x8] sm:$0xff] }
 0x28f   :  { %v951_v60 = vsel %vm948_vm1, %v950_v46, %v946_v43 }
 0x290   :  { %v957_v36 = vmul.f32 %v5584_v19, %v951_v60  ;;  %v964_v20 = vsub.f32 1.0, %v951_v60  ;;  %v973_v12 = vmul.f32 %v971_v26, %v951_v60  ;;  %v990_v19 = vpop.permute.xlu0 %989  ;;  %v5673_v14 = vsub.f32 %v53_v41, %v5658_v56 }
 0x291   :  { %v5684_v60 = vand.u32 4294901760, %v49_v28 }
 0x292   :  { %959 = vrot.lane.b32.xlu1 %v957_v36, %s5183_s3  ;;  %v5682_v43 = vand.u32 4294901760, %v5673_v14  ;;  %v5687_v36 = vsub.f32 %v51_v23, %v5670_v7 }
 0x293   :  { %v5698_v26 = vsub.f32 %v49_v28, %v5684_v60 }
 0x304   :  { %v960_v55 = vpop.permute.xlu1 %959 }
 0x305   :  { %v962_v47 = vadd.f32 %v960_v55, %v932_v44  ;;  %v55_v44 = vld [vmem:[%s6460_s4 + $0x38] sm:$0xff] }
 0x306   :  { %v5652_v42 = vand.u32 4294901760, %v55_v44 }
 0x307   :  { %5058 = vtanh.f32 %v962_v47  ;;  %v1233_v47 = vsub.f32 %v5673_v14, %v5682_v43 }
 0x308   :  { %1196 = vmatpush.msrb.mxu0 %v5652_v42  ;;  %v5661_v37 = vsub.f32 %v55_v44, %v5652_v42 }
 0x30a   :  { %1198 = vmatpush.msrb.mxu0 %v5658_v56  ;;  %v5668_v38 = vand.u32 4294901760, %v5661_v37 }
 0x30c   :  { %v1227_v46 = vsub.f32 %v5661_v37, %v5668_v38  ;;  %1200 = vmatpush.msrb.mxu0 %v5670_v7 }
 0x30d   :  { %v5059_v25 = vpop.eup %5058 }
 0x30e   :  { %966 = vrot.lane.b32.xlu1 %v5059_v25, %s5185_s22  ;;  %v5689_v55 = vand.u32 4294901760, %v1227_v46  ;;  %1202 = vmatpush.msrb.mxu0 %v5684_v60  ;;  %v5695_v25 = vand.u32 4294901760, %v5687_v36 }
 0x310   :  { %1229 = vmatpush.msrb.mxu1 %v5689_v55 }
 0x316   :  { %977 = vperm.xlu1 %5023, %v5556_v62  }
 0x380   :  { %v967_v29 = vpop.permute.xlu1 %966 }
 0x381   :  { %v969_v24 = vmul.f32 %v967_v29, %v964_v20  ;;  %v5701_v29 = vand.u32 4294901760, %v1233_v47  ;;  %v1239_v20 = vsub.f32 %v5687_v36, %v5695_v25  ;;  %v5748_v47 = vpop.f32.mrf.mxu0 }
 0x383   :  { %v974_v5 = vadd.f32 %v973_v12, %v969_v24  ;;  %v5706_v24 = vand.u32 4294901760, %v5698_v26  ;;  %1235 = vmatpush.msrb.mxu1 %v5701_v29  ;;  %v5709_v12 = vand.u32 4294901760, %v1239_v20  ;;  %v5750_v20 = vpop.f32.mrf.mxu1 }
 0x385   :  { %1241 = vmatpush.msrb.mxu1 %v5709_v12 }
 0x388   :  { %v978_v0 = vpop.permute.xlu1 %977 }
 0x389   :  { %v980_v11 = vmul.f32 %v978_v0, %v974_v5  ;;  %v1245_v5 = vsub.f32 %v5698_v26, %v5706_v24 }
 0x38b   :  { %v5645_v18 = vadd.f32 %v990_v19, %v980_v11  ;;  %v5714_v0 = vand.u32 4294901760, %v1245_v5  ;;  %v5752_v5 = vpop.f32.mrf.mxu0 }
 0x38c   :  { %6504 = vst [vmem:[#allocation28_spill] sm:$0xff] %v5752_v5 }
 0x38d   :  { %994 = vrot.lane.b32.xlu1 %v5645_v18, %s5185_s22  ;;  %6503 = vst [vmem:[#allocation27_spill] sm:$0xff] %v5714_v0  ;;  %1247 = vmatpush.msrb.mxu1 %v5714_v0 }
 0x3ff   :  { %v995_v11 = vpop.permute.xlu1 %994 }
 0x400   :  { %v996_v19 = vsel %vm569_vm7, %v995_v11, 0  ;;  %v5754_v11 = vpop.f32.mrf.mxu1 }
 0x401   :  { %v1018_v44 = vand.u32 4294901760, %v996_v19  ;;  %6505 = vst [vmem:[#allocation29_spill] sm:$0xff] %v5754_v11 }
 0x403   :  { %v1019_v41 = vsub.f32 %v996_v19, %v1018_v44  ;;  %1064 = vmatmul.f32.vlgmr.msrb.gmra.mxu3 %v1018_v44  ;;  %v5756_v19 = vpop.f32.mrf.mxu0 }
 0x404   :  { %1296 = vmatpush.msrb.mxu3 %v5652_v42  ;;  %6506 = vst [vmem:[#allocation30_spill] sm:$0xff] %v5756_v19 }
 0x405   :  { %1094 = vmatmul.f32.vlgmr.msra.gmra.mxu0 %v1019_v41  ;;  %v1020_v23 = vand.u32 4294901760, %v1019_v41 }
 0x406   :  { %1298 = vmatpush.msrb.mxu3 %v5658_v56  ;;  %1325 = vmatpush.msra.mxu0 %v5668_v38 }
 0x407   :  { %1121 = vmatmul.f32.vlgmr.msra.gmra.mxu1 %v1020_v23  ;;  %v1021_v28 = vsub.f32 %v1019_v41, %v1020_v23 }
 0x408   :  { %1300 = vmatpush.msrb.mxu3 %v5670_v7  ;;  %1329 = vmatpush.msra.mxu0 %v5682_v43 }
 0x409   :  { %v1022_v46 = vand.u32 4294901760, %v1021_v28  ;;  %1356 = vmatpush.msra.mxu1 %v5652_v42 }
 0x40a   :  { %1302 = vmatpush.msrb.mxu3 %v5684_v60  ;;  %1333 = vmatpush.msra.mxu0 %v5695_v25 }
 0x40b   :  { %1023 = vmatmul.f32.vlgmr.msrb.gmra.mxu2 %v1022_v46  ;;  %1179 = vmatmul.f32.vlgmr.msra.gmra.mxu3 %v1018_v44 }
 0x40c   :  { %1358 = vmatpush.msra.mxu1 %v5658_v56  ;;  %1267 = vmatpush.msrb.mxu2 %v5661_v37 }
 0x40d   :  { %1208 = vmatmul.f32.vlgmr.msrb.gmra.mxu0 %v1022_v46  ;;  %1453 = vmatpush.msra.mxu3 %v5580_v16 }
 0x40e   :  { %1337 = vmatpush.msra.mxu0 %v5706_v24  ;;  %1360 = vmatpush.msra.mxu1 %v5670_v7 }
 0x40f   :  { %1249 = vmatmul.f32.vlgmr.msrb.gmra.mxu1 %v1018_v44  ;;  %1270 = vmatpush.msrb.mxu2 %v5673_v14 }
 0x410   :  { %1362 = vmatpush.msra.mxu1 %v5684_v60  ;;  %1476 = vmatpush.msrb.mxu0 %v5571_v9 }
 0x411   :  { %1273 = vmatpush.msrb.mxu2 %v5687_v36 }
 0x412   :  { %1499 = vmatpush.msrb.mxu1 %v5568_v8 }
 0x413   :  { %1154 = vmatmul.f32.vlgmr.msra.gmra.mxu2 %v1018_v44  ;;  %1306 = vmatmul.f32.vlgmr.msrb.gmra.mxu3 %v1020_v23 }
 0x414   :  { %1276 = vmatpush.msrb.mxu2 %v5698_v26  ;;  %1547 = vmatpush.msrb.mxu3 %v5568_v8 }
 0x415   :  { %1339 = vmatmul.f32.vlgmr.msra.gmra.mxu0 %v1018_v44 }
 0x416   :  { %1423 = vmatpush.msra.mxu2 %v5568_v8  ;;  %1642 = vmatpush.msra.mxu0 %v5339_v57 }
 0x417   :  { %1364 = vmatmul.f32.vlgmr.msra.gmra.mxu1 %v1018_v44  ;;  %v5758_v44 = vpop.f32.mrf.mxu1 }
 0x418   :  { %1675 = vmatpush.msra.mxu1 %v5355_v61  ;;  %1644 = vmatpush.msra.mxu0 %v5361_v63  ;;  %6507 = vst [vmem:[#allocation31_spill] sm:$0xff] %v5758_v44 }
 0x41a   :  { %1681 = vmatpush.msra.mxu1 %v5374_v6  ;;  %1646 = vmatpush.msra.mxu0 %v5381_v10 }
 0x41b   :  { %1279 = vmatmul.f32.vlgmr.msrb.gmra.mxu2 %v1019_v41  ;;  %v5760_v41 = vpop.f32.mrf.mxu0 }
 0x41c   :  { %1525 = vmatpush.msrb.mxu2 %v5575_v13  ;;  %1687 = vmatpush.msra.mxu1 %v5416_v27  ;;  %6508 = vst [vmem:[#allocation32_spill] sm:$0xff] %v5760_v41 }
 0x41d   :  { %1648 = vmatpush.msra.mxu0 %v5428_v35 }
 0x41e   :  { %1693 = vmatpush.msra.mxu1 %v5452_v45 }
 0x41f   :  { %v5762_v23 = vpop.f32.mrf.mxu1 }
 0x420   :  { %6509 = vst [vmem:[#allocation33_spill] sm:$0xff] %v5762_v23 }
 0x423   :  { %v5764_v28 = vpop.f32.mrf.mxu0 }
 0x424   :  { %6510 = vst [vmem:[#allocation34_spill] sm:$0xff] %v5764_v28 }
 0x427   :  { %v5766_v46 = vpop.f32.mrf.mxu1 }
 0x428   :  { %6511 = vst [vmem:[#allocation35_spill] sm:$0xff] %v5766_v46 }
 0x42b   :  { %v5770_v54 = vpop.f32.mrf.mxu0 }
 0x42c   :  { %6512 = vst [vmem:[#allocation36_spill] sm:$0xff] %v5770_v54 }
 0x42f   :  { %v5772_v34 = vpop.f32.mrf.mxu1 }
 0x430   :  { %6513 = vst [vmem:[#allocation37_spill] sm:$0xff] %v5772_v34 }
 0x482   :  { %v1095_v53 = vpop.f32.mrf.mxu0 }
 0x484   :  { %v1122_v52 = vpop.f32.mrf.mxu1 }
 0x486   :  { %v1065_v19 = vpop.f32.mrf.mxu3 }
 0x48e   :  { %v1024_v33 = vpop.f32.mrf.mxu2  ;;  %v1180_v5 = vpop.f32.mrf.mxu3 }
 0x48f   :  { %v1066_v44 = vadd.f32 %v1065_v19, %v1024_v33 }
 0x491   :  { %v1096_v41 = vadd.f32 %v1095_v53, %v1066_v44 }
 0x493   :  { %v1123_v23 = vadd.f32 %v1122_v52, %v1096_v41  ;;  %v5807_v41 = vpop.f32.mrf.mxu0 }
 0x494   :  { %6514 = vst [vmem:[#allocation38_spill] sm:$0xff] %v5807_v41 }
 0x496   :  { %v1155_v11 = vpop.f32.mrf.mxu2 }
 0x497   :  { %v1156_v28 = vadd.f32 %v1155_v11, %v1123_v23  ;;  %v5809_v23 = vpop.f32.mrf.mxu1 }
 0x498   :  { %6515 = vst [vmem:[#allocation39_spill] sm:$0xff] %v5809_v23 }
 0x499   :  { %v5774_v46 = vadd.f32 %v1180_v5, %v1156_v28 }
 0x49b   :  { %v1400_v32 = vmul.f32 1.442695, %v5774_v46  ;;  %1595 = vrot.lane.b32.xlu2 %v5774_v46, %s5183_s3 }
 0x49d   :  { %5060 = vpow2.f32 %v1400_v32 }
 0x4a3   :  { %v5061_v4 = vpop.eup %5060  ;;  %1619 = vperm.xlu2 %5026, %v5559_v2  }
 0x4a4   :  { %1403 = vrot.lane.b32.xlu0 %v5061_v4, %s5184_s18 }
 0x516   :  { %v1404_v33 = vpop.permute.xlu0 %1403 }
 0x517   :  { %v1405_v53 = vsel %vm763_vm9, %v1404_v33, 0  ;;  %v1554_v52 = vsel %vm763_vm9, %v1404_v33, 0.0  ;;  %v5811_v33 = vpop.f32.mrf.mxu3 }
 0x518   :  { %v1424_v11 = vand.u32 4294901760, %v1405_v53  ;;  %1555 = vadd.xlane.f32.xlu1 %v1554_v52  ;;  %6516 = vst [vmem:[#allocation40_spill] sm:$0xff] %v5811_v33 }
 0x51a   :  { %v1425_v5 = vsub.f32 %v1405_v53, %v1424_v11  ;;  %1455 = vmatmul.f32.vlgmr.msra.gmra.mxu3 %v1424_v11  ;;  %v5813_v53 = vpop.f32.mrf.mxu2 }
 0x51b   :  { %1742 = vmatpush.msra.mxu3 %v5339_v57  ;;  %6517 = vst [vmem:[#allocation41_spill] sm:$0xff] %v5813_v53 }
 0x51c   :  { %v1426_v19 = vand.u32 4294901760, %v1425_v5  ;;  %1479 = vmatmul.f32.vlgmr.msrb.gmra.mxu0 %v1425_v5 }
 0x51d   :  { %1744 = vmatpush.msra.mxu3 %v5361_v63  ;;  %1771 = vmatpush.msrb.mxu0 %v5349_v59 }
 0x51e   :  { %v1427_v32 = vsub.f32 %v1425_v5, %v1426_v19  ;;  %1503 = vmatmul.f32.vlgmr.msrb.gmra.mxu1 %v1426_v19  ;;  %v184_v5 = vadd.f32 %v5629_v21, %v5608_v48 }
 0x51f   :  { %1746 = vmatpush.msra.mxu3 %v5381_v10  ;;  %1802 = vmatpush.msrb.mxu1 %v5339_v57 }
 0x520   :  { %v1428_v4 = vand.u32 4294901760, %v1427_v32  ;;  %1775 = vmatpush.msrb.mxu0 %v5368_v3  ;;  %v5819_v32 = vpop.f32.mrf.mxu1 }
 0x521   :  { %1748 = vmatpush.msra.mxu3 %v5428_v35  ;;  %1804 = vmatpush.msrb.mxu1 %v5361_v63  ;;  %6519 = vst [vmem:[#allocation43_spill] sm:$0xff] %v5819_v32 }
 0x522   :  { %1429 = vmatmul.f32.vlgmr.msra.gmra.mxu2 %v1428_v4  ;;  %1549 = vmatmul.f32.vlgmr.msrb.gmra.mxu3 %v1424_v11  ;;  %v289_v4 = vadd.f32 %v5610_v49, %v184_v5 }
 0x523   :  { %1713 = vmatpush.msra.mxu2 %v5345_v58  ;;  %1806 = vmatpush.msrb.mxu1 %v5381_v10 }
 0x524   :  { %1860 = vmatpush.msrb.mxu3 %v5689_v55  ;;  %1779 = vmatpush.msrb.mxu0 %v5397_v17  ;;  %v352_v33 = vadd.f32 %v5524_v22, %v289_v4  ;;  %v1596_v4 = vpop.permute.xlu2 %1595 }
 0x525   :  { %1716 = vmatpush.msra.mxu2 %v5365_v1  ;;  %1808 = vmatpush.msrb.mxu1 %v5428_v35 }
 0x526   :  { %1866 = vmatpush.msrb.mxu3 %v5701_v29  ;;  %1783 = vmatpush.msrb.mxu0 %v5442_v40 }
 0x527   :  { %1719 = vmatpush.msra.mxu2 %v5392_v15 }
 0x528   :  { %1872 = vmatpush.msrb.mxu3 %v5709_v12 }
 0x529   :  { %1722 = vmatpush.msra.mxu2 %v5437_v39 }
 0x52a   :  { %1527 = vmatmul.f32.vlgmr.msrb.gmra.mxu2 %v1424_v11  ;;  %1878 = vmatpush.msrb.mxu3 %v5714_v0  ;;  %v5815_v11 = vpop.f32.mrf.mxu0  ;;  %v414_v0 = vadd.f32 %v5526_v30, %v352_v33 }
 0x52b   :  { %1827 = vmatpush.msrb.mxu2 %v5652_v42  ;;  %6518 = vst [vmem:[#allocation42_spill] sm:$0xff] %v5815_v11 }
 0x52c   :  { %v493_v49 = vadd.f32 %v5748_v47, %v414_v0 }
 0x52d   :  { %1829 = vmatpush.msrb.mxu2 %v5658_v56 }
 0x52f   :  { %1831 = vmatpush.msrb.mxu2 %v5670_v7 }
 0x531   :  { %1833 = vmatpush.msrb.mxu2 %v5684_v60 }
 0x58b   :  { %v1556_v44 = vpop.xlane.xlu1 %1555 }
 0x58c   :  { %5062 = vrcp.f32 %v1556_v44  ;;  %v1568_v50 = vand.u32 2147483648, %v1556_v44  ;;  %vm1562_vm3 = vweird.f32 %v1556_v44  ;;  %v1566_v48 = vand.u32 2147483647, %v1556_v44 }
 0x58e   :  { %vm1567_vm5 = vcmp.eq.f32.partialorder %v1566_v48, 8.507059e+37 }
 0x592   :  { %v5063_v28 = vpop.eup %5062 }
 0x593   :  { %v1558_v52 = vmul.f32 %v5063_v28, %v1556_v44  ;;  %vm1563_vm2 = vweird.f32 %v5063_v28 }
 0x594   :  { %vm1564_vm4 = vmor %vm1562_vm3, %vm1563_vm2 }
 0x595   :  { %v1559_v19 = vsub.f32 1.0, %v1558_v52 }
 0x597   :  { %v1560_v41 = vmul.f32 %v5063_v28, %v1559_v19 }
 0x599   :  { %v1480_v31 = vpop.f32.mrf.mxu0  ;;  %v1561_v53 = vadd.f32 %v5063_v28, %v1560_v41 }
 0x59b   :  { %v1504_v11 = vpop.f32.mrf.mxu1  ;;  %v1565_v19 = vsel %vm1564_vm4, %v5063_v28, %v1561_v53 }
 0x59d   :  { %v1456_v34 = vpop.f32.mrf.mxu3 }
 0x5a5   :  { %v1430_v54 = vpop.f32.mrf.mxu2 }
 0x5a6   :  { %v1457_v23 = vadd.f32 %v1456_v34, %v1430_v54  ;;  %v1569_v34 = vor.u32 1.1754944e-38, %v1568_v50  ;;  %v1550_v54 = vpop.f32.mrf.mxu3 }
 0x5a8   :  { %v1481_v51 = vadd.f32 %v1480_v31, %v1457_v23  ;;  %v1570_v22 = vsel %vm1567_vm5, %v1569_v34, %v1565_v19  ;;  %v546_v31 = vadd.f32 %v5750_v20, %v493_v49 }
 0x5aa   :  { %v1505_v52 = vadd.f32 %v1504_v11, %v1481_v51 }
 0x5ad   :  { %v1528_v32 = vpop.f32.mrf.mxu2 }
 0x5ae   :  { %v1529_v5 = vadd.f32 %v1528_v32, %v1505_v52 }
 0x5b0   :  { %v1551_v21 = vadd.f32 %v1550_v54, %v1529_v5 }
 0x5b2   :  { %v1572_v41 = vmul.f32 %v1570_v22, %v1551_v21 }
 0x5b4   :  { %v1573_v23 = vadd.f32 %v1572_v41, %v546_v31  ;;  %v1620_v31 = vpop.permute.xlu2 %1619 }
 0x5b6   :  { %v1574_v30 = vadd.f32 %v1573_v23, %v5774_v46 }
 0x5b8   :  { %v4996_v33 = vmul.f32 -1.442695, %v1574_v30 }
 0x5ba   :  { %5064 = vpow2.f32 %v4996_v33  ;;  %v1622_v33 = vmul.f32 %v1620_v31, %v5645_v18 }
 0x5c0   :  { %v5065_v51 = vpop.eup %5064 }
 0x5c1   :  { %v1578_v44 = vadd.f32 1.0, %v5065_v51 }
 0x5c3   :  { %5066 = vrcp.f32 %v1578_v44  ;;  %v1590_v28 = vand.u32 2147483648, %v1578_v44  ;;  %v1588_v53 = vand.u32 2147483647, %v1578_v44  ;;  %vm1584_vm8 = vweird.f32 %v1578_v44 }
 0x5c5   :  { %v1591_v20 = vor.u32 1.1754944e-38, %v1590_v28  ;;  %vm1589_vm11 = vcmp.eq.f32.partialorder %v1588_v53, 8.507059e+37 }
 0x5c9   :  { %v5067_v11 = vpop.eup %5066 }
 0x5ca   :  { %v1580_v0 = vmul.f32 %v5067_v11, %v1578_v44  ;;  %vm1585_vm6 = vweird.f32 %v5067_v11 }
 0x5cb   :  { %vm1586_vm10 = vmor %vm1584_vm8, %vm1585_vm6 }
 0x5cc   :  { %v1581_v47 = vsub.f32 1.0, %v1580_v0 }
 0x5ce   :  { %v1582_v50 = vmul.f32 %v5067_v11, %v1581_v47 }
 0x5d0   :  { %v1583_v32 = vadd.f32 %v5067_v11, %v1582_v50  ;;  %v6476_v50 = vmov 2  }
 0x5d1   :  { %5028 = vset.pattern.permute.xlu1 %v6476_v50 }
 0x5d2   :  { %v1587_v21 = vsel %vm1586_vm10, %v5067_v11, %v1583_v32 }
 0x5d3   :  { %v1592_v46 = vsel %vm1589_vm11, %v1591_v20, %v1587_v21 }
 0x5d4   :  { %v1598_v48 = vmul.f32 %v1596_v4, %v1592_v46  ;;  %v1605_v34 = vsub.f32 1.0, %v1592_v46  ;;  %v1611_v22 = vmul.f32 %v1592_v46, %v5645_v18 }
 0x5d6   :  { %1600 = vrot.lane.b32.xlu0 %v1598_v48, %s5183_s3 }
 0x648   :  { %v1601_v52 = vpop.permute.xlu0 %1600 }
 0x649   :  { %v1603_v49 = vadd.f32 %v1601_v52, %v1573_v23 }
 0x64b   :  { %5068 = vtanh.f32 %v1603_v49 }
 0x651   :  { %v5069_v5 = vpop.eup %5068 }
 0x652   :  { %1607 = vrot.lane.b32.xlu0 %v5069_v5, %s5185_s22 }
 0x65a   :  { %1614 = vperm.xlu0 %5025, %v5556_v62  }
 0x662   :  { %5027 = vset.pattern.permute.xlu0 %v6476_v50 }
 0x6c4   :  { %v1608_v19 = vpop.permute.xlu0 %1607 }
 0x6c5   :  { %v1610_v54 = vmul.f32 %v1608_v19, %v1605_v34 }
 0x6c7   :  { %v1612_v41 = vadd.f32 %v1611_v22, %v1610_v54 }
 0x6cc   :  { %v1615_v30 = vpop.permute.xlu0 %1614 }
 0x6cd   :  { %v1617_v51 = vmul.f32 %v1615_v30, %v1612_v41 }
 0x6cf   :  { %v5832_v44 = vadd.f32 %v1622_v33, %v1617_v51 }
 0x6d1   :  { %1625 = vrot.lane.b32.xlu2 %v5832_v44, %s5185_s22 }
 0x72b   :  { %v1626_v23 = vpop.permute.xlu2 %1625 }
 0x72c   :  { %v1627_v11 = vsel %vm569_vm7, %v1626_v23, 0 }
 0x72d   :  { %v1649_v62 = vand.u32 4294901760, %v1627_v11 }
 0x72f   :  { %v1650_v0 = vsub.f32 %v1627_v11, %v1649_v62  ;;  %1695 = vmatmul.f32.vlgmr.msra.gmra.mxu1 %v1649_v62 }
 0x730   :  { %1927 = vmatpush.msra.mxu1 %v5652_v42 }
 0x731   :  { %1725 = vmatmul.f32.vlgmr.msra.gmra.mxu2 %v1650_v0  ;;  %v1651_v47 = vand.u32 4294901760, %v1650_v0 }
 0x732   :  { %1929 = vmatpush.msra.mxu1 %v5658_v56  ;;  %1956 = vmatpush.msra.mxu2 %v5668_v38 }
 0x733   :  { %1752 = vmatmul.f32.vlgmr.msra.gmra.mxu3 %v1651_v47  ;;  %v1652_v18 = vsub.f32 %v1650_v0, %v1651_v47 }
 0x734   :  { %1931 = vmatpush.msra.mxu1 %v5670_v7  ;;  %1960 = vmatpush.msra.mxu2 %v5682_v43 }
 0x735   :  { %v1653_v28 = vand.u32 4294901760, %v1652_v18  ;;  %1987 = vmatpush.msra.mxu3 %v5652_v42  ;;  %v6521_v18 = vld [vmem:[#allocation27_spill] sm:$0xff] }
 0x736   :  { %1933 = vmatpush.msra.mxu1 %v5684_v60  ;;  %1964 = vmatpush.msra.mxu2 %v5695_v25 }
 0x737   :  { %1654 = vmatmul.f32.vlgmr.msra.gmra.mxu0 %v1653_v28  ;;  %1810 = vmatmul.f32.vlgmr.msrb.gmra.mxu1 %v1649_v62 }
 0x738   :  { %1989 = vmatpush.msra.mxu3 %v5658_v56  ;;  %1898 = vmatpush.msra.mxu0 %v5661_v37 }
 0x739   :  { %1839 = vmatmul.f32.vlgmr.msrb.gmra.mxu2 %v1653_v28  ;;  %2077 = vmatpush.msrb.mxu1 %v5580_v16 }
 0x73a   :  { %1968 = vmatpush.msra.mxu2 %v5706_v24  ;;  %1991 = vmatpush.msra.mxu3 %v5670_v7 }
 0x73b   :  { %1880 = vmatmul.f32.vlgmr.msrb.gmra.mxu3 %v1649_v62  ;;  %1901 = vmatpush.msra.mxu0 %v5673_v14 }
 0x73c   :  { %1993 = vmatpush.msra.mxu3 %v5684_v60  ;;  %2100 = vmatpush.msrb.mxu2 %v5571_v9 }
 0x73d   :  { %1904 = vmatpush.msra.mxu0 %v5687_v36 }
 0x73e   :  { %2123 = vmatpush.msrb.mxu3 %v5568_v8 }
 0x73f   :  { %1785 = vmatmul.f32.vlgmr.msrb.gmra.mxu0 %v1649_v62  ;;  %1937 = vmatmul.f32.vlgmr.msra.gmra.mxu1 %v1651_v47 }
 0x740   :  { %1907 = vmatpush.msra.mxu0 %v5698_v26  ;;  %2171 = vmatpush.msra.mxu1 %v5568_v8 }
 0x741   :  { %1970 = vmatmul.f32.vlgmr.msra.gmra.mxu2 %v1649_v62 }
 0x742   :  { %2047 = vmatpush.msrb.mxu0 %v5568_v8  ;;  %2266 = vmatpush.msra.mxu2 %v5339_v57 }
 0x743   :  { %1995 = vmatmul.f32.vlgmr.msra.gmra.mxu3 %v1649_v62 }
 0x744   :  { %2299 = vmatpush.msra.mxu3 %v5355_v61  ;;  %2268 = vmatpush.msra.mxu2 %v5361_v63 }
 0x746   :  { %2305 = vmatpush.msra.mxu3 %v5374_v6  ;;  %2270 = vmatpush.msra.mxu2 %v5381_v10 }
 0x747   :  { %1910 = vmatmul.f32.vlgmr.msra.gmra.mxu0 %v1650_v0 }
 0x748   :  { %2149 = vmatpush.msra.mxu0 %v5575_v13  ;;  %2311 = vmatpush.msra.mxu3 %v5416_v27 }
 0x749   :  { %2272 = vmatpush.msra.mxu2 %v5428_v35 }
 0x74a   :  { %2317 = vmatpush.msra.mxu3 %v5452_v45 }
 0x7ac   :  { %v1696_v53 = vpop.f32.mrf.mxu1 }
 0x7b4   :  { %v1655_v32 = vpop.f32.mrf.mxu0  ;;  %v1726_v20 = vpop.f32.mrf.mxu2 }
 0x7b5   :  { %v1697_v21 = vadd.f32 %v1696_v53, %v1655_v32  ;;  %v1811_v49 = vpop.f32.mrf.mxu1 }
 0x7b6   :  { %v1753_v4 = vpop.f32.mrf.mxu3 }
 0x7b7   :  { %v1727_v46 = vadd.f32 %v1726_v20, %v1697_v21 }
 0x7b9   :  { %v1754_v48 = vadd.f32 %v1753_v4, %v1727_v46  ;;  %v6525_v46 = vld [vmem:[#allocation16_spill] sm:$0xff] }
 0x7bc   :  { %v1786_v52 = vpop.f32.mrf.mxu0  ;;  %v1840_v19 = vpop.f32.mrf.mxu2 }
 0x7bd   :  { %v1787_v5 = vadd.f32 %v1786_v52, %v1754_v48  ;;  %v5904_v32 = vpop.f32.mrf.mxu1  ;;  %v6526_v48 = vld [vmem:[#allocation23_spill] sm:$0xff] }
 0x7be   :  { %v1881_v34 = vpop.f32.mrf.mxu3  ;;  %6522 = vst [vmem:[#allocation27_spill] sm:$0xff] %v5904_v32  ;;  %v192_v52 = vadd.f32 %v6526_v48, %v6525_v46 }
 0x7bf   :  { %v5869_v54 = vadd.f32 %v1811_v49, %v1787_v5  ;;  %v5871_v22 = vadd.f32 %v1881_v34, %v1840_v19  ;;  %v6528_v19 = vld [vmem:[#allocation17_spill] sm:$0xff] }
 0x7c0   :  { %v293_v34 = vadd.f32 %v6528_v19, %v192_v52  ;;  %v6531_v52 = vld [vmem:[#allocation28_spill] sm:$0xff] }
 0x7c1   :  { %6520 = vst [vmem:[#allocation44_spill] sm:$0xff] %v5871_v22  ;;  %v2024_v31 = vmul.f32 1.442695, %v5869_v54  ;;  %2219 = vrot.lane.b32.xlu1 %v5869_v54, %s5183_s3 }
 0x7c3   :  { %5070 = vpow2.f32 %v2024_v31 }
 0x7c4   :  { %v5906_v20 = vpop.f32.mrf.mxu0  ;;  %v5908_v4 = vpop.f32.mrf.mxu2 }
 0x7c5   :  { %6523 = vst [vmem:[#allocation45_spill] sm:$0xff] %v5906_v20 }
 0x7c6   :  { %6524 = vst [vmem:[#allocation46_spill] sm:$0xff] %v5908_v4  ;;  %v5912_v5 = vpop.f32.mrf.mxu3  ;;  %v6530_v4 = vld [vmem:[#allocation7_spill] sm:$0xff] }
 0x7c7   :  { %6527 = vst [vmem:[#allocation16_spill] sm:$0xff] %v5912_v5 }
 0x7c9   :  { %v5071_v41 = vpop.eup %5070  ;;  %2243 = vperm.xlu1 %5028, %v5559_v2  }
 0x7ca   :  { %2027 = vrot.lane.b32.xlu0 %v5071_v41, %s5184_s18 }
 0x83c   :  { %v2028_v30 = vpop.permute.xlu0 %2027 }
 0x83d   :  { %v2029_v33 = vsel %vm763_vm9, %v2028_v30, 0  ;;  %v2178_v51 = vsel %vm763_vm9, %v2028_v30, 0.0 }
 0x83e   :  { %v2048_v23 = vand.u32 4294901760, %v2029_v33  ;;  %2179 = vadd.xlane.f32.xlu2 %v2178_v51 }
 0x840   :  { %v2049_v11 = vsub.f32 %v2029_v33, %v2048_v23  ;;  %2079 = vmatmul.f32.vlgmr.msrb.gmra.mxu1 %v2048_v23 }
 0x841   :  { %2366 = vmatpush.msrb.mxu1 %v5339_v57 }
 0x842   :  { %v2050_v62 = vand.u32 4294901760, %v2049_v11  ;;  %2103 = vmatmul.f32.vlgmr.msrb.gmra.mxu2 %v2049_v11 }
 0x843   :  { %2368 = vmatpush.msrb.mxu1 %v5361_v63  ;;  %2395 = vmatpush.msrb.mxu2 %v5349_v59 }
 0x844   :  { %v2051_v0 = vsub.f32 %v2049_v11, %v2050_v62  ;;  %2127 = vmatmul.f32.vlgmr.msrb.gmra.mxu3 %v2050_v62 }
 0x845   :  { %2370 = vmatpush.msrb.mxu1 %v5381_v10  ;;  %2426 = vmatpush.msrb.mxu3 %v5339_v57 }
 0x846   :  { %v2052_v47 = vand.u32 4294901760, %v2051_v0  ;;  %2399 = vmatpush.msrb.mxu2 %v5368_v3 }
 0x847   :  { %2372 = vmatpush.msrb.mxu1 %v5428_v35  ;;  %2428 = vmatpush.msrb.mxu3 %v5361_v63 }
 0x848   :  { %2053 = vmatmul.f32.vlgmr.msrb.gmra.mxu0 %v2052_v47  ;;  %2173 = vmatmul.f32.vlgmr.msra.gmra.mxu1 %v2048_v23 }
 0x849   :  { %2337 = vmatpush.msrb.mxu0 %v5345_v58  ;;  %2430 = vmatpush.msrb.mxu3 %v5381_v10 }
 0x84a   :  { %2484 = vmatpush.msra.mxu1 %v5689_v55  ;;  %2403 = vmatpush.msrb.mxu2 %v5397_v17 }
 0x84b   :  { %2340 = vmatpush.msrb.mxu0 %v5365_v1  ;;  %2432 = vmatpush.msrb.mxu3 %v5428_v35 }
 0x84c   :  { %2490 = vmatpush.msra.mxu1 %v5701_v29  ;;  %2407 = vmatpush.msrb.mxu2 %v5442_v40 }
 0x84d   :  { %2343 = vmatpush.msrb.mxu0 %v5392_v15 }
 0x84e   :  { %2496 = vmatpush.msra.mxu1 %v5709_v12 }
 0x84f   :  { %2346 = vmatpush.msrb.mxu0 %v5437_v39 }
 0x850   :  { %2151 = vmatmul.f32.vlgmr.msra.gmra.mxu0 %v2048_v23  ;;  %2502 = vmatpush.msra.mxu1 %v6521_v18  ;;  %v6529_v23 = vld [vmem:[#allocation6_spill] sm:$0xff] }
 0x851   :  { %2451 = vmatpush.msra.mxu0 %v5652_v42  ;;  %v357_v11 = vadd.f32 %v6529_v23, %v293_v34 }
 0x853   :  { %2453 = vmatpush.msra.mxu0 %v5658_v56  ;;  %v420_v32 = vadd.f32 %v6530_v4, %v357_v11 }
 0x855   :  { %2455 = vmatpush.msra.mxu0 %v5670_v7  ;;  %v497_v19 = vadd.f32 %v6531_v52, %v420_v32 }
 0x857   :  { %2457 = vmatpush.msra.mxu0 %v5684_v60 }
 0x8b1   :  { %v2180_v28 = vpop.xlane.xlu2 %2179 }
 0x8b2   :  { %5072 = vrcp.f32 %v2180_v28  ;;  %v2192_v47 = vand.u32 2147483648, %v2180_v28  ;;  %vm2186_vm13 = vweird.f32 %v2180_v28  ;;  %v2190_v46 = vand.u32 2147483647, %v2180_v28 }
 0x8b4   :  { %vm2191_vm15 = vcmp.eq.f32.partialorder %v2190_v46, 8.507059e+37 }
 0x8b8   :  { %v5073_v53 = vpop.eup %5072 }
 0x8b9   :  { %v2182_v21 = vmul.f32 %v5073_v53, %v2180_v28  ;;  %vm2187_vm12 = vweird.f32 %v5073_v53 }
 0x8ba   :  { %vm2188_vm14 = vmor %vm2186_vm13, %vm2187_vm12 }
 0x8bb   :  { %v2183_v49 = vsub.f32 1.0, %v2182_v21 }
 0x8bd   :  { %v2080_v31 = vpop.f32.mrf.mxu1  ;;  %v2184_v30 = vmul.f32 %v5073_v53, %v2183_v49 }
 0x8bf   :  { %v2185_v0 = vadd.f32 %v5073_v53, %v2184_v30 }
 0x8c1   :  { %v2189_v49 = vsel %vm2188_vm14, %v5073_v53, %v2185_v0 }
 0x8c5   :  { %v2054_v41 = vpop.f32.mrf.mxu0  ;;  %v2104_v51 = vpop.f32.mrf.mxu2 }
 0x8c6   :  { %v2081_v33 = vadd.f32 %v2080_v31, %v2054_v41  ;;  %v2193_v31 = vor.u32 1.1754944e-38, %v2192_v47  ;;  %v2174_v41 = vpop.f32.mrf.mxu1 }
 0x8c7   :  { %v2128_v50 = vpop.f32.mrf.mxu3 }
 0x8c8   :  { %v2105_v62 = vadd.f32 %v2104_v51, %v2081_v33  ;;  %v2194_v34 = vsel %vm2191_vm15, %v2193_v31, %v2189_v49  ;;  %v6532_v33 = vld [vmem:[#allocation29_spill] sm:$0xff] }
 0x8c9   :  { %v550_v30 = vadd.f32 %v6532_v33, %v497_v19 }
 0x8ca   :  { %v2129_v21 = vadd.f32 %v2128_v50, %v2105_v62 }
 0x8cd   :  { %v2152_v48 = vpop.f32.mrf.mxu0 }
 0x8ce   :  { %v2153_v5 = vadd.f32 %v2152_v48, %v2129_v21  ;;  %v2220_v48 = vpop.permute.xlu1 %2219 }
 0x8d0   :  { %v2175_v20 = vadd.f32 %v2174_v41, %v2153_v5  ;;  %v5925_v41 = vld [vmem:[%s6457_s1] sm:$0xff] }
 0x8d2   :  { %v2196_v51 = vmul.f32 %v2194_v34, %v2175_v20 }
 0x8d4   :  { %v2197_v23 = vadd.f32 %v2196_v51, %v550_v30 }
 0x8d6   :  { %v2198_v4 = vadd.f32 %v2197_v23, %v5869_v54 }
 0x8d8   :  { %v4998_v11 = vmul.f32 -1.442695, %v2198_v4  ;;  %v2244_v4 = vpop.permute.xlu1 %2243 }
 0x8da   :  { %5074 = vpow2.f32 %v4998_v11 }
 0x8e0   :  { %v5075_v50 = vpop.eup %5074 }
 0x8e1   :  { %v2202_v28 = vadd.f32 1.0, %v5075_v50 }
 0x8e3   :  { %5076 = vrcp.f32 %v2202_v28  ;;  %v2214_v53 = vand.u32 2147483648, %v2202_v28  ;;  %v2212_v5 = vand.u32 2147483647, %v2202_v28  ;;  %vm2208_vm1 = vweird.f32 %v2202_v28 }
 0x8e5   :  { %v2215_v46 = vor.u32 1.1754944e-38, %v2214_v53  ;;  %vm2213_vm3 = vcmp.eq.f32.partialorder %v2212_v5, 8.507059e+37 }
 0x8e9   :  { %v5077_v62 = vpop.eup %5076 }
 0x8ea   :  { %v2204_v32 = vmul.f32 %v5077_v62, %v2202_v28  ;;  %vm2209_vm0 = vweird.f32 %v5077_v62 }
 0x8eb   :  { %vm2210_vm2 = vmor %vm2208_vm1, %vm2209_vm0 }
 0x8ec   :  { %v2205_v21 = vsub.f32 1.0, %v2204_v32 }
 0x8ee   :  { %v2206_v0 = vmul.f32 %v5077_v62, %v2205_v21 }
 0x8f0   :  { %v2207_v47 = vadd.f32 %v5077_v62, %v2206_v0 }
 0x8f2   :  { %v2211_v20 = vsel %vm2210_vm2, %v5077_v62, %v2207_v47 }
 0x8f3   :  { %v2216_v54 = vsel %vm2213_vm3, %v2215_v46, %v2211_v20 }
 0x8f4   :  { %v2222_v52 = vmul.f32 %v2220_v48, %v2216_v54  ;;  %v2229_v33 = vsub.f32 1.0, %v2216_v54  ;;  %v2235_v51 = vmul.f32 %v2216_v54, %v5832_v44 }
 0x8f6   :  { %2224 = vrot.lane.b32.xlu0 %v2222_v52, %s5183_s3 }
 0x968   :  { %v2225_v19 = vpop.permute.xlu0 %2224 }
 0x969   :  { %v2227_v49 = vadd.f32 %v2225_v19, %v2197_v23  ;;  %v2246_v23 = vmul.f32 %v2244_v4, %v5832_v44 }
 0x96b   :  { %5078 = vtanh.f32 %v2227_v49 }
 0x971   :  { %v5079_v31 = vpop.eup %5078 }
 0x972   :  { %2231 = vrot.lane.b32.xlu0 %v5079_v31, %s5185_s22 }
 0x97a   :  { %2238 = vperm.xlu0 %5027, %v5925_v41  }
 0x9e4   :  { %v2232_v34 = vpop.permute.xlu0 %2231 }
 0x9e5   :  { %v2234_v30 = vmul.f32 %v2232_v34, %v2229_v33 }
 0x9e7   :  { %v2236_v11 = vadd.f32 %v2235_v51, %v2234_v30 }
 0x9ec   :  { %v2239_v50 = vpop.permute.xlu0 %2238 }
 0x9ed   :  { %v2241_v28 = vmul.f32 %v2239_v50, %v2236_v11 }
 0x9ef   :  { %v5930_v62 = vadd.f32 %v2246_v23, %v2241_v28 }
 0x9f1   :  { %2249 = vrot.lane.b32.xlu1 %v5930_v62, %s5185_s22 }
 0xa63   :  { %v2250_v32 = vpop.permute.xlu1 %2249 }
 0xa64   :  { %v2251_v21 = vsel %vm569_vm7, %v2250_v32, 0 }
 0xa65   :  { %v2273_v53 = vand.u32 4294901760, %v2251_v21 }
 0xa67   :  { %v2274_v0 = vsub.f32 %v2251_v21, %v2273_v53  ;;  %2319 = vmatmul.f32.vlgmr.msra.gmra.mxu3 %v2273_v53 }
 0xa68   :  { %2551 = vmatpush.msra.mxu3 %v5652_v42 }
 0xa69   :  { %2349 = vmatmul.f32.vlgmr.msrb.gmra.mxu0 %v2274_v0  ;;  %v2275_v5 = vand.u32 4294901760, %v2274_v0 }
 0xa6a   :  { %2553 = vmatpush.msra.mxu3 %v5658_v56  ;;  %2580 = vmatpush.msrb.mxu0 %v5668_v38 }
 0xa6b   :  { %2376 = vmatmul.f32.vlgmr.msrb.gmra.mxu1 %v2275_v5  ;;  %v2276_v44 = vsub.f32 %v2274_v0, %v2275_v5 }
 0xa6c   :  { %2555 = vmatpush.msra.mxu3 %v5670_v7  ;;  %2584 = vmatpush.msrb.mxu0 %v5682_v43 }
 0xa6d   :  { %v2277_v47 = vand.u32 4294901760, %v2276_v44  ;;  %2611 = vmatpush.msrb.mxu1 %v5652_v42 }
 0xa6e   :  { %2557 = vmatpush.msra.mxu3 %v5684_v60  ;;  %2588 = vmatpush.msrb.mxu0 %v5695_v25 }
 0xa6f   :  { %2278 = vmatmul.f32.vlgmr.msra.gmra.mxu2 %v2277_v47  ;;  %2434 = vmatmul.f32.vlgmr.msrb.gmra.mxu3 %v2273_v53 }
 0xa70   :  { %2613 = vmatpush.msrb.mxu1 %v5658_v56  ;;  %2522 = vmatpush.msra.mxu2 %v5661_v37 }
 0xa71   :  { %2463 = vmatmul.f32.vlgmr.msra.gmra.mxu0 %v2277_v47  ;;  %2701 = vmatpush.msrb.mxu3 %v5580_v16 }
 0xa72   :  { %2592 = vmatpush.msrb.mxu0 %v5706_v24  ;;  %2615 = vmatpush.msrb.mxu1 %v5670_v7 }
 0xa73   :  { %2504 = vmatmul.f32.vlgmr.msra.gmra.mxu1 %v2273_v53  ;;  %2525 = vmatpush.msra.mxu2 %v5673_v14 }
 0xa74   :  { %2617 = vmatpush.msrb.mxu1 %v5684_v60  ;;  %2724 = vmatpush.msra.mxu0 %v5571_v9 }
 0xa75   :  { %2528 = vmatpush.msra.mxu2 %v5687_v36 }
 0xa76   :  { %2747 = vmatpush.msra.mxu1 %v5568_v8 }
 0xa77   :  { %2409 = vmatmul.f32.vlgmr.msrb.gmra.mxu2 %v2273_v53  ;;  %2561 = vmatmul.f32.vlgmr.msra.gmra.mxu3 %v2275_v5 }
 0xa78   :  { %2531 = vmatpush.msra.mxu2 %v5698_v26  ;;  %2795 = vmatpush.msra.mxu3 %v5568_v8 }
 0xa79   :  { %2594 = vmatmul.f32.vlgmr.msrb.gmra.mxu0 %v2273_v53 }
 0xa7a   :  { %2671 = vmatpush.msrb.mxu2 %v5568_v8  ;;  %2890 = vmatpush.msrb.mxu0 %v5339_v57 }
 0xa7b   :  { %2619 = vmatmul.f32.vlgmr.msrb.gmra.mxu1 %v2273_v53 }
 0xa7c   :  { %2923 = vmatpush.msrb.mxu1 %v5355_v61  ;;  %2892 = vmatpush.msrb.mxu0 %v5361_v63 }
 0xa7e   :  { %2929 = vmatpush.msrb.mxu1 %v5374_v6  ;;  %2894 = vmatpush.msrb.mxu0 %v5381_v10 }
 0xa7f   :  { %2534 = vmatmul.f32.vlgmr.msra.gmra.mxu2 %v2274_v0 }
 0xa80   :  { %2773 = vmatpush.msra.mxu2 %v5575_v13  ;;  %2935 = vmatpush.msrb.mxu1 %v5416_v27 }
 0xa81   :  { %2896 = vmatpush.msrb.mxu0 %v5428_v35 }
 0xa82   :  { %2941 = vmatpush.msrb.mxu1 %v5452_v45 }
 0xae6   :  { %v2350_v46 = vpop.f32.mrf.mxu0 }
 0xae8   :  { %v2377_v20 = vpop.f32.mrf.mxu1 }
 0xaea   :  { %v2320_v19 = vpop.f32.mrf.mxu3 }
 0xaee   :  { %v2464_v48 = vpop.f32.mrf.mxu0 }
 0xaf0   :  { %v2505_v54 = vpop.f32.mrf.mxu1 }
 0xaf1   :  { %v5965_v52 = vadd.f32 %v2505_v54, %v2464_v48 }
 0xaf2   :  { %v2279_v49 = vpop.f32.mrf.mxu2  ;;  %v2435_v4 = vpop.f32.mrf.mxu3 }
 0xaf3   :  { %6533 = vst [vmem:[#allocation23_spill] sm:$0xff] %v5965_v52  ;;  %v2321_v31 = vadd.f32 %v2320_v19, %v2279_v49 }
 0xaf5   :  { %v2351_v34 = vadd.f32 %v2350_v46, %v2321_v31  ;;  %v6008_v31 = vld [vmem:[%s6463_s7] ss:$0 sm:$0xff] }
 0xaf6   :  { %v6003_v49 = vpop.f32.mrf.mxu0  ;;  %6537 = vst [vmem:[#allocation28_spill] sm:$0xff] %v6008_v31 }
 0xaf7   :  { %v2378_v33 = vadd.f32 %v2377_v20, %v2351_v34  ;;  %6536 = vst [vmem:[#allocation7_spill] sm:$0xff] %v6003_v49  ;;  %v6538_v34 = vld [vmem:[#allocation18_spill] sm:$0xff] }
 0xafa   :  { %v2410_v30 = vpop.f32.mrf.mxu2  ;;  %v5999_v48 = vpop.f32.mrf.mxu3 }
 0xafb   :  { %v2411_v51 = vadd.f32 %v2410_v30, %v2378_v33  ;;  %6534 = vst [vmem:[#allocation17_spill] sm:$0xff] %v5999_v48  ;;  %v200_v33 = vadd.f32 %v6008_v31, %v6538_v34 }
 0xafd   :  { %v5967_v11 = vadd.f32 %v2435_v4, %v2411_v51  ;;  %v6012_v51 = vpop.f32.mrf.mxu1  ;;  %v6540_v4 = vld [vmem:[#allocation19_spill] sm:$0xff] }
 0xafe   :  { %6539 = vst [vmem:[#allocation29_spill] sm:$0xff] %v6012_v51 }
 0xaff   :  { %v2648_v50 = vmul.f32 1.442695, %v5967_v11  ;;  %2843 = vrot.lane.b32.xlu1 %v5967_v11, %s5183_s3 }
 0xb01   :  { %5080 = vpow2.f32 %v2648_v50  ;;  %v297_v50 = vadd.f32 %v6540_v4, %v200_v33  ;;  %v6543_v33 = vld [vmem:[#allocation30_spill] sm:$0xff] }
 0xb02   :  { %v6001_v54 = vpop.f32.mrf.mxu2 }
 0xb03   :  { %6535 = vst [vmem:[#allocation6_spill] sm:$0xff] %v6001_v54  ;;  %v6542_v54 = vld [vmem:[#allocation9_spill] sm:$0xff] }
 0xb07   :  { %v5081_v23 = vpop.eup %5080 }
 0xb08   :  { %2651 = vrot.lane.b32.xlu0 %v5081_v23, %s5184_s18 }
 0xb7a   :  { %v2652_v28 = vpop.permute.xlu0 %2651 }
 0xb7b   :  { %v2653_v32 = vsel %vm763_vm9, %v2652_v28, 0  ;;  %v2802_v21 = vsel %vm763_vm9, %v2652_v28, 0.0 }
 0xb7c   :  { %v2672_v53 = vand.u32 4294901760, %v2653_v32  ;;  %2803 = vadd.xlane.f32.xlu2 %v2802_v21 }
 0xb7e   :  { %v2673_v0 = vsub.f32 %v2653_v32, %v2672_v53  ;;  %2703 = vmatmul.f32.vlgmr.msrb.gmra.mxu3 %v2672_v53 }
 0xb7f   :  { %2990 = vmatpush.msrb.mxu3 %v5339_v57 }
 0xb80   :  { %v2674_v5 = vand.u32 4294901760, %v2673_v0  ;;  %2727 = vmatmul.f32.vlgmr.msra.gmra.mxu0 %v2673_v0 }
 0xb81   :  { %2992 = vmatpush.msrb.mxu3 %v5361_v63  ;;  %3019 = vmatpush.msra.mxu0 %v5349_v59 }
 0xb82   :  { %v2675_v44 = vsub.f32 %v2673_v0, %v2674_v5  ;;  %2751 = vmatmul.f32.vlgmr.msra.gmra.mxu1 %v2674_v5  ;;  %v6541_v0 = vld [vmem:[#allocation8_spill] sm:$0xff] }
 0xb83   :  { %2994 = vmatpush.msrb.mxu3 %v5381_v10  ;;  %3050 = vmatpush.msra.mxu1 %v5339_v57  ;;  %v362_v5 = vadd.f32 %v6541_v0, %v297_v50 }
 0xb84   :  { %v2676_v47 = vand.u32 4294901760, %v2675_v44  ;;  %3023 = vmatpush.msra.mxu0 %v5368_v3 }
 0xb85   :  { %2996 = vmatpush.msrb.mxu3 %v5428_v35  ;;  %3052 = vmatpush.msra.mxu1 %v5361_v63  ;;  %v426_v52 = vadd.f32 %v6542_v54, %v362_v5  ;;  %v6480_v5 = vmov 3  }
 0xb86   :  { %2677 = vmatmul.f32.vlgmr.msrb.gmra.mxu2 %v2676_v47  ;;  %2797 = vmatmul.f32.vlgmr.msra.gmra.mxu3 %v2672_v53 }
 0xb87   :  { %2961 = vmatpush.msrb.mxu2 %v5345_v58  ;;  %3054 = vmatpush.msra.mxu1 %v5381_v10  ;;  %v501_v4 = vadd.f32 %v6543_v33, %v426_v52 }
 0xb88   :  { %3108 = vmatpush.msra.mxu3 %v5689_v55  ;;  %3027 = vmatpush.msra.mxu0 %v5397_v17 }
 0xb89   :  { %2964 = vmatpush.msrb.mxu2 %v5365_v1  ;;  %3056 = vmatpush.msra.mxu1 %v5428_v35 }
 0xb8a   :  { %3114 = vmatpush.msra.mxu3 %v5701_v29  ;;  %3031 = vmatpush.msra.mxu0 %v5442_v40 }
 0xb8b   :  { %2967 = vmatpush.msrb.mxu2 %v5392_v15  ;;  %5030 = vset.pattern.permute.xlu0 %v6480_v5 }
 0xb8c   :  { %3120 = vmatpush.msra.mxu3 %v5709_v12  ;;  %5029 = vset.pattern.permute.xlu1 %v6480_v5 }
 0xb8d   :  { %2970 = vmatpush.msrb.mxu2 %v5437_v39  ;;  %2862 = vperm.xlu1 %5029, %v5925_v41  }
 0xb8e   :  { %2775 = vmatmul.f32.vlgmr.msra.gmra.mxu2 %v2672_v53  ;;  %3126 = vmatpush.msra.mxu3 %v6521_v18 }
 0xb8f   :  { %3075 = vmatpush.msra.mxu2 %v5652_v42 }
 0xb91   :  { %3077 = vmatpush.msra.mxu2 %v5658_v56 }
 0xb93   :  { %3079 = vmatpush.msra.mxu2 %v5670_v7 }
 0xb95   :  { %3081 = vmatpush.msra.mxu2 %v5684_v60 }
 0xbef   :  { %v2804_v46 = vpop.xlane.xlu2 %2803 }
 0xbf0   :  { %5082 = vrcp.f32 %v2804_v46  ;;  %v2816_v49 = vand.u32 2147483648, %v2804_v46  ;;  %vm2810_vm5 = vweird.f32 %v2804_v46  ;;  %v2814_v34 = vand.u32 2147483647, %v2804_v46 }
 0xbf2   :  { %vm2815_vm8 = vcmp.eq.f32.partialorder %v2814_v34, 8.507059e+37  ;;  %v2844_v34 = vpop.permute.xlu1 %2843 }
 0xbf6   :  { %v5083_v20 = vpop.eup %5082 }
 0xbf7   :  { %v2806_v19 = vmul.f32 %v5083_v20, %v2804_v46  ;;  %vm2811_vm4 = vweird.f32 %v5083_v20 }
 0xbf8   :  { %vm2812_vm6 = vmor %vm2810_vm5, %vm2811_vm4 }
 0xbf9   :  { %v2807_v30 = vsub.f32 1.0, %v2806_v19 }
 0xbfb   :  { %v2808_v32 = vmul.f32 %v5083_v20, %v2807_v30 }
 0xbfd   :  { %v2728_v53 = vpop.f32.mrf.mxu0  ;;  %v2809_v47 = vadd.f32 %v5083_v20, %v2808_v32 }
 0xbff   :  { %v2752_v48 = vpop.f32.mrf.mxu1  ;;  %v2813_v30 = vsel %vm2812_vm6, %v5083_v20, %v2809_v47 }
 0xc01   :  { %v2704_v23 = vpop.f32.mrf.mxu3 }
 0xc09   :  { %v2678_v28 = vpop.f32.mrf.mxu2 }
 0xc0a   :  { %v2705_v21 = vadd.f32 %v2704_v23, %v2678_v28  ;;  %v2817_v23 = vor.u32 1.1754944e-38, %v2816_v49  ;;  %v2798_v28 = vpop.f32.mrf.mxu3 }
 0xc0c   :  { %v2729_v44 = vadd.f32 %v2728_v53, %v2705_v21  ;;  %v2818_v50 = vsel %vm2815_vm8, %v2817_v23, %v2813_v30  ;;  %v6544_v21 = vld [vmem:[#allocation31_spill] sm:$0xff] }
 0xc0d   :  { %v554_v32 = vadd.f32 %v6544_v21, %v501_v4 }
 0xc0e   :  { %v2753_v19 = vadd.f32 %v2752_v48, %v2729_v44 }
 0xc11   :  { %v2776_v51 = vpop.f32.mrf.mxu2 }
 0xc12   :  { %v2777_v22 = vadd.f32 %v2776_v51, %v2753_v19 }
 0xc14   :  { %v2799_v31 = vadd.f32 %v2798_v28, %v2777_v22 }
 0xc16   :  { %v2820_v53 = vmul.f32 %v2818_v50, %v2799_v31 }
 0xc18   :  { %v2821_v0 = vadd.f32 %v2820_v53, %v554_v32 }
 0xc1a   :  { %v2822_v54 = vadd.f32 %v2821_v0, %v5967_v11 }
 0xc1c   :  { %v5000_v46 = vmul.f32 -1.442695, %v2822_v54 }
 0xc1e   :  { %5084 = vpow2.f32 %v5000_v46  ;;  %v2863_v46 = vpop.permute.xlu1 %2862 }
 0xc24   :  { %v5085_v52 = vpop.eup %5084 }
 0xc25   :  { %v2826_v20 = vadd.f32 1.0, %v5085_v52 }
 0xc27   :  { %5086 = vrcp.f32 %v2826_v20  ;;  %v2838_v51 = vand.u32 2147483648, %v2826_v20  ;;  %v2836_v44 = vand.u32 2147483647, %v2826_v20  ;;  %vm2832_vm11 = vweird.f32 %v2826_v20 }
 0xc29   :  { %v2839_v47 = vor.u32 1.1754944e-38, %v2838_v51  ;;  %vm2837_vm13 = vcmp.eq.f32.partialorder %v2836_v44, 8.507059e+37 }
 0xc2d   :  { %v5087_v22 = vpop.eup %5086 }
 0xc2e   :  { %v2828_v48 = vmul.f32 %v5087_v22, %v2826_v20  ;;  %vm2833_vm10 = vweird.f32 %v5087_v22 }
 0xc2f   :  { %vm2834_vm12 = vmor %vm2832_vm11, %vm2833_vm10 }
 0xc30   :  { %v2829_v49 = vsub.f32 1.0, %v2828_v48 }
 0xc32   :  { %v2830_v31 = vmul.f32 %v5087_v22, %v2829_v49 }
 0xc34   :  { %v2831_v11 = vadd.f32 %v5087_v22, %v2830_v31 }
 0xc36   :  { %v2835_v19 = vsel %vm2834_vm12, %v5087_v22, %v2831_v11 }
 0xc37   :  { %v2840_v33 = vsel %vm2837_vm13, %v2839_v47, %v2835_v19 }
 0xc38   :  { %v2846_v4 = vmul.f32 %v2844_v34, %v2840_v33  ;;  %v2853_v50 = vsub.f32 1.0, %v2840_v33  ;;  %v2859_v53 = vmul.f32 %v2840_v33, %v5930_v62 }
 0xc3a   :  { %2848 = vrot.lane.b32.xlu0 %v2846_v4, %s5183_s3 }
 0xc42   :  { %2867 = vperm.xlu0 %5030, %v5559_v2  }
 0xcac   :  { %v2849_v30 = vpop.permute.xlu0 %2848 }
 0xcad   :  { %v2851_v23 = vadd.f32 %v2849_v30, %v2821_v0 }
 0xcaf   :  { %5088 = vtanh.f32 %v2851_v23 }
 0xcb4   :  { %v2868_v54 = vpop.permute.xlu0 %2867 }
 0xcb5   :  { %v5089_v28 = vpop.eup %5088  ;;  %v2870_v20 = vmul.f32 %v2868_v54, %v5930_v62 }
 0xcb6   :  { %2855 = vrot.lane.b32.xlu2 %v5089_v28, %s5185_s22 }
 0xd10   :  { %v2856_v21 = vpop.permute.xlu2 %2855 }
 0xd11   :  { %v2858_v32 = vmul.f32 %v2856_v21, %v2853_v50 }
 0xd13   :  { %v2860_v52 = vadd.f32 %v2859_v53, %v2858_v32 }
 0xd15   :  { %v2865_v22 = vmul.f32 %v2863_v46, %v2860_v52 }
 0xd17   :  { %v6028_v48 = vadd.f32 %v2870_v20, %v2865_v22 }
 0xd19   :  { %2873 = vrot.lane.b32.xlu1 %v6028_v48, %s5185_s22 }
 0xd8b   :  { %v2874_v0 = vpop.permute.xlu1 %2873 }
 0xd8c   :  { %v2875_v49 = vsel %vm569_vm7, %v2874_v0, 0 }
 0xd8d   :  { %v2897_v51 = vand.u32 4294901760, %v2875_v49 }
 0xd8f   :  { %v2898_v31 = vsub.f32 %v2875_v49, %v2897_v51  ;;  %2943 = vmatmul.f32.vlgmr.msrb.gmra.mxu1 %v2897_v51 }
 0xd90   :  { %3175 = vmatpush.msrb.mxu1 %v5652_v42 }
 0xd91   :  { %v2899_v44 = vand.u32 4294901760, %v2898_v31  ;;  %2973 = vmatmul.f32.vlgmr.msrb.gmra.mxu2 %v2898_v31 }
 0xd92   :  { %3177 = vmatpush.msrb.mxu1 %v5658_v56  ;;  %3204 = vmatpush.msrb.mxu2 %v5668_v38 }
 0xd93   :  { %v2900_v62 = vsub.f32 %v2898_v31, %v2899_v44  ;;  %3000 = vmatmul.f32.vlgmr.msrb.gmra.mxu3 %v2899_v44 }
 0xd94   :  { %3179 = vmatpush.msrb.mxu1 %v5670_v7  ;;  %3208 = vmatpush.msrb.mxu2 %v5682_v43 }
 0xd95   :  { %v2901_v11 = vand.u32 4294901760, %v2900_v62  ;;  %3235 = vmatpush.msrb.mxu3 %v5652_v42 }
 0xd96   :  { %3181 = vmatpush.msrb.mxu1 %v5684_v60  ;;  %3212 = vmatpush.msrb.mxu2 %v5695_v25 }
 0xd97   :  { %2902 = vmatmul.f32.vlgmr.msrb.gmra.mxu0 %v2901_v11  ;;  %3058 = vmatmul.f32.vlgmr.msra.gmra.mxu1 %v2897_v51 }
 0xd98   :  { %3237 = vmatpush.msrb.mxu3 %v5658_v56  ;;  %3146 = vmatpush.msrb.mxu0 %v5661_v37 }
 0xd99   :  { %3087 = vmatmul.f32.vlgmr.msra.gmra.mxu2 %v2901_v11  ;;  %3325 = vmatpush.msra.mxu1 %v5580_v16 }
 0xd9a   :  { %3216 = vmatpush.msrb.mxu2 %v5706_v24  ;;  %3239 = vmatpush.msrb.mxu3 %v5670_v7 }
 0xd9b   :  { %3128 = vmatmul.f32.vlgmr.msra.gmra.mxu3 %v2897_v51  ;;  %3149 = vmatpush.msrb.mxu0 %v5673_v14 }
 0xd9c   :  { %3241 = vmatpush.msrb.mxu3 %v5684_v60  ;;  %3348 = vmatpush.msra.mxu2 %v5571_v9 }
 0xd9d   :  { %3152 = vmatpush.msrb.mxu0 %v5687_v36 }
 0xd9e   :  { %3371 = vmatpush.msra.mxu3 %v5568_v8 }
 0xd9f   :  { %3033 = vmatmul.f32.vlgmr.msra.gmra.mxu0 %v2897_v51  ;;  %3185 = vmatmul.f32.vlgmr.msrb.gmra.mxu1 %v2899_v44 }
 0xda0   :  { %3155 = vmatpush.msrb.mxu0 %v5698_v26  ;;  %3419 = vmatpush.msrb.mxu1 %v5568_v8 }
 0xda1   :  { %3218 = vmatmul.f32.vlgmr.msrb.gmra.mxu2 %v2897_v51 }
 0xda2   :  { %3295 = vmatpush.msra.mxu0 %v5568_v8  ;;  %3514 = vmatpush.msrb.mxu2 %v5339_v57 }
 0xda3   :  { %3243 = vmatmul.f32.vlgmr.msrb.gmra.mxu3 %v2897_v51 }
 0xda4   :  { %3547 = vmatpush.msrb.mxu3 %v5355_v61  ;;  %3516 = vmatpush.msrb.mxu2 %v5361_v63 }
 0xda6   :  { %3553 = vmatpush.msrb.mxu3 %v5374_v6  ;;  %3518 = vmatpush.msrb.mxu2 %v5381_v10 }
 0xda7   :  { %3158 = vmatmul.f32.vlgmr.msrb.gmra.mxu0 %v2898_v31 }
 0xda8   :  { %3397 = vmatpush.msrb.mxu0 %v5575_v13  ;;  %3559 = vmatpush.msrb.mxu3 %v5416_v27 }
 0xda9   :  { %3520 = vmatpush.msrb.mxu2 %v5428_v35 }
 0xdaa   :  { %3565 = vmatpush.msrb.mxu3 %v5452_v45 }
 0xe0c   :  { %v2944_v47 = vpop.f32.mrf.mxu1 }
 0xe14   :  { %v2903_v19 = vpop.f32.mrf.mxu0  ;;  %v2974_v34 = vpop.f32.mrf.mxu2 }
 0xe15   :  { %v2945_v33 = vadd.f32 %v2944_v47, %v2903_v19  ;;  %v3059_v50 = vpop.f32.mrf.mxu1 }
 0xe16   :  { %v3001_v4 = vpop.f32.mrf.mxu3 }
 0xe17   :  { %v2975_v30 = vadd.f32 %v2974_v34, %v2945_v33 }
 0xe19   :  { %v3002_v23 = vadd.f32 %v3001_v4, %v2975_v30 }
 0xe1c   :  { %v3034_v28 = vpop.f32.mrf.mxu0  ;;  %v3088_v32 = vpop.f32.mrf.mxu2 }
 0xe1d   :  { %v3035_v21 = vadd.f32 %v3034_v28, %v3002_v23  ;;  %v6097_v34 = vpop.f32.mrf.mxu1  ;;  %v6549_v23 = vld [vmem:[#allocation20_spill] sm:$0xff] }
 0xe1e   :  { %v3129_v53 = vpop.f32.mrf.mxu3  ;;  %6546 = vst [vmem:[#allocation19_spill] sm:$0xff] %v6097_v34  ;;  %v6550_v28 = vld [vmem:[#allocation28_spill] sm:$0xff]  ;;  %v6554_v34 = vld [vmem:[#allocation11_spill] sm:$0xff] }
 0xe1f   :  { %v6063_v54 = vadd.f32 %v3059_v50, %v3035_v21  ;;  %v6065_v46 = vadd.f32 %v3129_v53, %v3088_v32  ;;  %v208_v50 = vadd.f32 %v6550_v28, %v6549_v23  ;;  %v6552_v53 = vld [vmem:[#allocation21_spill] sm:$0xff] }
 0xe21   :  { %6545 = vst [vmem:[#allocation18_spill] sm:$0xff] %v6065_v46  ;;  %v3272_v52 = vmul.f32 1.442695, %v6063_v54  ;;  %3467 = vrot.lane.b32.xlu2 %v6063_v54, %s5183_s3 }
 0xe23   :  { %5090 = vpow2.f32 %v3272_v52  ;;  %v301_v52 = vadd.f32 %v6552_v53, %v208_v50  ;;  %v6555_v50 = vld [vmem:[#allocation32_spill] sm:$0xff] }
 0xe24   :  { %v6099_v33 = vpop.f32.mrf.mxu0  ;;  %v6101_v30 = vpop.f32.mrf.mxu2 }
 0xe25   :  { %6547 = vst [vmem:[#allocation8_spill] sm:$0xff] %v6099_v33 }
 0xe26   :  { %6548 = vst [vmem:[#allocation9_spill] sm:$0xff] %v6101_v30  ;;  %v6105_v32 = vpop.f32.mrf.mxu3 }
 0xe27   :  { %6551 = vst [vmem:[#allocation30_spill] sm:$0xff] %v6105_v32 }
 0xe29   :  { %v5091_v20 = vpop.eup %5090 }
 0xe2a   :  { %3275 = vrot.lane.b32.xlu1 %v5091_v20, %s5184_s18 }
 0xe9c   :  { %v3276_v22 = vpop.permute.xlu1 %3275 }
 0xe9d   :  { %v3277_v0 = vsel %vm763_vm9, %v3276_v22, 0  ;;  %v3426_v49 = vsel %vm763_vm9, %v3276_v22, 0.0 }
 0xe9e   :  { %v3296_v51 = vand.u32 4294901760, %v3277_v0  ;;  %3427 = vadd.xlane.f32.xlu0 %v3426_v49 }
 0xea0   :  { %v3297_v31 = vsub.f32 %v3277_v0, %v3296_v51  ;;  %3327 = vmatmul.f32.vlgmr.msra.gmra.mxu1 %v3296_v51 }
 0xea1   :  { %3614 = vmatpush.msra.mxu1 %v5339_v57 }
 0xea2   :  { %v3298_v44 = vand.u32 4294901760, %v3297_v31  ;;  %3351 = vmatmul.f32.vlgmr.msra.gmra.mxu2 %v3297_v31 }
 0xea3   :  { %3616 = vmatpush.msra.mxu1 %v5361_v63  ;;  %3643 = vmatpush.msra.mxu2 %v5349_v59 }
 0xea4   :  { %v3299_v62 = vsub.f32 %v3297_v31, %v3298_v44  ;;  %3375 = vmatmul.f32.vlgmr.msra.gmra.mxu3 %v3298_v44  ;;  %v6553_v31 = vld [vmem:[#allocation10_spill] sm:$0xff] }
 0xea5   :  { %3618 = vmatpush.msra.mxu1 %v5381_v10  ;;  %3674 = vmatpush.msra.mxu3 %v5339_v57  ;;  %v367_v44 = vadd.f32 %v6553_v31, %v301_v52 }
 0xea6   :  { %v3300_v11 = vand.u32 4294901760, %v3299_v62  ;;  %3647 = vmatpush.msra.mxu2 %v5368_v3 }
 0xea7   :  { %3620 = vmatpush.msra.mxu1 %v5428_v35  ;;  %3676 = vmatpush.msra.mxu3 %v5361_v63  ;;  %v432_v33 = vadd.f32 %v6554_v34, %v367_v44  ;;  %v5189_v44 = vmov 4  }
 0xea8   :  { %3301 = vmatmul.f32.vlgmr.msra.gmra.mxu0 %v3300_v11  ;;  %3421 = vmatmul.f32.vlgmr.msrb.gmra.mxu1 %v3296_v51 }
 0xea9   :  { %3585 = vmatpush.msra.mxu0 %v5345_v58  ;;  %3678 = vmatpush.msra.mxu3 %v5381_v10  ;;  %v505_v53 = vadd.f32 %v6555_v50, %v432_v33 }
 0xeaa   :  { %3732 = vmatpush.msrb.mxu1 %v5689_v55  ;;  %3651 = vmatpush.msra.mxu2 %v5397_v17 }
 0xeab   :  { %3588 = vmatpush.msra.mxu0 %v5365_v1  ;;  %3680 = vmatpush.msra.mxu3 %v5428_v35 }
 0xeac   :  { %3738 = vmatpush.msrb.mxu1 %v5701_v29  ;;  %3655 = vmatpush.msra.mxu2 %v5442_v40 }
 0xead   :  { %3591 = vmatpush.msra.mxu0 %v5392_v15  ;;  %5031 = vset.pattern.permute.xlu1 %v5189_v44 }
 0xeae   :  { %3744 = vmatpush.msrb.mxu1 %v5709_v12  ;;  %5032 = vset.pattern.permute.xlu2 %v5189_v44 }
 0xeaf   :  { %3594 = vmatpush.msra.mxu0 %v5437_v39 }
 0xeb0   :  { %3399 = vmatmul.f32.vlgmr.msrb.gmra.mxu0 %v3296_v51  ;;  %3750 = vmatpush.msrb.mxu1 %v6521_v18 }
 0xeb1   :  { %3699 = vmatpush.msrb.mxu0 %v5652_v42 }
 0xeb3   :  { %3701 = vmatpush.msrb.mxu0 %v5658_v56 }
 0xeb5   :  { %3703 = vmatpush.msrb.mxu0 %v5670_v7 }
 0xeb7   :  { %3705 = vmatpush.msrb.mxu0 %v5684_v60 }
 0xf11   :  { %v3428_v47 = vpop.xlane.xlu0 %3427 }
 0xf12   :  { %5092 = vrcp.f32 %v3428_v47  ;;  %v3440_v5 = vand.u32 2147483648, %v3428_v47  ;;  %vm3434_vm15 = vweird.f32 %v3428_v47  ;;  %v3438_v23 = vand.u32 2147483647, %v3428_v47 }
 0xf14   :  { %vm3439_vm1 = vcmp.eq.f32.partialorder %v3438_v23, 8.507059e+37  ;;  %v3468_v23 = vpop.permute.xlu2 %3467 }
 0xf18   :  { %v5093_v19 = vpop.eup %5092 }
 0xf19   :  { %v3430_v4 = vmul.f32 %v5093_v19, %v3428_v47  ;;  %vm3435_vm14 = vweird.f32 %v5093_v19 }
 0xf1a   :  { %vm3436_vm0 = vmor %vm3434_vm15, %vm3435_vm14 }
 0xf1b   :  { %v3431_v21 = vsub.f32 1.0, %v3430_v4 }
 0xf1d   :  { %v3328_v20 = vpop.f32.mrf.mxu1  ;;  %v3432_v0 = vmul.f32 %v5093_v19, %v3431_v21 }
 0xf1f   :  { %v3433_v11 = vadd.f32 %v5093_v19, %v3432_v0 }
 0xf21   :  { %v3437_v21 = vsel %vm3436_vm0, %v5093_v19, %v3433_v11 }
 0xf25   :  { %v3302_v22 = vpop.f32.mrf.mxu0  ;;  %v3352_v51 = vpop.f32.mrf.mxu2 }
 0xf26   :  { %v3329_v49 = vadd.f32 %v3328_v20, %v3302_v22  ;;  %v3441_v20 = vor.u32 1.1754944e-38, %v3440_v5  ;;  %v3422_v22 = vpop.f32.mrf.mxu1 }
 0xf27   :  { %v3376_v30 = vpop.f32.mrf.mxu3 }
 0xf28   :  { %v3353_v62 = vadd.f32 %v3352_v51, %v3329_v49  ;;  %v3442_v52 = vsel %vm3439_vm1, %v3441_v20, %v3437_v21  ;;  %v6556_v49 = vld [vmem:[#allocation33_spill] sm:$0xff]  ;;  %v6557_v21 = vmov 0  }
 0xf29   :  { %v558_v0 = vadd.f32 %v6556_v49, %v505_v53 }
 0xf2a   :  { %v3377_v4 = vadd.f32 %v3376_v30, %v3353_v62 }
 0xf2d   :  { %v3400_v32 = vpop.f32.mrf.mxu0 }
 0xf2e   :  { %v3401_v46 = vadd.f32 %v3400_v32, %v3377_v4 }
 0xf30   :  { %v3423_v28 = vadd.f32 %v3422_v22, %v3401_v46 }
 0xf32   :  { %v3444_v51 = vmul.f32 %v3442_v52, %v3423_v28 }
 0xf34   :  { %v3445_v31 = vadd.f32 %v3444_v51, %v558_v0 }
 0xf36   :  { %v3446_v34 = vadd.f32 %v3445_v31, %v6063_v54 }
 0xf38   :  { %v5002_v47 = vmul.f32 -1.442695, %v3446_v34 }
 0xf3a   :  { %5094 = vpow2.f32 %v5002_v47 }
 0xf40   :  { %v5095_v33 = vpop.eup %5094 }
 0xf41   :  { %v3450_v19 = vadd.f32 1.0, %v5095_v33 }
 0xf43   :  { %5096 = vrcp.f32 %v3450_v19  ;;  %v3462_v32 = vand.u32 2147483648, %v3450_v19  ;;  %v3460_v28 = vand.u32 2147483647, %v3450_v19  ;;  %vm3456_vm3 = vweird.f32 %v3450_v19 }
 0xf45   :  { %v3463_v54 = vor.u32 1.1754944e-38, %v3462_v32  ;;  %vm3461_vm5 = vcmp.eq.f32.partialorder %v3460_v28, 8.507059e+37 }
 0xf49   :  { %v5097_v5 = vpop.eup %5096 }
 0xf4a   :  { %v3452_v46 = vmul.f32 %v5097_v5, %v3450_v19  ;;  %vm3457_vm2 = vweird.f32 %v5097_v5 }
 0xf4b   :  { %vm3458_vm4 = vmor %vm3456_vm3, %vm3457_vm2 }
 0xf4c   :  { %v3453_v30 = vsub.f32 1.0, %v3452_v46 }
 0xf4e   :  { %v3454_v62 = vmul.f32 %v5097_v5, %v3453_v30 }
 0xf50   :  { %v3455_v11 = vadd.f32 %v5097_v5, %v3454_v62 }
 0xf52   :  { %v3459_v4 = vsel %vm3458_vm4, %v5097_v5, %v3455_v11 }
 0xf53   :  { %v3464_v50 = vsel %vm3461_vm5, %v3463_v54, %v3459_v4 }
 0xf54   :  { %v3470_v53 = vmul.f32 %v3468_v23, %v3464_v50  ;;  %v3477_v49 = vsub.f32 1.0, %v3464_v50  ;;  %v3483_v34 = vmul.f32 %v3464_v50, %v6028_v48 }
 0xf56   :  { %3472 = vrot.lane.b32.xlu1 %v3470_v53, %s5183_s3 }
 0xf5e   :  { %3486 = vperm.xlu1 %5031, %v5925_v41  }
 0xf66   :  { %5036 = vset.pattern.permute.xlu1 %v6557_v21 }
 0xfc8   :  { %v3473_v20 = vpop.permute.xlu1 %3472 }
 0xfc9   :  { %v3475_v22 = vadd.f32 %v3473_v20, %v3445_v31 }
 0xfcb   :  { %5098 = vtanh.f32 %v3475_v22 }
 0xfd0   :  { %v3487_v33 = vpop.permute.xlu1 %3486 }
 0xfd1   :  { %v5099_v52 = vpop.eup %5098 }
 0xfd2   :  { %3479 = vrot.lane.b32.xlu2 %v5099_v52, %s5185_s22 }
 0xfda   :  { %3491 = vperm.xlu2 %5032, %v5559_v2  }
0x102c   :  { %v3480_v0 = vpop.permute.xlu2 %3479 }
0x102d   :  { %v3482_v51 = vmul.f32 %v3480_v0, %v3477_v49 }
0x102f   :  { %v3484_v47 = vadd.f32 %v3483_v34, %v3482_v51 }
0x1031   :  { %v3489_v5 = vmul.f32 %v3487_v33, %v3484_v47 }
0x1034   :  { %v3492_v19 = vpop.permute.xlu2 %3491 }
0x1035   :  { %v3494_v41 = vmul.f32 %v3492_v19, %v6028_v48 }
0x1037   :  { %v6122_v46 = vadd.f32 %v3494_v41, %v3489_v5 }
0x1039   :  { %3497 = vrot.lane.b32.xlu1 %v6122_v46, %s5185_s22 }
0x10ab   :  { %v3498_v31 = vpop.permute.xlu1 %3497 }
0x10ac   :  { %v3499_v30 = vsel %vm569_vm7, %v3498_v31, 0 }
0x10ad   :  { %v3521_v32 = vand.u32 4294901760, %v3499_v30 }
0x10af   :  { %v3522_v62 = vsub.f32 %v3499_v30, %v3521_v32  ;;  %3567 = vmatmul.f32.vlgmr.msrb.gmra.mxu3 %v3521_v32 }
0x10b0   :  { %3799 = vmatpush.msrb.mxu3 %v5652_v42 }
0x10b1   :  { %v3523_v28 = vand.u32 4294901760, %v3522_v62  ;;  %3597 = vmatmul.f32.vlgmr.msra.gmra.mxu0 %v3522_v62 }
0x10b2   :  { %3801 = vmatpush.msrb.mxu3 %v5658_v56  ;;  %3828 = vmatpush.msra.mxu0 %v5668_v38 }
0x10b3   :  { %v3524_v48 = vsub.f32 %v3522_v62, %v3523_v28  ;;  %3624 = vmatmul.f32.vlgmr.msra.gmra.mxu1 %v3523_v28 }
0x10b4   :  { %3803 = vmatpush.msrb.mxu3 %v5670_v7  ;;  %3832 = vmatpush.msra.mxu0 %v5682_v43 }
0x10b5   :  { %v3525_v11 = vand.u32 4294901760, %v3524_v48  ;;  %3859 = vmatpush.msra.mxu1 %v5652_v42 }
0x10b6   :  { %3805 = vmatpush.msrb.mxu3 %v5684_v60  ;;  %3836 = vmatpush.msra.mxu0 %v5695_v25 }
0x10b7   :  { %3526 = vmatmul.f32.vlgmr.msrb.gmra.mxu2 %v3525_v11  ;;  %3682 = vmatmul.f32.vlgmr.msra.gmra.mxu3 %v3521_v32 }
0x10b8   :  { %3861 = vmatpush.msra.mxu1 %v5658_v56  ;;  %3770 = vmatpush.msrb.mxu2 %v5661_v37 }
0x10b9   :  { %3711 = vmatmul.f32.vlgmr.msrb.gmra.mxu0 %v3525_v11  ;;  %3949 = vmatpush.msra.mxu3 %v5580_v16 }
0x10ba   :  { %3840 = vmatpush.msra.mxu0 %v5706_v24  ;;  %3863 = vmatpush.msra.mxu1 %v5670_v7 }
0x10bb   :  { %3752 = vmatmul.f32.vlgmr.msrb.gmra.mxu1 %v3521_v32  ;;  %3773 = vmatpush.msrb.mxu2 %v5673_v14 }
0x10bc   :  { %3865 = vmatpush.msra.mxu1 %v5684_v60  ;;  %3972 = vmatpush.msrb.mxu0 %v5571_v9 }
0x10bd   :  { %3776 = vmatpush.msrb.mxu2 %v5687_v36 }
0x10be   :  { %3995 = vmatpush.msrb.mxu1 %v5568_v8 }
0x10bf   :  { %3657 = vmatmul.f32.vlgmr.msra.gmra.mxu2 %v3521_v32  ;;  %3809 = vmatmul.f32.vlgmr.msrb.gmra.mxu3 %v3523_v28 }
0x10c0   :  { %3779 = vmatpush.msrb.mxu2 %v5698_v26  ;;  %4043 = vmatpush.msrb.mxu3 %v5568_v8 }
0x10c1   :  { %3842 = vmatmul.f32.vlgmr.msra.gmra.mxu0 %v3521_v32 }
0x10c2   :  { %3919 = vmatpush.msra.mxu2 %v5568_v8  ;;  %4138 = vmatpush.msra.mxu0 %v5339_v57 }
0x10c3   :  { %3867 = vmatmul.f32.vlgmr.msra.gmra.mxu1 %v3521_v32 }
0x10c4   :  { %4171 = vmatpush.msra.mxu1 %v5355_v61  ;;  %4140 = vmatpush.msra.mxu0 %v5361_v63 }
0x10c6   :  { %4177 = vmatpush.msra.mxu1 %v5374_v6  ;;  %4142 = vmatpush.msra.mxu0 %v5381_v10 }
0x10c7   :  { %3782 = vmatmul.f32.vlgmr.msrb.gmra.mxu2 %v3522_v62 }
0x10c8   :  { %4021 = vmatpush.msrb.mxu2 %v5575_v13  ;;  %4183 = vmatpush.msra.mxu1 %v5416_v27 }
0x10c9   :  { %4144 = vmatpush.msra.mxu0 %v5428_v35 }
0x10ca   :  { %4189 = vmatpush.msra.mxu1 %v5452_v45 }
0x112e   :  { %v3598_v54 = vpop.f32.mrf.mxu0 }
0x1130   :  { %v3625_v4 = vpop.f32.mrf.mxu1 }
0x1132   :  { %v3568_v53 = vpop.f32.mrf.mxu3 }
0x1136   :  { %v3712_v23 = vpop.f32.mrf.mxu0 }
0x1138   :  { %v3753_v50 = vpop.f32.mrf.mxu1 }
0x1139   :  { %v6157_v61 = vadd.f32 %v3753_v50, %v3712_v23 }
0x113a   :  { %v3527_v21 = vpop.f32.mrf.mxu2  ;;  %v3683_v0 = vpop.f32.mrf.mxu3 }
0x113b   :  { %v3569_v6 = vadd.f32 %v3568_v53, %v3527_v21 }
0x113d   :  { %v3599_v20 = vadd.f32 %v3598_v54, %v3569_v6 }
0x113f   :  { %v3626_v22 = vadd.f32 %v3625_v4, %v3599_v20  ;;  %v6561_v4 = vld [vmem:[#allocation12_spill] sm:$0xff]  ;;  %v6562_v20 = vld [vmem:[#allocation13_spill] sm:$0xff] }
0x1142   :  { %v3658_v52 = vpop.f32.mrf.mxu2 }
0x1143   :  { %v3659_v49 = vadd.f32 %v3658_v52, %v3626_v22 }
0x1145   :  { %v6159_v51 = vadd.f32 %v3683_v0, %v3659_v49 }
0x1147   :  { %v3896_v27 = vmul.f32 1.442695, %v6159_v51 }
0x1149   :  { %5100 = vpow2.f32 %v3896_v27  ;;  %v6563_v27 = vld [vmem:[#allocation34_spill] sm:$0xff] }
0x114f   :  { %v5101_v45 = vpop.eup %5100 }
0x1150   :  { %3899 = vrot.lane.b32.xlu2 %v5101_v45, %s5184_s18 }
0x1158   :  { %4091 = vrot.lane.b32.xlu2 %v6159_v51, %s5183_s3 }
0x11aa   :  { %v3900_v34 = vpop.permute.xlu2 %3899 }
0x11ab   :  { %v3901_v47 = vsel %vm763_vm9, %v3900_v34, 0  ;;  %v4050_v33 = vsel %vm763_vm9, %v3900_v34, 0.0 }
0x11ac   :  { %v3920_v19 = vand.u32 4294901760, %v3901_v47  ;;  %4051 = vadd.xlane.f32.xlu1 %v4050_v33 }
0x11ae   :  { %v3921_v5 = vsub.f32 %v3901_v47, %v3920_v19  ;;  %3951 = vmatmul.f32.vlgmr.msra.gmra.mxu3 %v3920_v19 }
0x11af   :  { %4238 = vmatpush.msra.mxu3 %v5339_v57 }
0x11b0   :  { %v3922_v41 = vand.u32 4294901760, %v3921_v5  ;;  %3975 = vmatmul.f32.vlgmr.msrb.gmra.mxu0 %v3921_v5 }
0x11b1   :  { %4240 = vmatpush.msra.mxu3 %v5361_v63  ;;  %4267 = vmatpush.msrb.mxu0 %v5349_v59  ;;  %v6191_v59 = vpop.f32.mrf.mxu3 }
0x11b2   :  { %v3923_v31 = vsub.f32 %v3921_v5, %v3922_v41  ;;  %3999 = vmatmul.f32.vlgmr.msrb.gmra.mxu1 %v3922_v41 }
0x11b3   :  { %4242 = vmatpush.msra.mxu3 %v5381_v10  ;;  %4298 = vmatpush.msrb.mxu1 %v5339_v57 }
0x11b4   :  { %v3924_v30 = vand.u32 4294901760, %v3923_v31  ;;  %4271 = vmatpush.msrb.mxu0 %v5368_v3  ;;  %v6195_v3 = vpop.f32.mrf.mxu0  ;;  %v6564_v31 = vld [vmem:[#allocation35_spill] sm:$0xff] }
0x11b5   :  { %4244 = vmatpush.msra.mxu3 %v5428_v35  ;;  %4300 = vmatpush.msrb.mxu1 %v5361_v63  ;;  %v6193_v63 = vpop.f32.mrf.mxu2 }
0x11b6   :  { %3925 = vmatmul.f32.vlgmr.msra.gmra.mxu2 %v3924_v30  ;;  %4045 = vmatmul.f32.vlgmr.msrb.gmra.mxu3 %v3920_v19 }
0x11b7   :  { %4209 = vmatpush.msra.mxu2 %v5345_v58  ;;  %4302 = vmatpush.msrb.mxu1 %v5381_v10  ;;  %v6558_v10 = vld [vmem:[#allocation22_spill] sm:$0xff] }
0x11b8   :  { %4356 = vmatpush.msrb.mxu3 %v5689_v55  ;;  %4275 = vmatpush.msrb.mxu0 %v5397_v17 }
0x11b9   :  { %4212 = vmatpush.msra.mxu2 %v5365_v1  ;;  %4304 = vmatpush.msrb.mxu1 %v5428_v35 }
0x11ba   :  { %4362 = vmatpush.msrb.mxu3 %v5701_v29  ;;  %4279 = vmatpush.msrb.mxu0 %v5442_v40  ;;  %v6560_v40 = vld [vmem:[#allocation24_spill] sm:$0xff] }
0x11bb   :  { %4215 = vmatpush.msra.mxu2 %v5392_v15  ;;  %v6559_v15 = vld [vmem:[#allocation28_spill] sm:$0xff] }
0x11bc   :  { %4368 = vmatpush.msrb.mxu3 %v5709_v12  ;;  %v216_v17 = vadd.f32 %v6559_v15, %v6558_v10 }
0x11bd   :  { %4218 = vmatpush.msra.mxu2 %v5437_v39  ;;  %v6199_v39 = vpop.f32.mrf.mxu1 }
0x11be   :  { %4023 = vmatmul.f32.vlgmr.msrb.gmra.mxu2 %v3920_v19  ;;  %4374 = vmatpush.msrb.mxu3 %v6521_v18  ;;  %v305_v32 = vadd.f32 %v6560_v40, %v216_v17 }
0x11bf   :  { %4323 = vmatpush.msrb.mxu2 %v5652_v42 }
0x11c0   :  { %v372_v23 = vadd.f32 %v6561_v4, %v305_v32 }
0x11c1   :  { %4325 = vmatpush.msrb.mxu2 %v5658_v56 }
0x11c2   :  { %v438_v22 = vadd.f32 %v6562_v20, %v372_v23  ;;  %v4092_v23 = vpop.permute.xlu2 %4091 }
0x11c3   :  { %4327 = vmatpush.msrb.mxu2 %v5670_v7 }
0x11c4   :  { %v509_v45 = vadd.f32 %v6563_v27, %v438_v22 }
0x11c5   :  { %4329 = vmatpush.msrb.mxu2 %v5684_v60 }
0x11c6   :  { %v562_v30 = vadd.f32 %v6564_v31, %v509_v45 }
0x121f   :  { %v4052_v57 = vpop.xlane.xlu1 %4051 }
0x1220   :  { %5102 = vrcp.f32 %v4052_v57  ;;  %v4064_v21 = vand.u32 2147483648, %v4052_v57  ;;  %vm4058_vm8 = vweird.f32 %v4052_v57  ;;  %v4062_v49 = vand.u32 2147483647, %v4052_v57 }
0x1222   :  { %v4065_v33 = vor.u32 1.1754944e-38, %v4064_v21  ;;  %vm4063_vm11 = vcmp.eq.f32.partialorder %v4062_v49, 8.507059e+37  ;;  %v6212_v21 = vld [vmem:[%s6457_s1] sm:$0xff] }
0x1226   :  { %v5103_v58 = vpop.eup %5102 }
0x1227   :  { %v4054_v1 = vmul.f32 %v5103_v58, %v4052_v57  ;;  %vm4059_vm6 = vweird.f32 %v5103_v58 }
0x1228   :  { %vm4060_vm10 = vmor %vm4058_vm8, %vm4059_vm6 }
0x1229   :  { %v4055_v35 = vsub.f32 1.0, %v4054_v1 }
0x122b   :  { %v4056_v48 = vmul.f32 %v5103_v58, %v4055_v35 }
0x122d   :  { %v3976_v54 = vpop.f32.mrf.mxu0  ;;  %v4057_v53 = vadd.f32 %v5103_v58, %v4056_v48 }
0x122f   :  { %v4000_v6 = vpop.f32.mrf.mxu1  ;;  %v4061_v47 = vsel %vm4060_vm10, %v5103_v58, %v4057_v53  ;;  %v5190_v53 = vmov 5  }
0x1230   :  { %v4066_v41 = vsel %vm4063_vm11, %v4065_v33, %v4061_v47  ;;  %5033 = vset.pattern.permute.xlu2 %v5190_v53 }
0x1231   :  { %v3952_v62 = vpop.f32.mrf.mxu3  ;;  %4110 = vperm.xlu2 %5033, %v6212_v21  }
0x1239   :  { %v3926_v28 = vpop.f32.mrf.mxu2  ;;  %v4046_v19 = vpop.f32.mrf.mxu3 }
0x123a   :  { %v3953_v11 = vadd.f32 %v3952_v62, %v3926_v28 }
0x123c   :  { %v3977_v50 = vadd.f32 %v3976_v54, %v3953_v11 }
0x123e   :  { %v4001_v52 = vadd.f32 %v4000_v6, %v3977_v50 }
0x1241   :  { %v4024_v0 = vpop.f32.mrf.mxu2 }
0x1242   :  { %v4025_v34 = vadd.f32 %v4024_v0, %v4001_v52 }
0x1244   :  { %v4047_v5 = vadd.f32 %v4046_v19, %v4025_v34 }
0x1246   :  { %v4068_v1 = vmul.f32 %v4066_v41, %v4047_v5 }
0x1248   :  { %v4069_v10 = vadd.f32 %v4068_v1, %v562_v30 }
0x124a   :  { %v4070_v15 = vadd.f32 %v4069_v10, %v6159_v51 }
0x124c   :  { %v5004_v17 = vmul.f32 -1.442695, %v4070_v15 }
0x124e   :  { %5104 = vpow2.f32 %v5004_v17 }
0x1254   :  { %v5105_v57 = vpop.eup %5104 }
0x1255   :  { %v4074_v35 = vadd.f32 1.0, %v5105_v57 }
0x1257   :  { %5106 = vrcp.f32 %v4074_v35  ;;  %v4086_v58 = vand.u32 2147483648, %v4074_v35  ;;  %v4084_v48 = vand.u32 2147483647, %v4074_v35  ;;  %vm4080_vm13 = vweird.f32 %v4074_v35 }
0x1259   :  { %v4087_v54 = vor.u32 1.1754944e-38, %v4086_v58  ;;  %vm4085_vm15 = vcmp.eq.f32.partialorder %v4084_v48, 8.507059e+37 }
0x125d   :  { %v5107_v40 = vpop.eup %5106 }
0x125e   :  { %v4076_v32 = vmul.f32 %v5107_v40, %v4074_v35  ;;  %vm4081_vm12 = vweird.f32 %v5107_v40 }
0x125f   :  { %vm4082_vm14 = vmor %vm4080_vm13, %vm4081_vm12 }
0x1260   :  { %v4077_v62 = vsub.f32 1.0, %v4076_v32 }
0x1262   :  { %v4078_v28 = vmul.f32 %v5107_v40, %v4077_v62 }
0x1264   :  { %v4079_v11 = vadd.f32 %v5107_v40, %v4078_v28 }
0x1266   :  { %v4083_v4 = vsel %vm4082_vm14, %v5107_v40, %v4079_v11  ;;  %v6565_v11 = vmov 1  }
0x1267   :  { %v4088_v51 = vsel %vm4085_vm15, %v4087_v54, %v4083_v4  ;;  %v6566_v54 = vld [vmem:[#allocation38_spill] sm:$0xff]  ;;  %v6567_v4 = vld [vmem:[#allocation39_spill] sm:$0xff] }
0x1268   :  { %v4094_v50 = vmul.f32 %v4092_v23, %v4088_v51  ;;  %v4101_v49 = vsub.f32 1.0, %v4088_v51  ;;  %v4107_v45 = vmul.f32 %v4088_v51, %v6122_v46  ;;  %v1251_v23 = vadd.f32 %v6567_v4, %v6566_v54  ;;  %v6568_v51 = vld [vmem:[#allocation41_spill] sm:$0xff] }
0x126a   :  { %4096 = vrot.lane.b32.xlu0 %v4094_v50, %s5183_s3  ;;  %v1281_v50 = vadd.f32 %v6568_v51, %v1251_v23 }
0x128b   :  { %v4111_v52 = vpop.permute.xlu2 %4110 }
0x12dc   :  { %v4097_v6 = vpop.permute.xlu0 %4096 }
0x12dd   :  { %v4099_v20 = vadd.f32 %v4097_v6, %v4069_v10  ;;  %v6569_v6 = vld [vmem:[#allocation40_spill] sm:$0xff] }
0x12df   :  { %5108 = vtanh.f32 %v4099_v20  ;;  %v1308_v20 = vadd.f32 %v6569_v6, %v1281_v50 }
0x12e5   :  { %v5109_v22 = vpop.eup %5108 }
0x12e6   :  { %4103 = vrot.lane.b32.xlu2 %v5109_v22, %s5185_s22  ;;  %v6570_v22 = vld [vmem:[#allocation42_spill] sm:$0xff] }
0x12ee   :  { %4115 = vperm.xlu2 %5033, %v5559_v2  }
0x1340   :  { %v4104_v0 = vpop.permute.xlu2 %4103 }
0x1341   :  { %v4106_v27 = vmul.f32 %v4104_v0, %v4101_v49  ;;  %v6274_v49 = vld [vmem:[%s6464_s8] ss:$0 sm:$0xff]  ;;  %v6571_v0 = vld [vmem:[#allocation43_spill] sm:$0xff] }
0x1343   :  { %v4108_v34 = vadd.f32 %v4107_v45, %v4106_v27 }
0x1345   :  { %v4113_v33 = vmul.f32 %v4111_v52, %v4108_v34  ;;  %v1341_v52 = vadd.f32 %v6570_v22, %v1308_v20  ;;  %v6577_v22 = vld [vmem:[#allocation37_spill] sm:$0xff] }
0x1348   :  { %v4116_v47 = vpop.permute.xlu2 %4115 }
0x1349   :  { %v4118_v19 = vmul.f32 %v4116_v47, %v6122_v46 }
0x134b   :  { %v6219_v5 = vadd.f32 %v4118_v19, %v4113_v33 }
0x134d   :  { %4121 = vrot.lane.b32.xlu0 %v6219_v5, %s5185_s22 }
0x13bf   :  { %v4122_v41 = vpop.permute.xlu0 %4121 }
0x13c0   :  { %v4123_v31 = vsel %vm569_vm7, %v4122_v41, 0 }
0x13c1   :  { %v4145_v30 = vand.u32 4294901760, %v4123_v31 }
0x13c3   :  { %v4146_v1 = vsub.f32 %v4123_v31, %v4145_v30  ;;  %4191 = vmatmul.f32.vlgmr.msra.gmra.mxu1 %v4145_v30 }
0x13c4   :  { %4423 = vmatpush.msra.mxu1 %v5652_v42 }
0x13c5   :  { %v4147_v10 = vand.u32 4294901760, %v4146_v1  ;;  %4221 = vmatmul.f32.vlgmr.msra.gmra.mxu2 %v4146_v1 }
0x13c6   :  { %4425 = vmatpush.msra.mxu1 %v5658_v56  ;;  %4452 = vmatpush.msra.mxu2 %v5668_v38 }
0x13c7   :  { %v4148_v46 = vsub.f32 %v4146_v1, %v4147_v10  ;;  %4248 = vmatmul.f32.vlgmr.msra.gmra.mxu3 %v4147_v10 }
0x13c8   :  { %4427 = vmatpush.msra.mxu1 %v5670_v7  ;;  %4456 = vmatpush.msra.mxu2 %v5682_v43 }
0x13c9   :  { %v4149_v15 = vand.u32 4294901760, %v4148_v46  ;;  %4483 = vmatpush.msra.mxu3 %v5652_v42 }
0x13ca   :  { %4429 = vmatpush.msra.mxu1 %v5684_v60  ;;  %4460 = vmatpush.msra.mxu2 %v5695_v25 }
0x13cb   :  { %4150 = vmatmul.f32.vlgmr.msra.gmra.mxu0 %v4149_v15  ;;  %4306 = vmatmul.f32.vlgmr.msrb.gmra.mxu1 %v4145_v30 }
0x13cc   :  { %4485 = vmatpush.msra.mxu3 %v5658_v56  ;;  %4394 = vmatpush.msra.mxu0 %v5661_v37 }
0x13cd   :  { %4335 = vmatmul.f32.vlgmr.msrb.gmra.mxu2 %v4149_v15  ;;  %4573 = vmatpush.msrb.mxu1 %v5580_v16 }
0x13ce   :  { %4464 = vmatpush.msra.mxu2 %v5706_v24  ;;  %4487 = vmatpush.msra.mxu3 %v5670_v7 }
0x13cf   :  { %4376 = vmatmul.f32.vlgmr.msrb.gmra.mxu3 %v4145_v30  ;;  %4397 = vmatpush.msra.mxu0 %v5673_v14 }
0x13d0   :  { %4489 = vmatpush.msra.mxu3 %v5684_v60  ;;  %4596 = vmatpush.msrb.mxu2 %v5571_v9 }
0x13d1   :  { %4400 = vmatpush.msra.mxu0 %v5687_v36 }
0x13d2   :  { %4619 = vmatpush.msrb.mxu3 %v5568_v8 }
0x13d3   :  { %4281 = vmatmul.f32.vlgmr.msrb.gmra.mxu0 %v4145_v30  ;;  %4433 = vmatmul.f32.vlgmr.msra.gmra.mxu1 %v4147_v10 }
0x13d4   :  { %4403 = vmatpush.msra.mxu0 %v5698_v26  ;;  %4667 = vmatpush.msra.mxu1 %v5568_v8 }
0x13d5   :  { %4466 = vmatmul.f32.vlgmr.msra.gmra.mxu2 %v4145_v30 }
0x13d6   :  { %4543 = vmatpush.msrb.mxu0 %v5568_v8  ;;  %4762 = vmatpush.msra.mxu2 %v5652_v42  ;;  %v5191_v8 = vmov 6  }
0x13d7   :  { %4491 = vmatmul.f32.vlgmr.msra.gmra.mxu3 %v4145_v30  ;;  %5034 = vset.pattern.permute.xlu0 %v5191_v8 }
0x13d8   :  { %4795 = vmatpush.msra.mxu3 %v5689_v55  ;;  %4764 = vmatpush.msra.mxu2 %v5658_v56 }
0x13d9   :  { %5035 = vset.pattern.permute.xlu2 %v5191_v8 }
0x13da   :  { %4801 = vmatpush.msra.mxu3 %v5701_v29  ;;  %4766 = vmatpush.msra.mxu2 %v5670_v7 }
0x13db   :  { %4406 = vmatmul.f32.vlgmr.msra.gmra.mxu0 %v4146_v1 }
0x13dc   :  { %4645 = vmatpush.msra.mxu0 %v5575_v13  ;;  %4807 = vmatpush.msra.mxu3 %v5709_v12 }
0x13dd   :  { %4768 = vmatpush.msra.mxu2 %v5684_v60 }
0x13de   :  { %4813 = vmatpush.msra.mxu3 %v6521_v18 }
0x1440   :  { %v4192_v9 = vpop.f32.mrf.mxu1 }
0x1448   :  { %v4151_v16 = vpop.f32.mrf.mxu0  ;;  %v4222_v55 = vpop.f32.mrf.mxu2 }
0x1449   :  { %v4193_v29 = vadd.f32 %v4192_v9, %v4151_v16  ;;  %v4307_v13 = vpop.f32.mrf.mxu1 }
0x144a   :  { %v4249_v17 = vpop.f32.mrf.mxu3 }
0x144b   :  { %v4223_v57 = vadd.f32 %v4222_v55, %v4193_v29  ;;  %v6574_v55 = vld [vmem:[#allocation14_spill] sm:$0xff] }
0x144d   :  { %v4250_v35 = vadd.f32 %v4249_v17, %v4223_v57 }
0x1450   :  { %v4282_v40 = vpop.f32.mrf.mxu0  ;;  %v4336_v12 = vpop.f32.mrf.mxu2 }
0x1451   :  { %v4283_v32 = vadd.f32 %v4282_v40, %v4250_v35 }
0x1452   :  { %v4377_v62 = vpop.f32.mrf.mxu3 }
0x1453   :  { %v6256_v58 = vadd.f32 %v4307_v13, %v4283_v32  ;;  %v6258_v18 = vadd.f32 %v4377_v62, %v4336_v12  ;;  %v6575_v13 = vld [vmem:[#allocation15_spill] sm:$0xff] }
0x1455   :  { %v4520_v28 = vmul.f32 1.442695, %v6256_v58  ;;  %4715 = vrot.lane.b32.xlu0 %v6256_v58, %s5183_s3 }
0x1457   :  { %5110 = vpow2.f32 %v4520_v28 }
0x145d   :  { %v5111_v48 = vpop.eup %5110  ;;  %4734 = vperm.xlu0 %5034, %v6212_v21   ;;  %v1366_v21 = vadd.f32 %v6571_v0, %v1341_v52 }
0x145e   :  { %4523 = vrot.lane.b32.xlu2 %v5111_v48, %s5184_s18  ;;  %v6576_v48 = vld [vmem:[#allocation36_spill] sm:$0xff] }
0x145f   :  { %v6278_v27 = vadd.f32 %v6274_v49, %v1366_v21 }
0x1465   :  { %5038 = vset.pattern.permute.xlu0 %v6565_v11 }
0x1487   :  { %1372 = vmax.xlane.f32.xlu0 %v6278_v27 }
0x14b8   :  { %v4524_v45 = vpop.permute.xlu2 %4523 }
0x14b9   :  { %v4525_v34 = vsel %vm763_vm9, %v4524_v45, 0  ;;  %v4674_v47 = vsel %vm763_vm9, %v4524_v45, 0.0 }
0x14ba   :  { %v4544_v33 = vand.u32 4294901760, %v4525_v34  ;;  %4675 = vadd.xlane.f32.xlu1 %v4674_v47 }
0x14bc   :  { %v4545_v19 = vsub.f32 %v4525_v34, %v4544_v33  ;;  %4575 = vmatmul.f32.vlgmr.msrb.gmra.mxu1 %v4544_v33 }
0x14bd   :  { %4862 = vmatpush.msrb.mxu1 %v5652_v42 }
0x14be   :  { %v4546_v41 = vand.u32 4294901760, %v4545_v19  ;;  %4599 = vmatmul.f32.vlgmr.msrb.gmra.mxu2 %v4545_v19 }
0x14bf   :  { %4864 = vmatpush.msrb.mxu1 %v5658_v56  ;;  %4891 = vmatpush.msrb.mxu2 %v5668_v38  ;;  %v6299_v38 = vpop.f32.mrf.mxu1 }
0x14c0   :  { %v4547_v31 = vsub.f32 %v4545_v19, %v4546_v41  ;;  %4623 = vmatmul.f32.vlgmr.msrb.gmra.mxu3 %v4546_v41 }
0x14c1   :  { %4866 = vmatpush.msrb.mxu1 %v5670_v7  ;;  %4922 = vmatpush.msrb.mxu3 %v5652_v42 }
0x14c2   :  { %v4548_v30 = vand.u32 4294901760, %v4547_v31  ;;  %4895 = vmatpush.msrb.mxu2 %v5682_v43  ;;  %v6303_v43 = vpop.f32.mrf.mxu2 }
0x14c3   :  { %4868 = vmatpush.msrb.mxu1 %v5684_v60  ;;  %4924 = vmatpush.msrb.mxu3 %v5658_v56 }
0x14c4   :  { %4549 = vmatmul.f32.vlgmr.msrb.gmra.mxu0 %v4548_v30  ;;  %4669 = vmatmul.f32.vlgmr.msra.gmra.mxu1 %v4544_v33 }
0x14c5   :  { %4833 = vmatpush.msrb.mxu0 %v5661_v37  ;;  %4926 = vmatpush.msrb.mxu3 %v5670_v7  ;;  %v6301_v37 = vpop.f32.mrf.mxu0 }
0x14c6   :  { %4899 = vmatpush.msrb.mxu2 %v5695_v25 }
0x14c7   :  { %4836 = vmatpush.msrb.mxu0 %v5673_v14  ;;  %4928 = vmatpush.msrb.mxu3 %v5684_v60  ;;  %v5151_v14 = vld [vmem:[%s6463_s7] ss:$0 sm:$0xff] }
0x14c8   :  { %4903 = vmatpush.msrb.mxu2 %v5706_v24  ;;  %v6572_v60 = vld [vmem:[#allocation25_spill] sm:$0xff]  ;;  %v6309_v24 = vpop.f32.mrf.mxu3 }
0x14c9   :  { %4839 = vmatpush.msrb.mxu0 %v5687_v36  ;;  %v224_v25 = vadd.f32 %v5151_v14, %v6572_v60 }
0x14cb   :  { %4842 = vmatpush.msrb.mxu0 %v5698_v26  ;;  %v6573_v26 = vld [vmem:[#allocation26_spill] sm:$0xff] }
0x14cc   :  { %4647 = vmatmul.f32.vlgmr.msra.gmra.mxu0 %v4544_v33  ;;  %v309_v1 = vadd.f32 %v6573_v26, %v224_v25  ;;  %v4716_v25 = vpop.permute.xlu0 %4715 }
0x14ce   :  { %v377_v29 = vadd.f32 %v6574_v55, %v309_v1 }
0x14d0   :  { %v444_v32 = vadd.f32 %v6575_v13, %v377_v29  ;;  %v6582_v29 = vld [vmem:[#allocation27_spill] sm:$0xff]  ;;  %v6585_v13 = vld [vmem:[#allocation6_spill] sm:$0xff] }
0x14d2   :  { %v513_v54 = vadd.f32 %v6576_v48, %v444_v32 }
0x14d4   :  { %v566_v52 = vadd.f32 %v6577_v22, %v513_v54 }
0x152d   :  { %v4676_v42 = vpop.xlane.xlu1 %4675 }
0x152e   :  { %5112 = vrcp.f32 %v4676_v42  ;;  %v4688_v35 = vand.u32 2147483648, %v4676_v42  ;;  %vm4682_vm0 = vweird.f32 %v4676_v42  ;;  %v4686_v62 = vand.u32 2147483647, %v4676_v42 }
0x1530   :  { %v4689_v51 = vor.u32 1.1754944e-38, %v4688_v35  ;;  %vm4687_vm2 = vcmp.eq.f32.partialorder %v4686_v62, 8.507059e+37 }
0x1534   :  { %v5113_v56 = vpop.eup %5112 }
0x1535   :  { %v4678_v7 = vmul.f32 %v5113_v56, %v4676_v42  ;;  %vm4683_vm9 = vweird.f32 %v5113_v56 }
0x1536   :  { %vm4684_vm1 = vmor %vm4682_vm0, %vm4683_vm9 }
0x1537   :  { %v4679_v36 = vsub.f32 1.0, %v4678_v7 }
0x1539   :  { %v4576_v10 = vpop.f32.mrf.mxu1  ;;  %v4680_v15 = vmul.f32 %v5113_v56, %v4679_v36 }
0x153b   :  { %v4681_v57 = vadd.f32 %v5113_v56, %v4680_v15  ;;  %v6578_v15 = vmov 0.0  }
0x153d   :  { %v4685_v23 = vsel %vm4684_vm1, %v5113_v56, %v4681_v57  ;;  %v6583_v57 = vld [vmem:[#allocation46_spill] sm:$0xff] }
0x153e   :  { %v4690_v20 = vsel %vm4687_vm2, %v4689_v51, %v4685_v23  ;;  %v6589_v51 = vld [vmem:[#allocation29_spill] sm:$0xff] }
0x1541   :  { %v4550_v46 = vpop.f32.mrf.mxu0  ;;  %v4600_v16 = vpop.f32.mrf.mxu2 }
0x1542   :  { %v4577_v9 = vadd.f32 %v4576_v10, %v4550_v46  ;;  %v4670_v50 = vpop.f32.mrf.mxu1  ;;  %v6324_v46 = vld [vmem:[%s6458_s2] sm:$0xff] }
0x1543   :  { %v4624_v40 = vpop.f32.mrf.mxu3  ;;  %vm1388_vm8 = vcmp.ne.s32.totalorder %v6324_v46, 2 }
0x1544   :  { %v4601_v17 = vadd.f32 %v4600_v16, %v4577_v9  ;;  %v6329_v9 = vsel %vm1388_vm8, 1.0, %v6578_v15  ;;  %v6581_v16 = vld [vmem:[#allocation45_spill] sm:$0xff] }
0x1546   :  { %v4625_v12 = vadd.f32 %v4624_v40, %v4601_v17  ;;  %v6584_v40 = vld [vmem:[#allocation23_spill] sm:$0xff] }
0x1547   :  { %v2536_v32 = vadd.f32 %v6585_v13, %v6584_v40  ;;  %v6596_v13 = vmov 3  }
0x1549   :  { %v4648_v28 = vpop.f32.mrf.mxu0 }
0x154a   :  { %v4649_v4 = vadd.f32 %v4648_v28, %v4625_v12  ;;  %v6586_v12 = vld [vmem:[#allocation16_spill] sm:$0xff]  ;;  %v6587_v28 = vld [vmem:[#allocation17_spill] sm:$0xff] }
0x154b   :  { %v2563_v48 = vadd.f32 %v6587_v28, %v2536_v32 }
0x154c   :  { %v4671_v6 = vadd.f32 %v4670_v50, %v4649_v4  ;;  %v6588_v4 = vld [vmem:[#allocation7_spill] sm:$0xff] }
0x154d   :  { %v2596_v23 = vadd.f32 %v6588_v4, %v2563_v48 }
0x154e   :  { %v4692_v0 = vmul.f32 %v4690_v20, %v4671_v6 }
0x154f   :  { %v2621_v50 = vadd.f32 %v6589_v51, %v2596_v23 }
0x1550   :  { %v4693_v21 = vadd.f32 %v4692_v0, %v566_v52  ;;  %v6590_v52 = vld [vmem:[#allocation18_spill] sm:$0xff]  ;;  %v6591_v0 = vld [vmem:[#allocation8_spill] sm:$0xff] }
0x1551   :  { %v6348_v6 = vadd.f32 %v6274_v49, %v2621_v50 }
0x1552   :  { %v4694_v45 = vadd.f32 %v4693_v21, %v6256_v58 }
0x1554   :  { %v5006_v34 = vmul.f32 -1.442695, %v4694_v45 }
0x1556   :  { %5114 = vpow2.f32 %v5006_v34 }
0x155c   :  { %v5115_v47 = vpop.eup %5114 }
0x155d   :  { %v4698_v33 = vadd.f32 1.0, %v5115_v47 }
0x155f   :  { %5116 = vrcp.f32 %v4698_v33  ;;  %v4710_v30 = vand.u32 2147483648, %v4698_v33  ;;  %v4708_v56 = vand.u32 2147483647, %v4698_v33  ;;  %vm4704_vm4 = vweird.f32 %v4698_v33 }
0x1561   :  { %v4711_v14 = vor.u32 1.1754944e-38, %v4710_v30  ;;  %vm4709_vm6 = vcmp.eq.f32.partialorder %v4708_v56, 8.507059e+37 }
0x1565   :  { %v5117_v19 = vpop.eup %5116 }
0x1566   :  { %v4700_v41 = vmul.f32 %v5117_v19, %v4698_v33  ;;  %vm4705_vm3 = vweird.f32 %v5117_v19 }
0x1567   :  { %vm4706_vm5 = vmor %vm4704_vm4, %vm4705_vm3 }
0x1568   :  { %v4701_v31 = vsub.f32 1.0, %v4700_v41  ;;  %v6592_v41 = vld [vmem:[#allocation19_spill] sm:$0xff] }
0x156a   :  { %v4702_v42 = vmul.f32 %v5117_v19, %v4701_v31 }
0x156c   :  { %v4703_v7 = vadd.f32 %v5117_v19, %v4702_v42 }
0x156e   :  { %v4707_v60 = vsel %vm4706_vm5, %v5117_v19, %v4703_v7  ;;  %v4735_v19 = vpop.permute.xlu0 %4734 }
0x156f   :  { %v4712_v58 = vsel %vm4709_vm6, %v4711_v14, %v4707_v60  ;;  %v6593_v14 = vld [vmem:[#allocation9_spill] sm:$0xff] }
0x1570   :  { %v4718_v36 = vmul.f32 %v4716_v25, %v4712_v58  ;;  %v4725_v20 = vsub.f32 1.0, %v4712_v58  ;;  %v4731_v45 = vmul.f32 %v4712_v58, %v6219_v5  ;;  %v3784_v25 = vadd.f32 %v6193_v63, %v6157_v61 }
0x1572   :  { %4720 = vrot.lane.b32.xlu2 %v4718_v36, %s5183_s3  ;;  %v6594_v36 = vld [vmem:[#allocation30_spill] sm:$0xff] }
0x157a   :  { %4739 = vperm.xlu2 %5035, %v5559_v2   ;;  %v6579_v2 = vmov 2  }
0x1582   :  { %5037 = vset.pattern.permute.xlu2 %v6565_v11  ;;  %v6580_v11 = vld [vmem:[#allocation44_spill] sm:$0xff] }
0x1583   :  { %v1912_v55 = vadd.f32 %v6581_v16, %v6580_v11 }
0x1585   :  { %v1939_v17 = vadd.f32 %v6582_v29, %v1912_v55 }
0x1587   :  { %v1972_v35 = vadd.f32 %v6583_v57, %v1939_v17 }
0x1589   :  { %v1997_v62 = vadd.f32 %v6586_v12, %v1972_v35 }
0x158b   :  { %v6342_v54 = vadd.f32 %v6274_v49, %v1997_v62 }
0x15cc   :  { %v4721_v26 = vpop.permute.xlu2 %4720 }
0x15cd   :  { %v4723_v1 = vadd.f32 %v4721_v26, %v4693_v21  ;;  %v3160_v21 = vadd.f32 %v6591_v0, %v6590_v52  ;;  %v3811_v26 = vadd.f32 %v6191_v59, %v3784_v25  ;;  %v1373_v59 = vpop.xlane.xlu0 %1372 }
0x15ce   :  { %v1374_v29 = vsub.f32 %v6278_v27, %v1373_v59 }
0x15cf   :  { %5118 = vtanh.f32 %v4723_v1  ;;  %v3187_v31 = vadd.f32 %v6592_v41, %v3160_v21  ;;  %v6595_v1 = vld [vmem:[#allocation5_spill] sm:$0xff]  ;;  %v4408_v41 = vadd.f32 %v6301_v37, %v6258_v18 }
0x15d0   :  { %v1375_v17 = vmul.f32 1.442695, %v1374_v29 }
0x15d1   :  { %v3220_v60 = vadd.f32 %v6593_v14, %v3187_v31 }
0x15d2   :  { %5120 = vpow2.f32 %v1375_v17 }
0x15d3   :  { %v3245_v58 = vadd.f32 %v6594_v36, %v3220_v60 }
0x15d4   :  { %v4740_v47 = vpop.permute.xlu2 %4739 }
0x15d5   :  { %v5119_v10 = vpop.eup %5118  ;;  %v4742_v30 = vmul.f32 %v4740_v47, %v6219_v5  ;;  %v3844_v5 = vadd.f32 %v6195_v3, %v3811_v26 }
0x15d6   :  { %4727 = vrot.lane.b32.xlu1 %v5119_v10, %s5185_s22  ;;  %v6366_v10 = vadd.f32 %v6274_v49, %v3245_v58 }
0x15d7   :  { %v3869_v61 = vadd.f32 %v6199_v39, %v3844_v5 }
0x15d8   :  { %v5121_v3 = vpop.eup %5120 }
0x15d9   :  { %v6375_v63 = vadd.f32 %v6274_v49, %v3869_v61 }
0x15de   :  { %1383 = vperm.xlu1 %5036, %v6324_v46  }
0x15e6   :  { %1393 = vperm.xlu1 %5036, %v6329_v9  }
0x15ee   :  { %5039 = vset.pattern.permute.xlu1 %v6579_v2 }
0x1610   :  { %2000 = vmax.xlane.f32.xlu1 %v6342_v54 }
0x1618   :  { %2624 = vmax.xlane.f32.xlu1 %v6348_v6 }
0x1631   :  { %2635 = vperm.xlu1 %5039, %v6324_v46  }
0x1639   :  { %5043 = vset.pattern.permute.xlu1 %v5189_v44 }
0x1648   :  { %v4728_v22 = vpop.permute.xlu1 %4727 }
0x1649   :  { %v4730_v34 = vmul.f32 %v4728_v22, %v4725_v20 }
0x164b   :  { %v4732_v33 = vadd.f32 %v4731_v45, %v4730_v34 }
0x164d   :  { %v4737_v42 = vmul.f32 %v4735_v19, %v4732_v33 }
0x164f   :  { %v4743_v56 = vadd.f32 %v4742_v30, %v4737_v42  ;;  %v4435_v42 = vadd.f32 %v6299_v38, %v4408_v41 }
0x1650   :  { %v1384_v7 = vpop.permute.xlu1 %1383 }
0x1651   :  { %4745 = vrot.lane.b32.xlu2 %v4743_v56, %s5185_s22  ;;  %vm1385_vm10 = vcmp.eq.s32.totalorder %v6595_v1, %v1384_v7  ;;  %v4468_v14 = vadd.f32 %v6303_v43, %v4435_v42 }
0x1652   :  { %v4994_v11 = vsel %vm1385_vm10, 1.0, %v6578_v15 }
0x1653   :  { %v4493_v25 = vadd.f32 %v6309_v24, %v4468_v14 }
0x1655   :  { %v6414_v36 = vadd.f32 %v6274_v49, %v4493_v25 }
0x1658   :  { %v1394_v16 = vpop.permute.xlu1 %1393 }
0x1659   :  { %v6371_v55 = vmul.f32 %v4994_v11, %v1394_v16 }
0x165b   :  { %3248 = vmax.xlane.f32.xlu1 %v6366_v10 }
0x1663   :  { %3872 = vmax.xlane.f32.xlu1 %v6375_v63 }
0x167a   :  { %1377 = vadd.xlane.f32.xlu2 %v5121_v3 }
0x1683   :  { %v6379_v57 = vpop.xlane.xlu1 %2000 }
0x1684   :  { %v2002_v35 = vsub.f32 %v6342_v54, %v6379_v57 }
0x1686   :  { %v2003_v40 = vmul.f32 1.442695, %v2002_v35 }
0x1688   :  { %5122 = vpow2.f32 %v2003_v40 }
0x168b   :  { %v6386_v32 = vpop.xlane.xlu1 %2624 }
0x168c   :  { %v2626_v62 = vsub.f32 %v6348_v6, %v6386_v32 }
0x168e   :  { %v5123_v39 = vpop.eup %5122  ;;  %v2627_v23 = vmul.f32 1.442695, %v2626_v62 }
0x168f   :  { %2005 = vadd.xlane.f32.xlu0 %v5123_v39 }
0x1690   :  { %5124 = vpow2.f32 %v2627_v23 }
0x1692   :  { %2011 = vperm.xlu2 %5037, %v6324_v46  }
0x1696   :  { %v5125_v20 = vpop.eup %5124 }
0x169a   :  { %5041 = vset.pattern.permute.xlu2 %v6596_v13 }
0x16a3   :  { %2017 = vperm.xlu0 %5038, %v6329_v9   ;;  %v2636_v22 = vpop.permute.xlu1 %2635 }
0x16a4   :  { %vm2637_vm11 = vcmp.eq.s32.totalorder %v6595_v1, %v2636_v22 }
0x16a5   :  { %v4999_v61 = vsel %vm2637_vm11, 1.0, %v6578_v15 }
0x16ab   :  { %5040 = vset.pattern.permute.xlu0 %v6579_v2  ;;  %v4746_v12 = vpop.permute.xlu2 %4745 }
0x16ac   :  { %v4747_v28 = vsel %vm569_vm7, %v4746_v12, 0  ;;  %2641 = vperm.xlu0 %5040, %v6329_v9  }
0x16ad   :  { %v4769_v48 = vand.u32 4294901760, %v4747_v28 }
0x16af   :  { %v4770_v4 = vsub.f32 %v4747_v28, %v4769_v48  ;;  %4815 = vmatmul.f32.vlgmr.msra.gmra.mxu3 %v4769_v48 }
0x16b1   :  { %v4771_v51 = vand.u32 4294901760, %v4770_v4  ;;  %4845 = vmatmul.f32.vlgmr.msrb.gmra.mxu0 %v4770_v4 }
0x16b3   :  { %v4772_v50 = vsub.f32 %v4770_v4, %v4771_v51  ;;  %4872 = vmatmul.f32.vlgmr.msrb.gmra.mxu1 %v4771_v51 }
0x16b4   :  { %5042 = vset.pattern.permute.xlu0 %v5189_v44 }
0x16b5   :  { %v4773_v2 = vand.u32 4294901760, %v4772_v50 }
0x16b7   :  { %4774 = vmatmul.f32.vlgmr.msra.gmra.mxu2 %v4773_v2  ;;  %4930 = vmatmul.f32.vlgmr.msrb.gmra.mxu3 %v4769_v48 }
0x16bb   :  { %2629 = vadd.xlane.f32.xlu2 %v5125_v20 }
0x16bf   :  { %4905 = vmatmul.f32.vlgmr.msrb.gmra.mxu2 %v4769_v48 }
0x16ce   :  { %v6394_v52 = vpop.xlane.xlu1 %3248 }
0x16cf   :  { %v3250_v0 = vsub.f32 %v6366_v10, %v6394_v52 }
0x16d1   :  { %v3251_v21 = vmul.f32 1.442695, %v3250_v0 }
0x16d3   :  { %5126 = vpow2.f32 %v3251_v21  ;;  %3259 = vperm.xlu2 %5041, %v6324_v46  }
0x16d6   :  { %v6399_v45 = vpop.xlane.xlu1 %3872 }
0x16d7   :  { %v3874_v44 = vsub.f32 %v6375_v63, %v6399_v45 }
0x16d9   :  { %v5127_v34 = vpop.eup %5126  ;;  %v3875_v47 = vmul.f32 1.442695, %v3874_v44 }
0x16da   :  { %3253 = vadd.xlane.f32.xlu0 %v5127_v34 }
0x16db   :  { %5128 = vpow2.f32 %v3875_v47  ;;  %3265 = vperm.xlu2 %5041, %v6329_v9  }
0x16e1   :  { %v5129_v33 = vpop.eup %5128 }
0x16e2   :  { %3877 = vadd.xlane.f32.xlu1 %v5129_v33 }
0x16e3   :  { %5044 = vset.pattern.permute.xlu2 %v5190_v53 }
0x16ed   :  { %v1378_v19 = vpop.xlane.xlu2 %1377 }
0x16ee   :  { %5130 = vlog2.f32 %v1378_v19 }
0x16f4   :  { %v5131_v31 = vpop.eup %5130 }
0x16f5   :  { %v1380_v30 = vmul.f32 0.6931472, %v5131_v31  ;;  %v2012_v38 = vpop.permute.xlu2 %2011 }
0x16f6   :  { %vm2013_vm7 = vcmp.eq.s32.totalorder %v6595_v1, %v2012_v38 }
0x16f7   :  { %v1381_v56 = vadd.f32 %v1380_v30, %v1373_v59  ;;  %v4997_v43 = vsel %vm2013_vm7, 1.0, %v6578_v15 }
0x16f9   :  { %v1397_v7 = vsub.f32 %v1381_v56, %v6278_v27 }
0x16fb   :  { %v1398_v60 = vmul.f32 %v1397_v7, %v6371_v55  ;;  %3889 = vperm.xlu1 %5043, %v6329_v9  }
0x1702   :  { %v2006_v58 = vpop.xlane.xlu0 %2005 }
0x1703   :  { %5132 = vlog2.f32 %v2006_v58 }
0x1704   :  { %4496 = vmax.xlane.f32.xlu2 %v6414_v36 }
0x1709   :  { %v5133_v18 = vpop.eup %5132 }
0x170a   :  { %v2008_v37 = vmul.f32 0.6931472, %v5133_v18 }
0x170c   :  { %v2009_v27 = vadd.f32 %v2008_v37, %v6379_v57 }
0x170e   :  { %v2021_v5 = vsub.f32 %v2009_v27, %v6342_v54 }
0x1715   :  { %v2018_v26 = vpop.permute.xlu0 %2017 }
0x1716   :  { %v2020_v24 = vmul.f32 %v4997_v43, %v2018_v26 }
0x1718   :  { %v2022_v11 = vmul.f32 %v2021_v5, %v2020_v24 }
0x171a   :  { %v2023_v16 = vadd.f32 %v2022_v11, %v1398_v60 }
0x171c   :  { %4507 = vperm.xlu2 %5044, %v6324_v46  }
0x171e   :  { %v2642_v55 = vpop.permute.xlu0 %2641 }
0x171f   :  { %v2644_v59 = vmul.f32 %v4999_v61, %v2642_v55 }
0x1724   :  { %5047 = vset.pattern.permute.xlu2 %v5191_v8 }
0x172e   :  { %v2630_v29 = vpop.xlane.xlu2 %2629  ;;  %v4846_v12 = vpop.f32.mrf.mxu0 }
0x172f   :  { %5134 = vlog2.f32 %v2630_v29 }
0x1730   :  { %v4873_v50 = vpop.f32.mrf.mxu1 }
0x1732   :  { %v4816_v40 = vpop.f32.mrf.mxu3 }
0x1735   :  { %v5135_v17 = vpop.eup %5134 }
0x1736   :  { %v2632_v3 = vmul.f32 0.6931472, %v5135_v17  ;;  %v3260_v57 = vpop.permute.xlu2 %3259 }
0x1737   :  { %vm3261_vm12 = vcmp.eq.s32.totalorder %v6595_v1, %v3260_v57 }
0x1738   :  { %v2633_v54 = vadd.f32 %v2632_v3, %v6386_v32  ;;  %v5001_v28 = vsel %vm3261_vm12, 1.0, %v6578_v15 }
0x173a   :  { %v2645_v35 = vsub.f32 %v2633_v54, %v6348_v6  ;;  %v4775_v39 = vpop.f32.mrf.mxu2  ;;  %v4931_v32 = vpop.f32.mrf.mxu3 }
0x173b   :  { %v4817_v13 = vadd.f32 %v4816_v40, %v4775_v39 }
0x173c   :  { %v2646_v62 = vmul.f32 %v2645_v35, %v2644_v59 }
0x173d   :  { %v4847_v48 = vadd.f32 %v4846_v12, %v4817_v13 }
0x173e   :  { %v2647_v4 = vadd.f32 %v2646_v62, %v2023_v16  ;;  %v3266_v23 = vpop.permute.xlu2 %3265 }
0x173f   :  { %v3268_v51 = vmul.f32 %v5001_v28, %v3266_v23  ;;  %v4874_v2 = vadd.f32 %v4873_v50, %v4847_v48 }
0x1742   :  { %v4906_v20 = vpop.f32.mrf.mxu2 }
0x1743   :  { %v4907_v22 = vadd.f32 %v4906_v20, %v4874_v2 }
0x1745   :  { %v4932_v0 = vadd.f32 %v4931_v32, %v4907_v22 }
0x1747   :  { %v6430_v21 = vadd.f32 %v6274_v49, %v4932_v0 }
0x1749   :  { %4935 = vmax.xlane.f32.xlu0 %v6430_v21 }
0x174d   :  { %v3254_v6 = vpop.xlane.xlu0 %3253 }
0x174e   :  { %5136 = vlog2.f32 %v3254_v6 }
0x1754   :  { %v5137_v44 = vpop.eup %5136 }
0x1755   :  { %v3256_v34 = vmul.f32 0.6931472, %v5137_v44 }
0x1757   :  { %v3257_v47 = vadd.f32 %v3256_v34, %v6394_v52 }
0x1759   :  { %v3269_v33 = vsub.f32 %v3257_v47, %v6366_v10 }
0x175b   :  { %v3270_v19 = vmul.f32 %v3269_v33, %v3268_v51 }
0x175d   :  { %v3271_v41 = vadd.f32 %v3270_v19, %v2647_v4  ;;  %3883 = vperm.xlu0 %5042, %v6324_v46  }
0x1765   :  { %5045 = vset.pattern.permute.xlu0 %v5190_v53  ;;  %v3878_v53 = vpop.xlane.xlu1 %3877 }
0x1766   :  { %4513 = vperm.xlu0 %5045, %v6329_v9  }
0x176e   :  { %5046 = vset.pattern.permute.xlu0 %v5191_v8  ;;  %v3890_v8 = vpop.permute.xlu1 %3889 }
0x176f   :  { %4946 = vperm.xlu0 %5046, %v6324_v46  }
0x1777   :  { %v4497_v49 = vpop.xlane.xlu2 %4496 }
0x1778   :  { %v4498_v31 = vsub.f32 %v6414_v36, %v4497_v49 }
0x177a   :  { %v4499_v30 = vmul.f32 1.442695, %v4498_v31 }
0x177c   :  { %5138 = vpow2.f32 %v4499_v30 }
0x177f   :  { %v4508_v60 = vpop.permute.xlu2 %4507 }
0x1780   :  { %vm4509_vm14 = vcmp.eq.s32.totalorder %v6595_v1, %v4508_v60 }
0x1781   :  { %v5005_v11 = vsel %vm4509_vm14, 1.0, %v6578_v15 }
0x1782   :  { %v5139_v52 = vpop.eup %5138 }
0x1783   :  { %4501 = vadd.xlane.f32.xlu1 %v5139_v52 }
0x17bc   :  { %v4936_v10 = vpop.xlane.xlu0 %4935 }
0x17bd   :  { %v4937_v42 = vsub.f32 %v6430_v21, %v4936_v10 }
0x17bf   :  { %v4938_v56 = vmul.f32 1.442695, %v4937_v42 }
0x17c1   :  { %5140 = vpow2.f32 %v4938_v56 }
0x17c2   :  { %5142 = vlog2.f32 %v3878_v53 }
0x17c7   :  { %v5141_v7 = vpop.eup %5140 }
0x17c8   :  { %4940 = vadd.xlane.f32.xlu2 %v5141_v7  ;;  %v5143_v58 = vpop.eup %5142 }
0x17c9   :  { %v3880_v38 = vmul.f32 0.6931472, %v5143_v58 }
0x17cf   :  { %v3884_v14 = vpop.permute.xlu0 %3883 }
0x17d0   :  { %vm3885_vm13 = vcmp.eq.s32.totalorder %v6595_v1, %v3884_v14 }
0x17d1   :  { %v5003_v43 = vsel %vm3885_vm13, 1.0, %v6578_v15 }
0x17d2   :  { %v3892_v24 = vmul.f32 %v5003_v43, %v3890_v8 }
0x17d8   :  { %v4514_v25 = vpop.permute.xlu0 %4513 }
0x17d9   :  { %v4516_v17 = vmul.f32 %v5005_v11, %v4514_v25 }
0x17e0   :  { %4952 = vperm.xlu2 %5047, %v6329_v9   ;;  %v3881_v9 = vadd.f32 %v3880_v38, %v6399_v45 }
0x17e1   :  { %v4947_v26 = vpop.permute.xlu0 %4946 }
0x17e2   :  { %vm4948_vm15 = vcmp.eq.s32.totalorder %v6595_v1, %v4947_v26  ;;  %v3893_v16 = vsub.f32 %v3881_v9, %v6375_v63 }
0x17e3   :  { %v5007_v59 = vsel %vm4948_vm15, 1.0, %v6578_v15 }
0x17e4   :  { %v3894_v29 = vmul.f32 %v3893_v16, %v3892_v24 }
0x17e6   :  { %v3895_v40 = vadd.f32 %v3894_v29, %v3271_v41 }
0x17f6   :  { %v4502_v46 = vpop.xlane.xlu1 %4501 }
0x17f7   :  { %5144 = vlog2.f32 %v4502_v46 }
0x17fd   :  { %v5145_v18 = vpop.eup %5144 }
0x17fe   :  { %v4504_v37 = vmul.f32 0.6931472, %v5145_v18 }
0x1800   :  { %v4505_v5 = vadd.f32 %v4504_v37, %v4497_v49 }
0x1802   :  { %v4517_v55 = vsub.f32 %v4505_v5, %v6414_v36 }
0x1804   :  { %v4518_v45 = vmul.f32 %v4517_v55, %v4516_v17 }
0x1806   :  { %v4519_v1 = vadd.f32 %v4518_v45, %v3895_v40 }
0x183b   :  { %v4941_v27 = vpop.xlane.xlu2 %4940 }
0x183c   :  { %5146 = vlog2.f32 %v4941_v27 }
0x1842   :  { %v5147_v61 = vpop.eup %5146 }
0x1843   :  { %v4943_v3 = vmul.f32 0.6931472, %v5147_v61  ;;  %v4953_v57 = vpop.permute.xlu2 %4952 }
0x1844   :  { %v4955_v35 = vmul.f32 %v5007_v59, %v4953_v57 }
0x1845   :  { %v4944_v54 = vadd.f32 %v4943_v3, %v4936_v10 }
0x1847   :  { %v4956_v39 = vsub.f32 %v4944_v54, %v6430_v21 }
0x1849   :  { %v4957_v13 = vmul.f32 %v4956_v39, %v4955_v35 }
0x184b   :  { %v4958_v12 = vadd.f32 %v4957_v13, %v4519_v1 }
0x184d   :  { %4959 = vst [vmem:[%s6465_s9] sm:$0xff] %v4958_v12 }
0x184e   :  { %4964 = vsyncpa [#allocation3], 1 }

</bundles_post_ra>
